<compile_context>
chip_gen: v7x
topology: tpu7x:2x2x1
jax: 0.10.0
libtpu: 0.0.40
codegen_flags: <defaults>
</compile_context>

<pallas_src>
import functools

import jax
import jax.numpy as jnp
from jax import lax
from jax.experimental import pallas as pl
from jax.experimental.pallas import tpu as pltpu


def _round_up(v, m):
    return ((v + m - 1) // m) * m


# ------------------------------ Pallas kernel --------------------------------
def spatial_path_kernel(xp_ref, w1_ref, b1_ref, w2_ref, b2_ref, w3_ref, b3_ref,
                        o_ref, pad2_ref, pad3_ref, *, dims, lpad):
    """Fused 3x (conv3x3/s2/p1 + folded-BN + ReLU) for one batch element.

    xp_ref : (H+2, Wp_in, C1P)   spatially pre-padded, channel-padded input (batch squeezed)
    wX_ref : (9*Cin, Cout)       im2col weights with BN scale folded in
    bX_ref : (1, Cout)           folded BN bias
    o_ref  : (H3, W3, 256)       final activation (lane-dense 256 channels)
    padK_ref: VMEM scratch staging the zero-haloed intermediate activations.
    """
    (H1, W1, WT1), (H2, W2, WT2), (H3, W3, WT3) = dims

    def conv_bn_relu(read_tap, w_ref, b_ref, Hout, Wt):
        k_total, cout = w_ref.shape
        cin = k_total // 9
        # 9 stride-2 tap reads -> lane-dense im2col LHS, single fused MXU matmul.
        taps = [read_tap(kh, kw, Hout, Wt) for kh in range(3) for kw in range(3)]
        lhs = jnp.concatenate(taps, axis=-1)                 # (Hout, Wt, 9*Cin)
        lhs = lhs.reshape(Hout * Wt, 9 * cin)                # layout-preserving (Wt % 8 == 0)
        acc = jnp.dot(lhs, w_ref[...], preferred_element_type=jnp.float32)
        y = jnp.maximum(acc + b_ref[...], 0.0)               # folded BN bias + ReLU (VPU)
        return y.reshape(Hout, Wt, cout)

    def stage(pad_ref, y, Ho, Wo):
        """Stage a layer output into its halo scratch buffer.

        Interior lives at rows [1, Ho], cols [lpad, lpad+Wo) (sublane-aligned start);
        only the halo / never-written strips are zeroed (no full-buffer memset).
        """
        Hp, Wa, C = pad_ref.shape
        pad_ref[0:1, :, :] = jnp.zeros((1, Wa, C), jnp.float32)            # top halo row
        pad_ref[Ho + 1:Ho + 2, :, :] = jnp.zeros((1, Wa, C), jnp.float32)  # bottom halo row
        pad_ref[:, 0:lpad, :] = jnp.zeros((Hp, lpad, C), jnp.float32)      # left cols (incl. halo)
        if Wa > lpad + Wo:                                                 # right halo + over-read
            pad_ref[:, lpad + Wo:Wa, :] = jnp.zeros((Hp, Wa - lpad - Wo, C), jnp.float32)
        pad_ref[1:Ho + 1, lpad:lpad + Wo, :] = y[:, :Wo, :]                # aligned interior store

    # ---- ConvBlock 1: taps straight from the pre-padded input block ----
    def tap1(kh, kw, Hout, Wt):
        return xp_ref[pl.ds(kh, Hout, 2), pl.ds(kw, Wt, 2), :]

    y1 = conv_bn_relu(tap1, w1_ref, b1_ref, H1, WT1)         # (H1, WT1, 64)
    stage(pad2_ref, y1, H1, W1)

    # ---- ConvBlock 2: taps from VMEM-staged layer-1 activation ----
    def tap2(kh, kw, Hout, Wt):
        return pad2_ref[pl.ds(kh, Hout, 2), pl.ds(lpad - 1 + kw, Wt, 2), :]

    y2 = conv_bn_relu(tap2, w2_ref, b2_ref, H2, WT2)         # (H2, WT2, 128)
    stage(pad3_ref, y2, H2, W2)

    # ---- ConvBlock 3 ----
    def tap3(kh, kw, Hout, Wt):
        return pad3_ref[pl.ds(kh, Hout, 2), pl.ds(lpad - 1 + kw, Wt, 2), :]

    y3 = conv_bn_relu(tap3, w3_ref, b3_ref, H3, WT3)         # (H3, WT3, 256)
    o_ref[...] = y3[:, :W3, :]


# ------------------------------ parameters ------------------------------------
def make_convblock_params(key, in_ch, out_ch, k=3, pad_in_to=None, eps=1e-5):
    """Synthetic ConvBlock params; BN (inference / running-stat semantics) folded."""
    kw_, kg, kb, km, kv = jax.random.split(key, 5)
    w = jax.random.normal(kw_, (out_ch, in_ch, k, k), jnp.float32) * 0.05
    gamma = 1.0 + 0.1 * jax.random.normal(kg, (out_ch,), jnp.float32)
    beta = 0.1 * jax.random.normal(kb, (out_ch,), jnp.float32)
    mean = 0.05 * jax.random.normal(km, (out_ch,), jnp.float32)
    var = 1.0 + 0.1 * jax.random.uniform(kv, (out_ch,), jnp.float32)

    scale = gamma / jnp.sqrt(var + eps)                       # (Cout,)
    bias = (beta - mean * scale).reshape(1, out_ch)

    cin_eff = max(in_ch, pad_in_to or 0)
    w_hwio = jnp.transpose(w, (2, 3, 1, 0))                   # (KH, KW, Cin, Cout)
    if cin_eff > in_ch:                                       # zero-pad Cin (layer 1: 3 -> 8)
        w_hwio = jnp.pad(w_hwio, ((0, 0), (0, 0), (0, cin_eff - in_ch), (0, 0)))
    # Fold BN scale, flatten to the im2col (9*Cin, Cout) layout (tap-major, channel-minor).
    w_mat = (w_hwio * scale.reshape(1, 1, 1, out_ch)).reshape(k * k * cin_eff, out_ch)

    return dict(w=w, gamma=gamma, beta=beta, mean=mean, var=var, eps=eps,
                w_mat=w_mat.astype(jnp.float32), bias=bias.astype(jnp.float32))


# ------------------------------ wrapper ----------------------------------------
def spatial_path_forward(x_nchw, params_list):
    x = jnp.transpose(x_nchw, (0, 2, 3, 1)).astype(jnp.float32)   # NCHW -> NHWC
    N, H, W, Cin = x.shape
    LPAD = 8                                                      # aligned interior column start

    C1P = params_list[0]["w_mat"].shape[0] // 9
    C1 = params_list[0]["w_mat"].shape[1]
    C2 = params_list[1]["w_mat"].shape[1]
    C3 = params_list[2]["w_mat"].shape[1]

    def out_sz(s):                                                # k=3, s=2, p=1
        return (s - 1) // 2 + 1

    H1, W1 = out_sz(H), out_sz(W)
    H2, W2 = out_sz(H1), out_sz(W1)
    H3, W3 = out_sz(H2), out_sz(W2)
    WT1, WT2, WT3 = _round_up(W1, 8), _round_up(W2, 8), _round_up(W3, 8)

    # Input: spatial p=1, extra zero columns for the padded-M over-read, channel pad 3 -> 8.
    Wp_in = max(W + 2, 2 * WT1 + 1)
    xp = jnp.pad(x, ((0, 0), (1, 1), (1, Wp_in - W - 1), (0, C1P - Cin)))

    # Scratch widths: store interior + right halo, and allow stride-2 over-reads of zeros.
    width2 = LPAD + _round_up(max(W1 + 1, 2 * WT2), 8)
    width3 = LPAD + _round_up(max(W2 + 1, 2 * WT3), 8)

    kernel = functools.partial(
        spatial_path_kernel,
        dims=((H1, W1, WT1), (H2, W2, WT2), (H3, W3, WT3)),
        lpad=LPAD)

    flops = 2 * N * (H1 * W1 * 9 * C1P * C1
                     + H2 * W2 * 9 * C1 * C2
                     + H3 * W3 * 9 * C2 * C3)
    bytes_accessed = (xp.size + N * H3 * W3 * C3
                      + sum(int(p["w_mat"].size) + int(p["bias"].size)
                            for p in params_list)) * 4

    out_nhwc = pl.pallas_call(
        kernel,
        out_shape=jax.ShapeDtypeStruct((N, H3, W3, C3), jnp.float32),
        grid=(N,),
        in_specs=[
            pl.BlockSpec((None, H + 2, Wp_in, C1P), lambda n: (n, 0, 0, 0)),
            # Weights / biases stay VMEM-resident across grid steps.
            pl.BlockSpec((9 * C1P, C1), lambda n: (0, 0)),
            pl.BlockSpec((1, C1), lambda n: (0, 0)),
            pl.BlockSpec((9 * C1, C2), lambda n: (0, 0)),
            pl.BlockSpec((1, C2), lambda n: (0, 0)),
            pl.BlockSpec((9 * C2, C3), lambda n: (0, 0)),
            pl.BlockSpec((1, C3), lambda n: (0, 0)),
        ],
        out_specs=pl.BlockSpec((None, H3, W3, C3), lambda n: (n, 0, 0, 0)),
        scratch_shapes=[
            pltpu.VMEM((H1 + 2, width2, C1), jnp.float32),   # staged layer-1 activation
            pltpu.VMEM((H2 + 2, width3, C2), jnp.float32),   # staged layer-2 activation
        ],
        compiler_params=pltpu.CompilerParams(
            dimension_semantics=("parallel",),               # megacore over batch on v7x
            vmem_limit_bytes=64 * 1024 * 1024),
        cost_estimate=pl.CostEstimate(flops=int(flops), transcendentals=0,
                                      bytes_accessed=int(bytes_accessed)),
    )(xp,
      params_list[0]["w_mat"], params_list[0]["bias"],
      params_list[1]["w_mat"], params_list[1]["bias"],
      params_list[2]["w_mat"], params_list[2]["bias"])

    return jnp.transpose(out_nhwc, (0, 3, 1, 2))             # NHWC -> NCHW


# ------------------------------ reference ---------------------------------------
def convblock_ref(x_nhwc, p):
    w_hwio = jnp.transpose(p["w"], (2, 3, 1, 0))              # (KH, KW, Cin, Cout)
    y = lax.conv_general_dilated(
        x_nhwc, w_hwio, window_strides=(2, 2), padding=((1, 1), (1, 1)),
        dimension_numbers=("NHWC", "HWIO", "NHWC"))
    y = (y - p["mean"]) / jnp.sqrt(p["var"] + p["eps"]) * p["gamma"] + p["beta"]
    return jnp.maximum(y, 0.0)


def spatial_path_ref(x_nchw, params_list):
    x = jnp.transpose(x_nchw, (0, 2, 3, 1)).astype(jnp.float32)
    for p in params_list:
        x = convblock_ref(x, p)
    return jnp.transpose(x, (0, 3, 1, 2))


# --------------------------------- main -------------------------------------------
if __name__ == "__main__":
    root = jax.random.PRNGKey(0)
    k_in, k1, k2, k3 = jax.random.split(root, 4)

    # Small input consistent with Spatial_path: in_channels = 3.
    x = jax.random.normal(k_in, (2, 3, 16, 16), dtype=jnp.float32)   # NCHW

    params_list = [
        make_convblock_params(k1, 3, 64, pad_in_to=8),
        make_convblock_params(k2, 64, 128),
        make_convblock_params(k3, 128, 256),
    ]

    out = jax.block_until_ready(spatial_path_forward(x, params_list))
    ref = jax.block_until_ready(spatial_path_ref(x, params_list))

    assert out.shape == (2, 256, 2, 2), out.shape
    max_err = float(jnp.max(jnp.abs(out - ref)))
    assert jnp.allclose(out, ref, atol=1e-4, rtol=1e-4), f"max abs err {max_err}"

    print("KERNEL_OK")
</pallas_src>

<mosaic_0001>
module attributes {stable_mosaic.version = 11 : i64} {
  func.func @spatial_path_kernel(%arg0: i32, %arg1: memref<1x18x18x8xf32, #tpu.memory_space<vmem>>, %arg2: memref<72x64xf32, #tpu.memory_space<vmem>>, %arg3: memref<1x64xf32, #tpu.memory_space<vmem>>, %arg4: memref<576x128xf32, #tpu.memory_space<vmem>>, %arg5: memref<1x128xf32, #tpu.memory_space<vmem>>, %arg6: memref<1152x256xf32, #tpu.memory_space<vmem>>, %arg7: memref<1x256xf32, #tpu.memory_space<vmem>>, %arg8: memref<1x2x2x256xf32, #tpu.memory_space<vmem>>, %arg9: memref<10x24x64xf32, #tpu.memory_space<vmem>>, %arg10: memref<6x24x128xf32, #tpu.memory_space<vmem>>) attributes {dimension_semantics = [#tpu.dimension_semantics<parallel>], iteration_bounds = array<i64: 2>, scalar_prefetch = 0 : i64, scratch_operands = 2 : i64, tpu.core_type = #tpu.core_type<tc>, window_params = [{transform_indices = @transform_0, window_bounds = array<i64: 1, 18, 18, 8>}, {pipeline_mode = #tpu.pipeline_mode<synchronous>, transform_indices = @transform_1, window_bounds = array<i64: 72, 64>}, {pipeline_mode = #tpu.pipeline_mode<synchronous>, transform_indices = @transform_2, window_bounds = array<i64: 1, 64>}, {pipeline_mode = #tpu.pipeline_mode<synchronous>, transform_indices = @transform_3, window_bounds = array<i64: 576, 128>}, {pipeline_mode = #tpu.pipeline_mode<synchronous>, transform_indices = @transform_4, window_bounds = array<i64: 1, 128>}, {pipeline_mode = #tpu.pipeline_mode<synchronous>, transform_indices = @transform_5, window_bounds = array<i64: 1152, 256>}, {pipeline_mode = #tpu.pipeline_mode<synchronous>, transform_indices = @transform_6, window_bounds = array<i64: 1, 256>}, {transform_indices = @transform_7, window_bounds = array<i64: 1, 2, 2, 256>}]} {
    %c0 = arith.constant 0 : index
    %c0_0 = arith.constant 0 : index
    %c0_1 = arith.constant 0 : index
    %c0_2 = arith.constant 0 : index
    %0 = tpu.strided_load %arg1[%c0, %c0_0, %c0_1, %c0_2] {strides = array<i32: 1, 2, 2, 1>} : memref<1x18x18x8xf32, #tpu.memory_space<vmem>>, vector<1x8x8x8xf32>
    %1 = vector.shape_cast %0 : vector<1x8x8x8xf32> to vector<8x8x8xf32>
    %c0_3 = arith.constant 0 : index
    %c0_4 = arith.constant 0 : index
    %c1 = arith.constant 1 : index
    %c0_5 = arith.constant 0 : index
    %2 = tpu.strided_load %arg1[%c0_3, %c0_4, %c1, %c0_5] {strides = array<i32: 1, 2, 2, 1>} : memref<1x18x18x8xf32, #tpu.memory_space<vmem>>, vector<1x8x8x8xf32>
    %3 = vector.shape_cast %2 : vector<1x8x8x8xf32> to vector<8x8x8xf32>
    %c0_6 = arith.constant 0 : index
    %c0_7 = arith.constant 0 : index
    %c2 = arith.constant 2 : index
    %c0_8 = arith.constant 0 : index
    %4 = tpu.strided_load %arg1[%c0_6, %c0_7, %c2, %c0_8] {strides = array<i32: 1, 2, 2, 1>} : memref<1x18x18x8xf32, #tpu.memory_space<vmem>>, vector<1x8x8x8xf32>
    %5 = vector.shape_cast %4 : vector<1x8x8x8xf32> to vector<8x8x8xf32>
    %c0_9 = arith.constant 0 : index
    %c1_10 = arith.constant 1 : index
    %c0_11 = arith.constant 0 : index
    %c0_12 = arith.constant 0 : index
    %6 = tpu.strided_load %arg1[%c0_9, %c1_10, %c0_11, %c0_12] {strides = array<i32: 1, 2, 2, 1>} : memref<1x18x18x8xf32, #tpu.memory_space<vmem>>, vector<1x8x8x8xf32>
    %7 = vector.shape_cast %6 : vector<1x8x8x8xf32> to vector<8x8x8xf32>
    %c0_13 = arith.constant 0 : index
    %c1_14 = arith.constant 1 : index
    %c1_15 = arith.constant 1 : index
    %c0_16 = arith.constant 0 : index
    %8 = tpu.strided_load %arg1[%c0_13, %c1_14, %c1_15, %c0_16] {strides = array<i32: 1, 2, 2, 1>} : memref<1x18x18x8xf32, #tpu.memory_space<vmem>>, vector<1x8x8x8xf32>
    %9 = vector.shape_cast %8 : vector<1x8x8x8xf32> to vector<8x8x8xf32>
    %c0_17 = arith.constant 0 : index
    %c1_18 = arith.constant 1 : index
    %c2_19 = arith.constant 2 : index
    %c0_20 = arith.constant 0 : index
    %10 = tpu.strided_load %arg1[%c0_17, %c1_18, %c2_19, %c0_20] {strides = array<i32: 1, 2, 2, 1>} : memref<1x18x18x8xf32, #tpu.memory_space<vmem>>, vector<1x8x8x8xf32>
    %11 = vector.shape_cast %10 : vector<1x8x8x8xf32> to vector<8x8x8xf32>
    %c0_21 = arith.constant 0 : index
    %c2_22 = arith.constant 2 : index
    %c0_23 = arith.constant 0 : index
    %c0_24 = arith.constant 0 : index
    %12 = tpu.strided_load %arg1[%c0_21, %c2_22, %c0_23, %c0_24] {strides = array<i32: 1, 2, 2, 1>} : memref<1x18x18x8xf32, #tpu.memory_space<vmem>>, vector<1x8x8x8xf32>
    %13 = vector.shape_cast %12 : vector<1x8x8x8xf32> to vector<8x8x8xf32>
    %c0_25 = arith.constant 0 : index
    %c2_26 = arith.constant 2 : index
    %c1_27 = arith.constant 1 : index
    %c0_28 = arith.constant 0 : index
    %14 = tpu.strided_load %arg1[%c0_25, %c2_26, %c1_27, %c0_28] {strides = array<i32: 1, 2, 2, 1>} : memref<1x18x18x8xf32, #tpu.memory_space<vmem>>, vector<1x8x8x8xf32>
    %15 = vector.shape_cast %14 : vector<1x8x8x8xf32> to vector<8x8x8xf32>
    %c0_29 = arith.constant 0 : index
    %c2_30 = arith.constant 2 : index
    %c2_31 = arith.constant 2 : index
    %c0_32 = arith.constant 0 : index
    %16 = tpu.strided_load %arg1[%c0_29, %c2_30, %c2_31, %c0_32] {strides = array<i32: 1, 2, 2, 1>} : memref<1x18x18x8xf32, #tpu.memory_space<vmem>>, vector<1x8x8x8xf32>
    %17 = vector.shape_cast %16 : vector<1x8x8x8xf32> to vector<8x8x8xf32>
    %18 = tpu.concatenate %1, %3, %5, %7, %9, %11, %13, %15, %17 in 2 : vector<8x8x8xf32>, vector<8x8x8xf32>, vector<8x8x8xf32>, vector<8x8x8xf32>, vector<8x8x8xf32>, vector<8x8x8xf32>, vector<8x8x8xf32>, vector<8x8x8xf32>, vector<8x8x8xf32> -> vector<8x8x72xf32>
    %19 = vector.shape_cast %18 : vector<8x8x72xf32> to vector<64x72xf32>
    %c0_33 = arith.constant 0 : index
    %c0_34 = arith.constant 0 : index
    %20 = vector.load %arg2[%c0_33, %c0_34] : memref<72x64xf32, #tpu.memory_space<vmem>>, vector<72x64xf32>
    %cst = arith.constant dense<0.000000e+00> : vector<64x64xf32>
    %21 = tpu.matmul %19, %20, %cst {dimension_numbers = #tpu.dot_dimension_numbers<[1], [0], [0], [1], [0, 0, 1, 1], [], []>} : vector<64x72xf32>, vector<72x64xf32>, vector<64x64xf32> -> vector<64x64xf32>
    %c0_35 = arith.constant 0 : index
    %c0_36 = arith.constant 0 : index
    %22 = vector.load %arg3[%c0_35, %c0_36] : memref<1x64xf32, #tpu.memory_space<vmem>>, vector<1x64xf32>
    %23 = vector.broadcast %22 : vector<1x64xf32> to vector<64x64xf32>
    %24 = arith.addf %21, %23 : vector<64x64xf32>
    %cst_37 = arith.constant 0.000000e+00 : f32
    %25 = vector.broadcast %cst_37 : f32 to vector<64x64xf32>
    %26 = arith.maximumf %24, %25 : vector<64x64xf32>
    %27 = vector.shape_cast %26 : vector<64x64xf32> to vector<8x8x64xf32>
    %cst_38 = arith.constant 0.000000e+00 : f32
    %28 = vector.broadcast %cst_38 : f32 to vector<1x24x64xf32>
    %c0_39 = arith.constant 0 : index
    %c0_40 = arith.constant 0 : index
    %c0_41 = arith.constant 0 : index
    %29 = vector.load %arg9[%c0_39, %c0_40, %c0_41] : memref<10x24x64xf32, #tpu.memory_space<vmem>>, vector<1x24x64xf32>
    tpu.vector_store %arg9[%c0_39, %c0_40, %c0_41], %28 {strides = array<i32>} : memref<10x24x64xf32, #tpu.memory_space<vmem>>, vector<1x24x64xf32>,
    %cst_42 = arith.constant 0.000000e+00 : f32
    %30 = vector.broadcast %cst_42 : f32 to vector<1x24x64xf32>
    %c9 = arith.constant 9 : index
    %c0_43 = arith.constant 0 : index
    %c0_44 = arith.constant 0 : index
    %31 = vector.load %arg9[%c9, %c0_43, %c0_44] : memref<10x24x64xf32, #tpu.memory_space<vmem>>, vector<1x24x64xf32>
    tpu.vector_store %arg9[%c9, %c0_43, %c0_44], %30 {strides = array<i32>} : memref<10x24x64xf32, #tpu.memory_space<vmem>>, vector<1x24x64xf32>,
    %cst_45 = arith.constant 0.000000e+00 : f32
    %32 = vector.broadcast %cst_45 : f32 to vector<10x8x64xf32>
    %c0_46 = arith.constant 0 : index
    %c0_47 = arith.constant 0 : index
    %c0_48 = arith.constant 0 : index
    %33 = vector.load %arg9[%c0_46, %c0_47, %c0_48] : memref<10x24x64xf32, #tpu.memory_space<vmem>>, vector<10x8x64xf32>
    tpu.vector_store %arg9[%c0_46, %c0_47, %c0_48], %32 {strides = array<i32>} : memref<10x24x64xf32, #tpu.memory_space<vmem>>, vector<10x8x64xf32>,
    %cst_49 = arith.constant 0.000000e+00 : f32
    %34 = vector.broadcast %cst_49 : f32 to vector<10x8x64xf32>
    %c0_50 = arith.constant 0 : index
    %c16 = arith.constant 16 : index
    %c0_51 = arith.constant 0 : index
    %35 = vector.load %arg9[%c0_50, %c16, %c0_51] : memref<10x24x64xf32, #tpu.memory_space<vmem>>, vector<10x8x64xf32>
    tpu.vector_store %arg9[%c0_50, %c16, %c0_51], %34 {strides = array<i32>} : memref<10x24x64xf32, #tpu.memory_space<vmem>>, vector<10x8x64xf32>,
    %c1_52 = arith.constant 1 : index
    %c8 = arith.constant 8 : index
    %c0_53 = arith.constant 0 : index
    %36 = vector.load %arg9[%c1_52, %c8, %c0_53] : memref<10x24x64xf32, #tpu.memory_space<vmem>>, vector<8x8x64xf32>
    tpu.vector_store %arg9[%c1_52, %c8, %c0_53], %27 {strides = array<i32>} : memref<10x24x64xf32, #tpu.memory_space<vmem>>, vector<8x8x64xf32>,
    %c0_54 = arith.constant 0 : index
    %c7 = arith.constant 7 : index
    %c0_55 = arith.constant 0 : index
    %37 = tpu.strided_load %arg9[%c0_54, %c7, %c0_55] {strides = array<i32: 2, 2, 1>} : memref<10x24x64xf32, #tpu.memory_space<vmem>>, vector<4x8x64xf32>
    %c0_56 = arith.constant 0 : index
    %c8_57 = arith.constant 8 : index
    %c0_58 = arith.constant 0 : index
    %38 = tpu.strided_load %arg9[%c0_56, %c8_57, %c0_58] {strides = array<i32: 2, 2, 1>} : memref<10x24x64xf32, #tpu.memory_space<vmem>>, vector<4x8x64xf32>
    %c0_59 = arith.constant 0 : index
    %c9_60 = arith.constant 9 : index
    %c0_61 = arith.constant 0 : index
    %39 = tpu.strided_load %arg9[%c0_59, %c9_60, %c0_61] {strides = array<i32: 2, 2, 1>} : memref<10x24x64xf32, #tpu.memory_space<vmem>>, vector<4x8x64xf32>
    %c1_62 = arith.constant 1 : index
    %c7_63 = arith.constant 7 : index
    %c0_64 = arith.constant 0 : index
    %40 = tpu.strided_load %arg9[%c1_62, %c7_63, %c0_64] {strides = array<i32: 2, 2, 1>} : memref<10x24x64xf32, #tpu.memory_space<vmem>>, vector<4x8x64xf32>
    %c1_65 = arith.constant 1 : index
    %c8_66 = arith.constant 8 : index
    %c0_67 = arith.constant 0 : index
    %41 = tpu.strided_load %arg9[%c1_65, %c8_66, %c0_67] {strides = array<i32: 2, 2, 1>} : memref<10x24x64xf32, #tpu.memory_space<vmem>>, vector<4x8x64xf32>
    %c1_68 = arith.constant 1 : index
    %c9_69 = arith.constant 9 : index
    %c0_70 = arith.constant 0 : index
    %42 = tpu.strided_load %arg9[%c1_68, %c9_69, %c0_70] {strides = array<i32: 2, 2, 1>} : memref<10x24x64xf32, #tpu.memory_space<vmem>>, vector<4x8x64xf32>
    %c2_71 = arith.constant 2 : index
    %c7_72 = arith.constant 7 : index
    %c0_73 = arith.constant 0 : index
    %43 = tpu.strided_load %arg9[%c2_71, %c7_72, %c0_73] {strides = array<i32: 2, 2, 1>} : memref<10x24x64xf32, #tpu.memory_space<vmem>>, vector<4x8x64xf32>
    %c2_74 = arith.constant 2 : index
    %c8_75 = arith.constant 8 : index
    %c0_76 = arith.constant 0 : index
    %44 = tpu.strided_load %arg9[%c2_74, %c8_75, %c0_76] {strides = array<i32: 2, 2, 1>} : memref<10x24x64xf32, #tpu.memory_space<vmem>>, vector<4x8x64xf32>
    %c2_77 = arith.constant 2 : index
    %c9_78 = arith.constant 9 : index
    %c0_79 = arith.constant 0 : index
    %45 = tpu.strided_load %arg9[%c2_77, %c9_78, %c0_79] {strides = array<i32: 2, 2, 1>} : memref<10x24x64xf32, #tpu.memory_space<vmem>>, vector<4x8x64xf32>
    %46 = tpu.concatenate %37, %38, %39, %40, %41, %42, %43, %44, %45 in 2 : vector<4x8x64xf32>, vector<4x8x64xf32>, vector<4x8x64xf32>, vector<4x8x64xf32>, vector<4x8x64xf32>, vector<4x8x64xf32>, vector<4x8x64xf32>, vector<4x8x64xf32>, vector<4x8x64xf32> -> vector<4x8x576xf32>
    %47 = vector.shape_cast %46 : vector<4x8x576xf32> to vector<32x576xf32>
    %c0_80 = arith.constant 0 : index
    %c0_81 = arith.constant 0 : index
    %48 = vector.load %arg4[%c0_80, %c0_81] : memref<576x128xf32, #tpu.memory_space<vmem>>, vector<576x128xf32>
    %cst_82 = arith.constant dense<0.000000e+00> : vector<32x128xf32>
    %49 = tpu.matmul %47, %48, %cst_82 {dimension_numbers = #tpu.dot_dimension_numbers<[1], [0], [0], [1], [0, 0, 1, 1], [], []>} : vector<32x576xf32>, vector<576x128xf32>, vector<32x128xf32> -> vector<32x128xf32>
    %c0_83 = arith.constant 0 : index
    %c0_84 = arith.constant 0 : index
    %50 = vector.load %arg5[%c0_83, %c0_84] : memref<1x128xf32, #tpu.memory_space<vmem>>, vector<1x128xf32>
    %51 = vector.broadcast %50 : vector<1x128xf32> to vector<32x128xf32>
    %52 = arith.addf %49, %51 : vector<32x128xf32>
    %cst_85 = arith.constant 0.000000e+00 : f32
    %53 = vector.broadcast %cst_85 : f32 to vector<32x128xf32>
    %54 = arith.maximumf %52, %53 : vector<32x128xf32>
    %55 = vector.shape_cast %54 : vector<32x128xf32> to vector<4x8x128xf32>
    %cst_86 = arith.constant 0.000000e+00 : f32
    %56 = vector.broadcast %cst_86 : f32 to vector<1x24x128xf32>
    %c0_87 = arith.constant 0 : index
    %c0_88 = arith.constant 0 : index
    %c0_89 = arith.constant 0 : index
    %57 = vector.load %arg10[%c0_87, %c0_88, %c0_89] : memref<6x24x128xf32, #tpu.memory_space<vmem>>, vector<1x24x128xf32>
    tpu.vector_store %arg10[%c0_87, %c0_88, %c0_89], %56 {strides = array<i32>} : memref<6x24x128xf32, #tpu.memory_space<vmem>>, vector<1x24x128xf32>,
    %cst_90 = arith.constant 0.000000e+00 : f32
    %58 = vector.broadcast %cst_90 : f32 to vector<1x24x128xf32>
    %c5 = arith.constant 5 : index
    %c0_91 = arith.constant 0 : index
    %c0_92 = arith.constant 0 : index
    %59 = vector.load %arg10[%c5, %c0_91, %c0_92] : memref<6x24x128xf32, #tpu.memory_space<vmem>>, vector<1x24x128xf32>
    tpu.vector_store %arg10[%c5, %c0_91, %c0_92], %58 {strides = array<i32>} : memref<6x24x128xf32, #tpu.memory_space<vmem>>, vector<1x24x128xf32>,
    %cst_93 = arith.constant 0.000000e+00 : f32
    %60 = vector.broadcast %cst_93 : f32 to vector<6x8x128xf32>
    %c0_94 = arith.constant 0 : index
    %c0_95 = arith.constant 0 : index
    %c0_96 = arith.constant 0 : index
    %61 = vector.load %arg10[%c0_94, %c0_95, %c0_96] : memref<6x24x128xf32, #tpu.memory_space<vmem>>, vector<6x8x128xf32>
    tpu.vector_store %arg10[%c0_94, %c0_95, %c0_96], %60 {strides = array<i32>} : memref<6x24x128xf32, #tpu.memory_space<vmem>>, vector<6x8x128xf32>,
    %cst_97 = arith.constant 0.000000e+00 : f32
    %62 = vector.broadcast %cst_97 : f32 to vector<6x12x128xf32>
    %c0_98 = arith.constant 0 : index
    %c12 = arith.constant 12 : index
    %c0_99 = arith.constant 0 : index
    %63 = vector.load %arg10[%c0_98, %c12, %c0_99] : memref<6x24x128xf32, #tpu.memory_space<vmem>>, vector<6x12x128xf32>
    tpu.vector_store %arg10[%c0_98, %c12, %c0_99], %62 {strides = array<i32>} : memref<6x24x128xf32, #tpu.memory_space<vmem>>, vector<6x12x128xf32>,
    %64 = vector.extract_strided_slice %55 {offsets = [0, 0, 0], sizes = [4, 4, 128], strides = [1, 1, 1]} : vector<4x8x128xf32> to vector<4x4x128xf32>
    %c1_100 = arith.constant 1 : index
    %c8_101 = arith.constant 8 : index
    %c0_102 = arith.constant 0 : index
    %65 = vector.load %arg10[%c1_100, %c8_101, %c0_102] : memref<6x24x128xf32, #tpu.memory_space<vmem>>, vector<4x4x128xf32>
    tpu.vector_store %arg10[%c1_100, %c8_101, %c0_102], %64 {strides = array<i32>} : memref<6x24x128xf32, #tpu.memory_space<vmem>>, vector<4x4x128xf32>,
    %c0_103 = arith.constant 0 : index
    %c7_104 = arith.constant 7 : index
    %c0_105 = arith.constant 0 : index
    %66 = tpu.strided_load %arg10[%c0_103, %c7_104, %c0_105] {strides = array<i32: 2, 2, 1>} : memref<6x24x128xf32, #tpu.memory_space<vmem>>, vector<2x8x128xf32>
    %c0_106 = arith.constant 0 : index
    %c8_107 = arith.constant 8 : index
    %c0_108 = arith.constant 0 : index
    %67 = tpu.strided_load %arg10[%c0_106, %c8_107, %c0_108] {strides = array<i32: 2, 2, 1>} : memref<6x24x128xf32, #tpu.memory_space<vmem>>, vector<2x8x128xf32>
    %c0_109 = arith.constant 0 : index
    %c9_110 = arith.constant 9 : index
    %c0_111 = arith.constant 0 : index
    %68 = tpu.strided_load %arg10[%c0_109, %c9_110, %c0_111] {strides = array<i32: 2, 2, 1>} : memref<6x24x128xf32, #tpu.memory_space<vmem>>, vector<2x8x128xf32>
    %c1_112 = arith.constant 1 : index
    %c7_113 = arith.constant 7 : index
    %c0_114 = arith.constant 0 : index
    %69 = tpu.strided_load %arg10[%c1_112, %c7_113, %c0_114] {strides = array<i32: 2, 2, 1>} : memref<6x24x128xf32, #tpu.memory_space<vmem>>, vector<2x8x128xf32>
    %c1_115 = arith.constant 1 : index
    %c8_116 = arith.constant 8 : index
    %c0_117 = arith.constant 0 : index
    %70 = tpu.strided_load %arg10[%c1_115, %c8_116, %c0_117] {strides = array<i32: 2, 2, 1>} : memref<6x24x128xf32, #tpu.memory_space<vmem>>, vector<2x8x128xf32>
    %c1_118 = arith.constant 1 : index
    %c9_119 = arith.constant 9 : index
    %c0_120 = arith.constant 0 : index
    %71 = tpu.strided_load %arg10[%c1_118, %c9_119, %c0_120] {strides = array<i32: 2, 2, 1>} : memref<6x24x128xf32, #tpu.memory_space<vmem>>, vector<2x8x128xf32>
    %c2_121 = arith.constant 2 : index
    %c7_122 = arith.constant 7 : index
    %c0_123 = arith.constant 0 : index
    %72 = tpu.strided_load %arg10[%c2_121, %c7_122, %c0_123] {strides = array<i32: 2, 2, 1>} : memref<6x24x128xf32, #tpu.memory_space<vmem>>, vector<2x8x128xf32>
    %c2_124 = arith.constant 2 : index
    %c8_125 = arith.constant 8 : index
    %c0_126 = arith.constant 0 : index
    %73 = tpu.strided_load %arg10[%c2_124, %c8_125, %c0_126] {strides = array<i32: 2, 2, 1>} : memref<6x24x128xf32, #tpu.memory_space<vmem>>, vector<2x8x128xf32>
    %c2_127 = arith.constant 2 : index
    %c9_128 = arith.constant 9 : index
    %c0_129 = arith.constant 0 : index
    %74 = tpu.strided_load %arg10[%c2_127, %c9_128, %c0_129] {strides = array<i32: 2, 2, 1>} : memref<6x24x128xf32, #tpu.memory_space<vmem>>, vector<2x8x128xf32>
    %75 = tpu.concatenate %66, %67, %68, %69, %70, %71, %72, %73, %74 in 2 : vector<2x8x128xf32>, vector<2x8x128xf32>, vector<2x8x128xf32>, vector<2x8x128xf32>, vector<2x8x128xf32>, vector<2x8x128xf32>, vector<2x8x128xf32>, vector<2x8x128xf32>, vector<2x8x128xf32> -> vector<2x8x1152xf32>
    %76 = vector.shape_cast %75 : vector<2x8x1152xf32> to vector<16x1152xf32>
    %c0_130 = arith.constant 0 : index
    %c0_131 = arith.constant 0 : index
    %77 = vector.load %arg6[%c0_130, %c0_131] : memref<1152x256xf32, #tpu.memory_space<vmem>>, vector<1152x256xf32>
    %cst_132 = arith.constant dense<0.000000e+00> : vector<16x256xf32>
    %78 = tpu.matmul %76, %77, %cst_132 {dimension_numbers = #tpu.dot_dimension_numbers<[1], [0], [0], [1], [0, 0, 1, 1], [], []>} : vector<16x1152xf32>, vector<1152x256xf32>, vector<16x256xf32> -> vector<16x256xf32>
    %c0_133 = arith.constant 0 : index
    %c0_134 = arith.constant 0 : index
    %79 = vector.load %arg7[%c0_133, %c0_134] : memref<1x256xf32, #tpu.memory_space<vmem>>, vector<1x256xf32>
    %80 = vector.broadcast %79 : vector<1x256xf32> to vector<16x256xf32>
    %81 = arith.addf %78, %80 : vector<16x256xf32>
    %cst_135 = arith.constant 0.000000e+00 : f32
    %82 = vector.broadcast %cst_135 : f32 to vector<16x256xf32>
    %83 = arith.maximumf %81, %82 : vector<16x256xf32>
    %84 = vector.shape_cast %83 : vector<16x256xf32> to vector<2x8x256xf32>
    %85 = vector.extract_strided_slice %84 {offsets = [0, 0, 0], sizes = [2, 2, 256], strides = [1, 1, 1]} : vector<2x8x256xf32> to vector<2x2x256xf32>
    %c0_136 = arith.constant 0 : index
    %c0_137 = arith.constant 0 : index
    %c0_138 = arith.constant 0 : index
    %c0_139 = arith.constant 0 : index
    %86 = vector.load %arg8[%c0_136, %c0_137, %c0_138, %c0_139] : memref<1x2x2x256xf32, #tpu.memory_space<vmem>>, vector<1x2x2x256xf32>
    %87 = vector.shape_cast %86 : vector<1x2x2x256xf32> to vector<2x2x256xf32>
    %88 = vector.shape_cast %85 : vector<2x2x256xf32> to vector<1x2x2x256xf32>
    tpu.vector_store %arg8[%c0_136, %c0_137, %c0_138, %c0_139], %88 {strides = array<i32>} : memref<1x2x2x256xf32, #tpu.memory_space<vmem>>, vector<1x2x2x256xf32>,
    return
  }
  func.func @transform_0(%arg0: i32) -> (i32, i32, i32, i32) {
    %c0_i32 = arith.constant 0 : i32
    %c0_i32_0 = arith.constant 0 : i32
    %c0_i32_1 = arith.constant 0 : i32
    %c0_i32_2 = arith.constant 0 : i32
    return %arg0, %c0_i32, %c0_i32_0, %c0_i32_1 : i32, i32, i32, i32
  }
  func.func @transform_1(%arg0: i32) -> (i32, i32) {
    %c0_i32 = arith.constant 0 : i32
    %c0_i32_0 = arith.constant 0 : i32
    %c0_i32_1 = arith.constant 0 : i32
    return %c0_i32, %c0_i32_0 : i32, i32
  }
  func.func @transform_2(%arg0: i32) -> (i32, i32) {
    %c0_i32 = arith.constant 0 : i32
    %c0_i32_0 = arith.constant 0 : i32
    %c0_i32_1 = arith.constant 0 : i32
    return %c0_i32, %c0_i32_0 : i32, i32
  }
  func.func @transform_3(%arg0: i32) -> (i32, i32) {
    %c0_i32 = arith.constant 0 : i32
    %c0_i32_0 = arith.constant 0 : i32
    %c0_i32_1 = arith.constant 0 : i32
    return %c0_i32, %c0_i32_0 : i32, i32
  }
  func.func @transform_4(%arg0: i32) -> (i32, i32) {
    %c0_i32 = arith.constant 0 : i32
    %c0_i32_0 = arith.constant 0 : i32
    %c0_i32_1 = arith.constant 0 : i32
    return %c0_i32, %c0_i32_0 : i32, i32
  }
  func.func @transform_5(%arg0: i32) -> (i32, i32) {
    %c0_i32 = arith.constant 0 : i32
    %c0_i32_0 = arith.constant 0 : i32
    %c0_i32_1 = arith.constant 0 : i32
    return %c0_i32, %c0_i32_0 : i32, i32
  }
  func.func @transform_6(%arg0: i32) -> (i32, i32) {
    %c0_i32 = arith.constant 0 : i32
    %c0_i32_0 = arith.constant 0 : i32
    %c0_i32_1 = arith.constant 0 : i32
    return %c0_i32, %c0_i32_0 : i32, i32
  }
  func.func @transform_7(%arg0: i32) -> (i32, i32, i32, i32) {
    %c0_i32 = arith.constant 0 : i32
    %c0_i32_0 = arith.constant 0 : i32
    %c0_i32_1 = arith.constant 0 : i32
    %c0_i32_2 = arith.constant 0 : i32
    return %arg0, %c0_i32, %c0_i32_0, %c0_i32_1 : i32, i32, i32, i32
  }
}

</mosaic_0001>

<bundles_post_ra>
// kernel: tpu_custom_call.1
= control target key start
LH: loop header
LB: loop body
LE: loop exit
PB: predicated region body
PF: predicated region fallthrough
CT: control target
= control target key end

     0   :  { %s4351_s0 = inlined_call_operand.hbm [shape: f32[2,18,18,8], index: 0, kind: input, shape index: {}]   ;;  %s4352_s1 = inlined_call_operand.hbm [shape: f32[72,64], index: 1, kind: input, shape index: {}]   ;;  %s4353_s2 = inlined_call_operand.hbm [shape: f32[1,64], index: 2, kind: input, shape index: {}]   ;;  %s4354_s3 = inlined_call_operand.hbm [shape: f32[576,128], index: 3, kind: input, shape index: {}]   ;;  %s4355_s4 = inlined_call_operand.hbm [shape: f32[1,128], index: 4, kind: input, shape index: {}]   ;;  %s4356_s5 = inlined_call_operand.hbm [shape: f32[1152,256], index: 5, kind: input, shape index: {}]   ;;  %s4357_s6 = inlined_call_operand.hbm [shape: f32[1,256], index: 6, kind: input, shape index: {}]   ;;  %s4358_s7 = inlined_call_operand.hbm [shape: f32[2,2,2,256], index: 7, kind: output, shape index: {}]  }
   0x1   :  { %4364 = sst [smem:[#allocation22_spill]] %s4352_s1 }
   0x2   :  { %12 = vsyncpa [#allocation5], 0 }
   0x3   :  { %14 = vsyncpa [#allocation5 + $0x1], 0 }
   0x4   :  { %15 = vsyncpa [#allocation8], 0 }
   0x5   :  { %16 = vsyncpa [#allocation11], 0 }
   0x6   :  { %17 = vsyncpa [#allocation14], 0 }
   0x7   :  { %18 = vsyncpa [#allocation6], 0 }
   0x8   :  { %20 = vsyncpa [#allocation6 + $0x1], 0  ;;  %s3737_s24 = smov 0   ;;  %s3739_s25 = smov 0  }
   0x9   :  { %s3741_s26 = smov 0   ;;  %s3743_s27 = smov 0  }
   0xa LB: > { %s3675_s28 = smov [#allocation7]   ;;  %s3758_s30 = sadd.s32 4294967295, %s3673_s27   ;;  %s3673_s27 = sphi %s3743_s27, %s4389_s27   ;;  %s3669_s26 = sphi %s3741_s26, %s4388_s26   ;;  %s3665_s25 = sphi %s3739_s25, %s4387_s25   ;;  %s3661_s24 = sphi %s3737_s24, %s4386_s24  }
   0xb   : > { %s221_s29 = sshll.u32 %s3675_s28, 4  ;;  %p2549_p0 = scmp.ge.s32.totalorder %s3673_s27, 1  ;;  %s3763_s29 = int_to_ptr.vmem [resolvable:$true] %s221_s29 }
   0xc   : > { %p4361_p1 = scmp.eq.s32.totalorder %s3758_s30, 0  ;;  %p209_p2 = scmp.lt.s32.totalorder %s3673_s27, 3 }
   0xd   : > { %s3676_s9 = smov [#allocation10]   ;;  %s3677_s12 = smov [#allocation13]  }
   0xe   : > { %p3765_p3 = pnand %p2549_p0, %p209_p2  ;;  %s245_s10 = sshll.u32 %s3676_s9, 4  ;;  %s3778_s10 = int_to_ptr.vmem [resolvable:$true] %s245_s10 }
   0xf   : > { %s269_s13 = sshll.u32 %s3677_s12, 4  ;;  %s4367_s1 = sld [smem:[#allocation22_spill]]  ;;  %s3780_s13 = int_to_ptr.vmem [resolvable:$true] %s269_s13 }
  0x10   : > { %s4365_s8 = scalar_select %p3765_p3, 1, 0 }
  0x11   : > { %p3263_p5 = pneg %p3765_p3 }
  0x13   : > { %p3774_p6 = pnand %p3263_p5, %p4361_p1 }
  0x15   : > { %s3397_s16 = scalar_lea.hbm %s4367_s1, 1152  ;;  %p3790_p8 = pneg %p3774_p6 }
  0x16   : > { %p3398_p7 = scmp.ne.s32.totalorder %s4367_s1, %s3397_s16  ;;  %p3404_p11 = scmp.lt.u32.totalorder %s3397_s16, %s4367_s1 }
  0x18   : > { %p3400_p9 = pnand %p3790_p8, %p3398_p7 }
  0x1a   : > { %p3401_p10 = pneg %p3400_p9 }
  0x1c   : > { %p3406_p12 = pnand %p3404_p11, %p3401_p10 }
  0x1e   : > { %3409 = shalt.err (!%p3406_p12)
}
  0x1f   : > { %s3410_s22 = scalar_lea.vmem %s3763_s29, 1152  ;;  %p3418_p5 = scmp.lt.s32.totalorder %s3763_s29, %s3763_s29 }
  0x20   : > { %p3411_p13 = scmp.ne.s32.totalorder %s3763_s29, %s3410_s22  ;;  %p3419_p4 = scmp.lt.s32.totalorder %s3410_s22, %s3410_s22 }
  0x22   : > { %p3413_p0 = pnand %p3411_p13, %p3790_p8  ;;  %p3420_p7 = por %p3419_p4, %p3418_p5 }
  0x24   : > { %p3414_p2 = pneg %p3413_p0 }
  0x26   : > { %p3421_p9 = pnand %p3420_p7, %p3414_p2 }
  0x28   : > { %3424 = shalt.err (!%p3421_p9)
}
  0x29   : > { %s4359_s23 = smov 128   ;;  %s4360_s28 = smov 8  }
  0x2a   : > { %3266 = dma.hbm_to_vmem [thread:$0]  (!%p3774_p6), %s4367_s1, 1152, %s3763_s29, [#allocation8], %s4359_s23, %s4359_s23, %s4360_s28  }
  0x2b   : > { %s3425_s16 = scalar_lea.hbm %s4354_s3, 9216 }
  0x2c   : > { %p3426_p4 = scmp.ne.s32.totalorder %s4354_s3, %s3425_s16  ;;  %p3432_p12 = scmp.lt.u32.totalorder %s3425_s16, %s4354_s3 }
  0x2e   : > { %p3428_p10 = pnand %p3426_p4, %p3790_p8 }
  0x30   : > { %p3429_p11 = pneg %p3428_p10 }
  0x32   : > { %p3434_p13 = pnand %p3432_p12, %p3429_p11 }
  0x34   : > { %3437 = shalt.err (!%p3434_p13)
}
  0x35   : > { %s3438_s29 = scalar_lea.vmem %s3778_s10, 9216  ;;  %p3446_p7 = scmp.lt.s32.totalorder %s3778_s10, %s3778_s10 }
  0x36   : > { %p3439_p0 = scmp.ne.s32.totalorder %s3778_s10, %s3438_s29  ;;  %p3447_p9 = scmp.lt.s32.totalorder %s3438_s29, %s3438_s29 }
  0x38   : > { %p3441_p2 = pnand %p3439_p0, %p3790_p8  ;;  %p3448_p4 = por %p3447_p9, %p3446_p7 }
  0x3a   : > { %p3442_p5 = pneg %p3441_p2 }
  0x3c   : > { %p3449_p10 = pnand %p3448_p4, %p3442_p5 }
  0x3e   : > { %3452 = shalt.err (!%p3449_p10)
}
  0x3f   : > { %3272 = dma.hbm_to_vmem [thread:$0]  (!%p3774_p6), %s4354_s3, 9216, %s3778_s10, [#allocation11], %s4359_s23, %s4359_s23, %s4360_s28  }
  0x40   : > { %s3453_s15 = scalar_lea.hbm %s4356_s5, 36864 }
  0x41   : > { %p3454_p11 = scmp.ne.s32.totalorder %s4356_s5, %s3453_s15  ;;  %p3460_p0 = scmp.lt.u32.totalorder %s3453_s15, %s4356_s5 }
  0x43   : > { %p3456_p12 = pnand %p3454_p11, %p3790_p8 }
  0x45   : > { %p3457_p13 = pneg %p3456_p12 }
  0x47   : > { %p3462_p2 = pnand %p3460_p0, %p3457_p13 }
  0x49   : > { %3465 = shalt.err (!%p3462_p2)
}
  0x4a   : > { %s3466_s10 = scalar_lea.vmem %s3780_s13, 36864  ;;  %p3474_p4 = scmp.lt.s32.totalorder %s3780_s13, %s3780_s13 }
  0x4b   : > { %p3467_p5 = scmp.ne.s32.totalorder %s3780_s13, %s3466_s10  ;;  %p3475_p10 = scmp.lt.s32.totalorder %s3466_s10, %s3466_s10 }
  0x4d   : > { %p3469_p7 = pnand %p3467_p5, %p3790_p8  ;;  %p3476_p11 = por %p3475_p10, %p3474_p4 }
  0x4f   : > { %p3470_p9 = pneg %p3469_p7 }
  0x51   : > { %p3477_p12 = pnand %p3476_p11, %p3470_p9 }
  0x53   : > { %3480 = shalt.err (!%p3477_p12)
}
  0x54   : > { %s3680_s21 = smov 256   ;;  %s3681_s29 = smov 16  }
  0x55   : > { %3278 = dma.hbm_to_vmem [thread:$0]  (!%p3774_p6), %s4356_s5, 36864, %s3780_s13, [#allocation14], %s3680_s21, %s3680_s21, %s3681_s29  }
  0x56   : > { %s3682_s12 = smov [#allocation9]   ;;  %s3683_s15 = smov [#allocation12]  }
  0x57   : > { %s235_s14 = sshll.u32 %s3682_s12, 4  ;;  %s259_s16 = sshll.u32 %s3683_s15, 4  ;;  %s236_s14 = int_to_ptr.vmem [resolvable:$true] %s235_s14  ;;  %s260_s16 = int_to_ptr.vmem [resolvable:$true] %s259_s16 }
  0x58   : > { %s3481_s20 = scalar_lea.hbm %s4353_s2, 16 }
  0x59   : > { %p3482_p13 = scmp.ne.s32.totalorder %s4353_s2, %s3481_s20  ;;  %p3488_p5 = scmp.lt.u32.totalorder %s3481_s20, %s4353_s2 }
  0x5b   : > { %p3484_p0 = pnand %p3482_p13, %p3790_p8 }
  0x5d   : > { %p3485_p2 = pneg %p3484_p0 }
  0x5f   : > { %p3490_p7 = pnand %p3488_p5, %p3485_p2 }
  0x61   : > { %3493 = shalt.err (!%p3490_p7)
}
  0x62   : > { %s3494_s13 = scalar_lea.vmem %s236_s14, 16  ;;  %s3501_s21 = scalar_lea.vmem %s236_s14, 32 }
  0x63   : > { %p3495_p9 = scmp.ne.s32.totalorder %s236_s14, %s3494_s13  ;;  %p3502_p11 = scmp.lt.s32.totalorder %s236_s14, %s236_s14 }
  0x64   : > { %p3503_p12 = scmp.lt.s32.totalorder %s3501_s21, %s3494_s13 }
  0x65   : > { %p3497_p4 = pnand %p3495_p9, %p3790_p8 }
  0x66   : > { %p3504_p1 = por %p3503_p12, %p3502_p11 }
  0x67   : > { %p3498_p10 = pneg %p3497_p4 }
  0x69   : > { %p3505_p3 = pnand %p3504_p1, %p3498_p10 }
  0x6b   : > { %3508 = shalt.err (!%p3505_p3)
}
  0x6c   : > { %3269 = dma.hbm_to_vmem [thread:$0]  (!%p3774_p6), %s4353_s2, 16, %s236_s14, [#allocation8]  }
  0x6d   : > { %s3509_s22 = scalar_lea.hbm %s4355_s4, 16 }
  0x6e   : > { %p3510_p13 = scmp.ne.s32.totalorder %s4355_s4, %s3509_s22  ;;  %p3516_p3 = scmp.lt.u32.totalorder %s3509_s22, %s4355_s4 }
  0x70   : > { %p3512_p0 = pnand %p3510_p13, %p3790_p8 }
  0x72   : > { %p3513_p1 = pneg %p3512_p0 }
  0x74   : > { %p3518_p2 = pnand %p3516_p3, %p3513_p1 }
  0x76   : > { %3521 = shalt.err (!%p3518_p2)
}
  0x77   : > { %s3522_s18 = scalar_lea.vmem %s260_s16, 16  ;;  %s3529_s14 = scalar_lea.vmem %s260_s16, 32 }
  0x78   : > { %p3523_p5 = scmp.ne.s32.totalorder %s260_s16, %s3522_s18  ;;  %p3530_p4 = scmp.lt.s32.totalorder %s260_s16, %s260_s16 }
  0x79   : > { %p3531_p10 = scmp.lt.s32.totalorder %s3529_s14, %s3522_s18 }
  0x7a   : > { %p3525_p7 = pnand %p3523_p5, %p3790_p8 }
  0x7b   : > { %p3532_p11 = por %p3531_p10, %p3530_p4 }
  0x7c   : > { %p3526_p9 = pneg %p3525_p7 }
  0x7e   : > { %p3533_p12 = pnand %p3532_p11, %p3526_p9 }
  0x80   : > { %3536 = shalt.err (!%p3533_p12)
}
  0x81   : > { %3275 = dma.hbm_to_vmem [thread:$0]  (!%p3774_p6), %s4355_s4, 16, %s260_s16, [#allocation11]  }
  0x82   : > { %s3684_s13 = smov [#allocation15]   ;;  %s3537_s1 = scalar_lea.hbm %s4357_s6, 32 }
  0x83   : > { %s283_s21 = sshll.u32 %s3684_s13, 4  ;;  %p3538_p13 = scmp.ne.s32.totalorder %s4357_s6, %s3537_s1  ;;  %s284_s21 = int_to_ptr.vmem [resolvable:$true] %s283_s21 }
  0x84   : > { %p3544_p3 = scmp.lt.u32.totalorder %s3537_s1, %s4357_s6 }
  0x85   : > { %p3540_p0 = pnand %p3538_p13, %p3790_p8 }
  0x87   : > { %p3541_p1 = pneg %p3540_p0 }
  0x89   : > { %p3546_p2 = pnand %p3544_p3, %p3541_p1 }
  0x8b   : > { %3549 = shalt.err (!%p3546_p2)
}
  0x8c   : > { %s3550_s16 = scalar_lea.vmem %s284_s21, 32  ;;  %p3558_p4 = scmp.lt.s32.totalorder %s284_s21, %s284_s21 }
  0x8d   : > { %p3551_p5 = scmp.ne.s32.totalorder %s284_s21, %s3550_s16  ;;  %p3559_p10 = scmp.lt.s32.totalorder %s3550_s16, %s3550_s16 }
  0x8f   : > { %p3553_p7 = pnand %p3551_p5, %p3790_p8  ;;  %p3560_p11 = por %p3559_p10, %p3558_p4 }
  0x91   : > { %p3554_p9 = pneg %p3553_p7 }
  0x93   : > { %p3561_p12 = pnand %p3560_p11, %p3554_p9 }
  0x95   : > { %3564 = shalt.err (!%p3561_p12)
}
  0x96   : > { %3281 = dma.hbm_to_vmem [thread:$0]  (!%p3774_p6), %s4357_s6, 32, %s284_s21, [#allocation14]  }
  0x97   : > { %s2548_s19 = sadd.s32 4294967294, %s3673_s27   ;;  %s3919_s11 = sadd.s32 1, %s3673_s27  }
  0x98   : > { %s30_s18 = ssub.s32 %s3673_s27, %s3919_s11  ;;  %s33_s14 = sadd.s32 1, %s3669_s26 }
  0x99   : > { %p31_p8 = scmp.eq.s32.totalorder %s30_s18, 0  ;;  %p40_p13 = scmp.ne.s32.totalorder %s3669_s26, %s3665_s25 }
  0x9a   : > { %p41_p0 = scmp.eq.s32.totalorder %s3673_s27, 0  ;;  %p46_p1 = scmp.ne.s32.totalorder %s3665_s25, %s3661_s24 }
  0x9b   : > { %s3930_s20 = scalar_select %p31_p8, %s3669_s26, %s33_s14  }
  0x9c   : > { %p42_p3 = por %p41_p0, %p40_p13  ;;  %p4369_p2 = scmp.eq.s32.totalorder %s3758_s30, 0 }
  0x9d   : > { %p196_p6 = scmp.eq.s32.totalorder %s3758_s30, 1  ;;  %p202_p7 = scmp.eq.s32.totalorder %s2548_s19, 1 }
  0x9e   : > { %p3934_p5 = por %p4369_p2, %p46_p1  ;;  %p3296_p9 = scmp.lt.s32.totalorder %s3673_s27, 2 }
  0x9f   : > { %s294_s13 = sand.u32 1, %s3669_s26   ;;  %p3941_p4 = por %p196_p6, %p40_p13 }
  0xa0   : > { %p3945_p10 = por %p202_p7, %p46_p1  ;;  %s3232_s29 = smul.u32 432, %s294_s13 }
  0xa1   : > { %s4371_s21 = scalar_select %p3941_p4, 1, 0 }
  0xa2   : > { %s4372_s23 = scalar_select %p3945_p10, 1, 0 }
  0xa3   : > { %s3233_s1 = smul.u32 6912, %s3673_s27  ;;  %p3950_p11 = pnand %p3296_p9, %p42_p3 }
  0xa4   : > { %s298_s16 = scalar_lea.vmem [#allocation4], %s3232_s29  ;;  %s3961_s17 = scalar_lea.sflag [#allocation5], %s294_s13 }
  0xa5   : > { %s3957_s12 = scalar_lea.hbm %s4351_s0, %s3233_s1  ;;  %s305_s15 = sshll.u32 %s298_s16, 4  ;;  %s3959_s15 = int_to_ptr.vmem [resolvable:$true] %s305_s15 }
  0xa6   : > { %s3565_s19 = scalar_lea.hbm %s3957_s12, 6912  ;;  %p3567_p8 = pneg %p3950_p11 }
  0xa7   : > { %p3566_p12 = scmp.ne.s32.totalorder %s3957_s12, %s3565_s19  ;;  %s3570_s1 = scalar_lea.hbm %s4351_s0, 13824 }
  0xa8   : > { %p3571_p1 = scmp.lt.u32.totalorder %s3957_s12, %s4351_s0  ;;  %p3572_p3 = scmp.lt.u32.totalorder %s3570_s1, %s3565_s19 }
  0xa9   : > { %p3568_p13 = pnand %p3567_p8, %p3566_p12  ;;  %p3574_p6 = scmp.lt.u32.totalorder %s3565_s19, %s3957_s12 }
  0xaa   : > { %p3573_p2 = por %p3572_p3, %p3571_p1 }
  0xab   : > { %p3569_p0 = pneg %p3568_p13 }
  0xac   : > { %p3575_p7 = por %p3574_p6, %p3573_p2 }
  0xae   : > { %p3576_p9 = pnand %p3575_p7, %p3569_p0 }
  0xb0   : > { %3579 = shalt.err (!%p3576_p9)
}
  0xb1   : > { %s3580_s13 = scalar_lea.vmem %s3959_s15, 6912  ;;  %s3685_s29 = smov [#allocation4]  }
  0xb2   : > { %p3581_p12 = scmp.ne.s32.totalorder %s3959_s15, %s3580_s13  ;;  %s3585_s16 = sshll.u32 %s3685_s29, 4  ;;  %s3586_s16 = int_to_ptr.vmem [resolvable:$false] %s3585_s16 }
  0xb3   : > { %s3587_s18 = scalar_lea.vmem %s3586_s16, 13824  ;;  %p3588_p4 = scmp.lt.s32.totalorder %s3959_s15, %s3586_s16 }
  0xb4   : > { %p3583_p13 = pnand %p3581_p12, %p3567_p8  ;;  %p3589_p1 = scmp.lt.s32.totalorder %s3587_s18, %s3580_s13 }
  0xb6   : > { %p3584_p10 = pneg %p3583_p13  ;;  %p3590_p3 = por %p3589_p1, %p3588_p4 }
  0xb8   : > { %p3591_p2 = pnand %p3590_p3, %p3584_p10 }
  0xba   : > { %3594 = shalt.err (!%p3591_p2)
}
  0xbb   : > { %s4374_s19 = smov 8   ;;  %s4375_s14 = smov 128  }
  0xbc   : > { %3285 = dma.hbm_to_vmem [thread:$0]  (!%p3950_p11), %s3957_s12, 6912, %s3959_s15, %s3961_s17, %s4375_s14, %s4375_s14, %s4374_s19  }
  0xbd   : > { %p4376_p8 = scmp.ne.s32.totalorder %s4365_s8, 0 }
  0xbe   : > { %s3995_s1 = sand.u32 (!%p4376_p8), 1, %s3665_s25  }
  0xbf   : > { %317 = sbr.rel (%p4376_p8) target bundleno = 1362 (0x552), region = 48  ;;  %s320_s9 = scalar_lea.sflag (!%p4376_p8), [#allocation5], %s3995_s1 }
  0xc0   : > { %s3234_s22 = smul.u32 (!%p4376_p8), 432, %s3995_s1 }
  0xc2   : > { %s3999_s13 = scalar_lea.vmem (!%p4376_p8), [#allocation4], %s3234_s22 }
  0xc6   : > { %3640 = dma.done.wait (%p3934_p5), %s320_s9, 6912  }
  0xc7   : > { %3642 = vsyncadd (%p3934_p5), %s320_s9, 4294960384  ;;  %p4377_p4 = scmp.eq.s32.totalorder %s3758_s30, 0 }
  0xc9   : > { %3644 = dma.done.wait (%p4377_p4), [#allocation8], 1168   ;;  %p4378_p10 = pmov %p4377_p4 }
  0xca   : > { %p4379_p11 = pmov %p4377_p4 }
  0xcb   : > { %3646 = vsyncadd (%p4378_p10), [#allocation8], 4294966128 }
  0xcc   : > { %3648 = dma.done.wait (%p4379_p11), [#allocation11], 9232   ;;  %p4380_p0 = pmov %p4377_p4 }
  0xce   : > { %3650 = vsyncadd (%p4380_p0), [#allocation11], 4294958064  ;;  %p4381_p6 = pmov %p4380_p0 }
  0xcf   : > { %p4382_p7 = pmov %p4380_p0 }
  0xd0   : > { %3652 = dma.done.wait (%p4381_p6), [#allocation14], 36896  }
  0xd1   : > { %3654 = vsyncadd (%p4382_p7), [#allocation14], 4294930400  ;;  %vm840_vm0 = vcmask 523264   ;;  %v3686_v0 = vmov 0.0   ;;  %v2581_v1 = vld [vmem:[%s3999_s13 + $0x2] ss:$2 sm:$0xff] }
  0xd2   : > { %1554 = vst [vmem:[#allocation3 + $0x78] sm:$0xff] %v3686_v0  ;;  %1003 = vst.msk [vmem:[#allocation2] sm:$0xff] %vm840_vm0, %v3686_v0  ;;  %v2573_v2 = vld [vmem:[%s3999_s13 + $0x1] ss:$2 sm:$0xff]  ;;  %s3687_s8 = smov 16   ;;  %s3688_s10 = smov 8  }
  0xd3   : > { %1004 = vst.msk [vmem:[#allocation2 + $0x8] sm:$0xff] %vm840_vm0, %v3686_v0  ;;  %1005 = vst.msk [vmem:[#allocation2 + $0x10] sm:$0xff] %vm840_vm0, %v3686_v0  ;;  %561 = vrot.lane.b32.xlu1 %v2581_v1, %s3687_s8  ;;  %529 = vrot.lane.b32.xlu0 %v2573_v2, %s3688_s10  ;;  %v2582_v3 = vld [vmem:[%s3999_s13 + $0x32] ss:$2 sm:$0xff]  ;;  %v2574_v4 = vld [vmem:[%s3999_s13 + $0x31] ss:$2 sm:$0xff] }
  0xd4   : > { %1011 = vst.msk [vmem:[#allocation2 + $0x18] sm:$0xff] %vm840_vm0, %v3686_v0  ;;  %1012 = vst.msk [vmem:[#allocation2 + $0x30] sm:$0xff] %vm840_vm0, %v3686_v0  ;;  %v2590_v5 = vld [vmem:[%s3999_s13 + $0x48] ss:$2 sm:$0xff]  ;;  %v2589_v6 = vld [vmem:[%s3999_s13 + $0x18] ss:$2 sm:$0xff] }
  0xd5   : > { %1013 = vst.msk [vmem:[#allocation2 + $0x48] sm:$0xff] %vm840_vm0, %v3686_v0  ;;  %1014 = vst.msk [vmem:[#allocation2 + $0x60] sm:$0xff] %vm840_vm0, %v3686_v0  ;;  %s3689_s28 = smov 24   ;;  %v2575_v7 = vld [vmem:[%s3999_s13 + $0x61] ss:$2 sm:$0xff]  ;;  %s3690_s12 = smov 32  }
  0xd6   : > { %1015 = vst.msk [vmem:[#allocation2 + $0x78] sm:$0xff] %vm840_vm0, %v3686_v0  ;;  %1016 = vst.msk [vmem:[#allocation2 + $0x90] sm:$0xff] %vm840_vm0, %v3686_v0  ;;  %v2597_v8 = vld [vmem:[%s3999_s13 + $0x19] ss:$2 sm:$0xff]  ;;  %v2605_v9 = vld [vmem:[%s3999_s13 + $0x1a] ss:$2 sm:$0xff] }
  0xd7   : > { %1017 = vst.msk [vmem:[#allocation2 + $0xa8] sm:$0xff] %vm840_vm0, %v3686_v0  ;;  %1018 = vst.msk [vmem:[#allocation2 + $0xc0] sm:$0xff] %vm840_vm0, %v3686_v0  ;;  %563 = vrot.lane.b32.xlu1 %v2582_v3, %s3687_s8  ;;  %531 = vrot.lane.b32.xlu0 %v2574_v4, %s3688_s10  ;;  %v2598_v10 = vld [vmem:[%s3999_s13 + $0x49] ss:$2 sm:$0xff]  ;;  %s3691_s15 = smov 40   ;;  %s3692_s17 = smov 48  }
  0xd8   : > { %1021 = vst.msk [vmem:[#allocation2 + $0x28] sm:$0xff] %vm840_vm0, %v3686_v0  ;;  %1022 = vst.msk [vmem:[#allocation2 + $0x40] sm:$0xff] %vm840_vm0, %v3686_v0  ;;  %v2583_v11 = vld [vmem:[%s3999_s13 + $0x62] ss:$2 sm:$0xff]  ;;  %v2576_v12 = vld [vmem:[%s3999_s13 + $0x91] ss:$2 sm:$0xff] }
  0xd9   : > { %1023 = vst.msk [vmem:[#allocation2 + $0x58] sm:$0xff] %vm840_vm0, %v3686_v0  ;;  %1024 = vst.msk [vmem:[#allocation2 + $0x70] sm:$0xff] %vm840_vm0, %v3686_v0  ;;  %v849_v13 = vld [vmem:[#allocation7] sm:$0xff]  ;;  %v850_v14 = vld [vmem:[#allocation7 + $0x8] sm:$0xff]  ;;  %s3693_s29 = smov 56   ;;  %s3694_s16 = smov 64  }
  0xda   : > { %1025 = vst.msk [vmem:[#allocation2 + $0x88] sm:$0xff] %vm840_vm0, %v3686_v0  ;;  %1026 = vst.msk [vmem:[#allocation2 + $0xa0] sm:$0xff] %vm840_vm0, %v3686_v0  ;;  %v2613_v15 = vld [vmem:[%s3999_s13 + $0x30] ss:$2 sm:$0xff]  ;;  %v2828_v17 = vpack.c.bf16 %v850_v14, %v849_v13  ;;  %v2621_v28 = vld [vmem:[%s3999_s13 + $0x31] ss:$2 sm:$0xff] }
  0xdb   : > { %1027 = vst.msk [vmem:[#allocation2 + $0xb8] sm:$0xff] %vm840_vm0, %v3686_v0  ;;  %1028 = vst.msk [vmem:[#allocation2 + $0xd0] sm:$0xff] %vm840_vm0, %v3686_v0  ;;  %595 = vrot.lane.b32.xlu1 %v2590_v5, %s3689_s28  ;;  %593 = vrot.lane.b32.xlu0 %v2589_v6, %s3689_s28  ;;  %v2606_v16 = vld [vmem:[%s3999_s13 + $0x4a] ss:$2 sm:$0xff]  ;;  %v2599_v31 = vld [vmem:[%s3999_s13 + $0x79] ss:$2 sm:$0xff] }
  0xdc   : > { %1543 = vst [vmem:[#allocation3 + $0x8] sm:$0xff] %v3686_v0  ;;  %1544 = vst [vmem:[#allocation3 + $0x10] sm:$0xff] %v3686_v0  ;;  %2829 = vmatprep.subr.bf16.mxu0 %v2828_v17  ;;  %v851_v18 = vld [vmem:[#allocation7 + $0x10] sm:$0xff]  ;;  %v852_v19 = vld [vmem:[#allocation7 + $0x18] sm:$0xff]  ;;  %vm777_vm1 = vcmask 64512   ;;  %vm786_vm2 = vcmask 130048  }
  0xdd   : > { %1550 = vst [vmem:[#allocation3 + $0x18] sm:$0xff] %v3686_v0  ;;  %1551 = vst [vmem:[#allocation3 + $0x30] sm:$0xff] %v3686_v0  ;;  %v853_v20 = vld [vmem:[#allocation7 + $0x20] sm:$0xff]  ;;  %v854_v21 = vld [vmem:[#allocation7 + $0x28] sm:$0xff]  ;;  %2831 = vmatpush3.bf16.msra.mxu0 %v2828_v17  ;;  %v2832_v24 = vpack.c.bf16 %v852_v19, %v851_v18  ;;  %vm795_vm3 = vcmask 195584   ;;  %vm804_vm4 = vcmask 261120  }
  0xde   : > { %1552 = vst [vmem:[#allocation3 + $0x48] sm:$0xff] %v3686_v0  ;;  %1553 = vst [vmem:[#allocation3 + $0x60] sm:$0xff] %v3686_v0  ;;  %v2591_v22 = vld [vmem:[%s3999_s13 + $0x78] ss:$2 sm:$0xff]  ;;  %v2836_v25 = vpack.c.bf16 %v854_v21, %v853_v20  ;;  %v2592_v32 = vld [vmem:[%s3999_s13 + $0xa8] ss:$2 sm:$0xff] }
  0xdf   : > { %1557 = vst [vmem:[#allocation3 + $0x24] sm:$0xff] %v3686_v0  ;;  %1558 = vst [vmem:[#allocation3 + $0x2c] sm:$0xf] %v3686_v0  ;;  %533 = vrot.lane.b32.xlu1 %v2575_v7, %s3688_s10  ;;  %625 = vrot.lane.b32.xlu0 %v2597_v8, %s3690_s12  ;;  %v2584_v23 = vld [vmem:[%s3999_s13 + $0x92] ss:$2 sm:$0xff]  ;;  %vm813_vm5 = vcmask 326656  }
  0xe0   : > { %1559 = vst [vmem:[#allocation3 + $0x3c] sm:$0xff] %v3686_v0  ;;  %1560 = vst [vmem:[#allocation3 + $0x44] sm:$0xf] %v3686_v0  ;;  %2833 = vmatprep.subr.bf16.mxu0 %v2832_v24  ;;  %v855_v26 = vld [vmem:[#allocation7 + $0x30] sm:$0xff]  ;;  %v856_v27 = vld [vmem:[#allocation7 + $0x38] sm:$0xff]  ;;  %vm822_vm6 = vcmask 392192  }
  0xe1   : > { %1561 = vst [vmem:[#allocation3 + $0x54] sm:$0xff] %v3686_v0  ;;  %1562 = vst [vmem:[#allocation3 + $0x5c] sm:$0xf] %v3686_v0  ;;  %v2614_v29 = vld [vmem:[%s3999_s13 + $0x60] ss:$2 sm:$0xff]  ;;  %2835 = vmatpush3.bf16.msra.mxu0 %v2832_v24  ;;  %v2840_v30 = vpack.c.bf16 %v856_v27, %v855_v26  ;;  %vm831_vm7 = vcmask 457728  }
  0xe2   : > { %1563 = vst [vmem:[#allocation3 + $0x6c] sm:$0xff] %v3686_v0  ;;  %1564 = vst [vmem:[#allocation3 + $0x74] sm:$0xf] %v3686_v0  ;;  %2837 = vmatprep.subr.bf16.mxu0 %v2836_v25  ;;  %v857_v33 = vld [vmem:[#allocation7 + $0x40] sm:$0xff]  ;;  %vm865_vm8 = vcmask 588800   ;;  %s2565_s18 = sshll.u32 %s3995_s1, 3 }
  0xe3   : > { %1549 = vst [vmem:[#allocation3] sm:$0xff] %v3686_v0  ;;  %1010 = vst.msk [vmem:[#allocation2] sm:$0xff] %vm840_vm0, %v3686_v0  ;;  %657 = vrot.lane.b32.xlu1 %v2605_v9, %s3691_s15  ;;  %627 = vrot.lane.b32.xlu0 %v2598_v10, %s3690_s12  ;;  %v2629_v34 = vld [vmem:[%s3999_s13 + $0x32] ss:$2 sm:$0xff]  ;;  %v2622_v35 = vld [vmem:[%s3999_s13 + $0x61] ss:$2 sm:$0xff] }
  0xe4   : > { %1020 = vst.msk [vmem:[#allocation2 + $0x10] sm:$0xff] %vm840_vm0, %v3686_v0  ;;  %1555 = vst [vmem:[#allocation3 + $0xc] sm:$0xff] %v3686_v0  ;;  %v2600_v36 = vld [vmem:[%s3999_s13 + $0xa9] ss:$2 sm:$0xff]  ;;  %v2630_v38 = vld [vmem:[%s3999_s13 + $0x62] ss:$2 sm:$0xff] }
  0xe5   : > { %1556 = vst [vmem:[#allocation3 + $0x14] sm:$0xf] %v3686_v0  ;;  %2839 = vmatpush3.bf16.msra.mxu0 %v2836_v25  ;;  %v2577_v37 = vld [vmem:[%s3999_s13 + $0xc1] ss:$2 sm:$0xff]  ;;  %v2607_v39 = vld [vmem:[%s3999_s13 + $0x7a] ss:$2 sm:$0xff] }
  0xe6   : > { %2841 = vmatprep.subr.bf16.mxu0 %v2840_v30  ;;  %v2585_v40 = vld [vmem:[%s3999_s13 + $0xc2] ss:$2 sm:$0xff]  ;;  %v2578_v41 = vld [vmem:[%s3999_s13 + $0xf1] ss:$2 sm:$0xff]  ;;  %v2586_v45 = vld [vmem:[%s3999_s13 + $0xf2] ss:$2 sm:$0xff] }
  0xe7   : > { %565 = vrot.lane.b32.xlu1 %v2583_v11, %s3687_s8  ;;  %535 = vrot.lane.b32.xlu0 %v2576_v12, %s3688_s10  ;;  %v2615_v42 = vld [vmem:[%s3999_s13 + $0x90] ss:$2 sm:$0xff]  ;;  %v2623_v46 = vld [vmem:[%s3999_s13 + $0x91] ss:$2 sm:$0xff]  ;;  %s377_s19 = scalar_lea.vmem [#allocation16], %s2565_s18  ;;  %s2658_s22 = sshll.u32 %s3758_s30, 7 }
  0xe8   : > { %v2608_v43 = vld [vmem:[%s3999_s13 + $0xaa] ss:$2 sm:$0xff]  ;;  %v2601_v48 = vld [vmem:[%s3999_s13 + $0xd9] ss:$2 sm:$0xff]  ;;  %v2602_v52 = vld [vmem:[%s3999_s13 + $0x109] ss:$2 sm:$0xff] }
  0xe9   : > { %2843 = vmatpush3.bf16.msra.mxu0 %v2840_v30  ;;  %v2593_v44 = vld [vmem:[%s3999_s13 + $0xd8] ss:$2 sm:$0xff]  ;;  %v2594_v49 = vld [vmem:[%s3999_s13 + $0x108] ss:$2 sm:$0xff]  ;;  %v2624_v51 = vld [vmem:[%s3999_s13 + $0xc1] ss:$2 sm:$0xff] }
  0xea   : > { %2792 = vmatprep.subr.mxu0 %v857_v33  ;;  %v2616_v47 = vld [vmem:[%s3999_s13 + $0xc0] ss:$2 sm:$0xff]  ;;  %v2579_v53 = vld [vmem:[%s3999_s13 + $0x121] ss:$2 sm:$0xff]  ;;  %v2580_v57 = vld [vmem:[%s3999_s13 + $0x151] ss:$2 sm:$0xff] }
  0xeb   : > { %689 = vrot.lane.b32.xlu1 %v2613_v15, %s3692_s17  ;;  %659 = vrot.lane.b32.xlu0 %v2606_v16, %s3691_s15  ;;  %v2631_v50 = vld [vmem:[%s3999_s13 + $0x92] ss:$2 sm:$0xff]  ;;  %v2632_v54 = vld [vmem:[%s3999_s13 + $0xc2] ss:$2 sm:$0xff]  ;;  %s2336_s14 = sshll.u32 %s377_s19, 4  ;;  %p4383_p9 = scmp.ne.s32.totalorder %s4371_s21, 0  ;;  %s4300_s14 = int_to_ptr.vmem [resolvable:$true] %s2336_s14 }
  0xec   : > { %v2609_v55 = vld [vmem:[%s3999_s13 + $0xda] ss:$2 sm:$0xff]  ;;  %v2610_v59 = vld [vmem:[%s3999_s13 + $0x10a] ss:$2 sm:$0xff]  ;;  %v2625_v62 = vld [vmem:[%s3999_s13 + $0xf1] ss:$2 sm:$0xff] }
  0xed   : > { %2793 = vmatpush3.msra.mxu0 %v857_v33  ;;  %v2587_v56 = vld [vmem:[%s3999_s13 + $0x122] ss:$2 sm:$0xff]  ;;  %v2588_v61 = vld [vmem:[%s3999_s13 + $0x152] ss:$2 sm:$0xff]  ;;  %v2603_v0 = vld [vmem:[%s3999_s13 + $0x139] ss:$2 sm:$0xff] }
  0xee   : > { %v2617_v58 = vld [vmem:[%s3999_s13 + $0xf0] ss:$2 sm:$0xff]  ;;  %v2618_v63 = vld [vmem:[%s3999_s13 + $0x120] ss:$2 sm:$0xff]  ;;  %v2626_v3 = vld [vmem:[%s3999_s13 + $0x121] ss:$2 sm:$0xff] }
  0xef   : > { %597 = vrot.lane.b32.xlu1 %v2591_v22, %s3689_s28  ;;  %567 = vrot.lane.b32.xlu0 %v2584_v23, %s3687_s8  ;;  %v2595_v60 = vld [vmem:[%s3999_s13 + $0x138] ss:$2 sm:$0xff]  ;;  %v2596_v1 = vld [vmem:[%s3999_s13 + $0x168] ss:$2 sm:$0xff]  ;;  %s3695_s30 = smov [#allocation16]  }
  0xf0   : > { %v2633_v2 = vld [vmem:[%s3999_s13 + $0xf2] ss:$2 sm:$0xff]  ;;  %v2604_v5 = vld [vmem:[%s3999_s13 + $0x169] ss:$2 sm:$0xff]  ;;  %v2634_v7 = vld [vmem:[%s3999_s13 + $0x122] ss:$2 sm:$0xff] }
  0xf1   : > { %v2611_v4 = vld [vmem:[%s3999_s13 + $0x13a] ss:$2 sm:$0xff]  ;;  %v2612_v6 = vld [vmem:[%s3999_s13 + $0x16a] ss:$2 sm:$0xff]  ;;  %v2628_v12 = vld [vmem:[%s3999_s13 + $0x181] ss:$2 sm:$0xff] }
  0xf2   : > { %v2620_v8 = vld [vmem:[%s3999_s13 + $0x180] ss:$2 sm:$0xff]  ;;  %v2619_v9 = vld [vmem:[%s3999_s13 + $0x150] ss:$2 sm:$0xff]  ;;  %v2627_v13 = vld [vmem:[%s3999_s13 + $0x151] ss:$2 sm:$0xff] }
  0xf3   : > { %721 = vrot.lane.b32.xlu1 %v2621_v28, %s3693_s29  ;;  %691 = vrot.lane.b32.xlu0 %v2614_v29, %s3692_s17  ;;  %v2636_v16 = vld [vmem:[%s3999_s13 + $0x182] ss:$2 sm:$0xff]  ;;  %v2635_v17 = vld [vmem:[%s3999_s13 + $0x152] ss:$2 sm:$0xff] }
  0xf4   : > { %v378_v30 = vld [vmem:[%s3999_s13] ss:$2 sm:$0xff] }
  0xf7   : > { %629 = vrot.lane.b32.xlu1 %v2599_v31, %s3690_s12  ;;  %599 = vrot.lane.b32.xlu0 %v2592_v32, %s3689_s28 }
  0xfb   : > { %753 = vrot.lane.b32.xlu1 %v2629_v34, %s3694_s16  ;;  %723 = vrot.lane.b32.xlu0 %v2622_v35, %s3693_s29 }
  0xff   : > { %631 = vrot.lane.b32.xlu1 %v2600_v36, %s3690_s12  ;;  %537 = vrot.lane.b32.xlu0 %v2577_v37, %s3688_s10 }
 0x103   : > { %755 = vrot.lane.b32.xlu1 %v2630_v38, %s3694_s16  ;;  %661 = vrot.lane.b32.xlu0 %v2607_v39, %s3691_s15  ;;  %v2566_v38 = vld [vmem:[%s3999_s13 + $0x30] ss:$2 sm:$0xff] }
 0x107   : > { %569 = vrot.lane.b32.xlu1 %v2585_v40, %s3687_s8  ;;  %539 = vrot.lane.b32.xlu0 %v2578_v41, %s3688_s10 }
 0x10b   : > { %693 = vrot.lane.b32.xlu1 %v2615_v42, %s3692_s17  ;;  %663 = vrot.lane.b32.xlu0 %v2608_v43, %s3691_s15 }
 0x10f   : > { %601 = vrot.lane.b32.xlu1 %v2593_v44, %s3689_s28  ;;  %571 = vrot.lane.b32.xlu0 %v2586_v45, %s3687_s8 }
 0x113   : > { %725 = vrot.lane.b32.xlu1 %v2623_v46, %s3693_s29  ;;  %695 = vrot.lane.b32.xlu0 %v2616_v47, %s3692_s17 }
 0x117   : > { %633 = vrot.lane.b32.xlu1 %v2601_v48, %s3690_s12  ;;  %603 = vrot.lane.b32.xlu0 %v2594_v49, %s3689_s28 }
 0x11b   : > { %757 = vrot.lane.b32.xlu1 %v2631_v50, %s3694_s16  ;;  %727 = vrot.lane.b32.xlu0 %v2624_v51, %s3693_s29 }
 0x11f   : > { %635 = vrot.lane.b32.xlu1 %v2602_v52, %s3690_s12  ;;  %541 = vrot.lane.b32.xlu0 %v2579_v53, %s3688_s10 }
 0x123   : > { %759 = vrot.lane.b32.xlu1 %v2632_v54, %s3694_s16  ;;  %665 = vrot.lane.b32.xlu0 %v2609_v55, %s3691_s15 }
 0x127   : > { %573 = vrot.lane.b32.xlu1 %v2587_v56, %s3687_s8  ;;  %543 = vrot.lane.b32.xlu0 %v2580_v57, %s3688_s10  ;;  %s2323_s10 = scalar_lea.sflag [#allocation6], %s3995_s1 }
 0x12b   : > { %697 = vrot.lane.b32.xlu1 %v2617_v58, %s3692_s17  ;;  %667 = vrot.lane.b32.xlu0 %v2610_v59, %s3691_s15 }
 0x12f   : > { %605 = vrot.lane.b32.xlu1 %v2595_v60, %s3689_s28  ;;  %575 = vrot.lane.b32.xlu0 %v2588_v61, %s3687_s8  ;;  %s4305_s8 = scalar_lea.hbm %s4358_s7, %s2658_s22 }
 0x133   : > { %729 = vrot.lane.b32.xlu1 %v2625_v62, %s3693_s29  ;;  %699 = vrot.lane.b32.xlu0 %v2618_v63, %s3692_s17 }
 0x137   : > { %637 = vrot.lane.b32.xlu1 %v2603_v0, %s3690_s12  ;;  %607 = vrot.lane.b32.xlu0 %v2596_v1, %s3689_s28  ;;  %v2567_v0 = vld [vmem:[%s3999_s13 + $0x60] ss:$2 sm:$0xff]  ;;  %s3595_s28 = scalar_lea.vmem %s4300_s14, 128 }
 0x138   : > { %p3596_p5 = scmp.ne.s32.totalorder %s4300_s14, %s3595_s28 }
 0x13a   : > { %p3597_p12 = pnand %p3596_p5, %p4383_p9 }
 0x13b   : > { %761 = vrot.lane.b32.xlu1 %v2633_v2, %s3694_s16  ;;  %731 = vrot.lane.b32.xlu0 %v2626_v3, %s3693_s29 }
 0x13c   : > { %p3598_p13 = pneg %p3597_p12 }
 0x13f   : > { %669 = vrot.lane.b32.xlu1 %v2611_v4, %s3691_s15  ;;  %639 = vrot.lane.b32.xlu0 %v2604_v5, %s3690_s12  ;;  %s3599_s12 = sshll.u32 %s3695_s30, 4  ;;  %s3600_s12 = int_to_ptr.vmem [resolvable:$false] %s3599_s12 }
 0x140   : > { %p3602_p1 = scmp.lt.s32.totalorder %s4300_s14, %s3600_s12 }
 0x143   : > { %671 = vrot.lane.b32.xlu1 %v2612_v6, %s3691_s15  ;;  %763 = vrot.lane.b32.xlu0 %v2634_v7, %s3694_s16  ;;  %s3601_s15 = scalar_lea.vmem %s3600_s12, 256 }
 0x144   : > { %p3603_p3 = scmp.lt.s32.totalorder %s3601_s15, %s3595_s28 }
 0x145   : > { %v562_v10 = vpop.permute.xlu1 %561  ;;  %v530_v11 = vpop.permute.xlu0 %529 }
 0x146   : > { %v778_v31 = vsel %vm777_vm1, %v378_v30, %v530_v11  ;;  %p3604_p2 = por %p3603_p3, %p3602_p1 }
 0x147   : > { %703 = vrot.lane.b32.xlu1 %v2620_v8, %s3692_s17  ;;  %701 = vrot.lane.b32.xlu0 %v2619_v9, %s3692_s17  ;;  %v787_v34 = vsel %vm786_vm2, %v778_v31, %v562_v10  ;;  %v2568_v10 = vld [vmem:[%s3999_s13 + $0x90] ss:$2 sm:$0xff] }
 0x148   : > { %p3605_p8 = pnand %p3604_p2, %p3598_p13 }
 0x149   : > { %v564_v14 = vpop.permute.xlu1 %563  ;;  %v532_v15 = vpop.permute.xlu0 %531 }
 0x14a   : > { %v779_v42 = vsel %vm777_vm1, %v2566_v38, %v532_v15 }
 0x14b   : > { %735 = vrot.lane.b32.xlu1 %v2628_v12, %s3693_s29  ;;  %733 = vrot.lane.b32.xlu0 %v2627_v13, %s3693_s29  ;;  %v788_v47 = vsel %vm786_vm2, %v779_v42, %v564_v14 }
 0x14d   : > { %v596_v18 = vpop.permute.xlu1 %595  ;;  %v594_v19 = vpop.permute.xlu0 %593 }
 0x14e   : > { %v796_v35 = vsel %vm795_vm3, %v787_v34, %v594_v19  ;;  %v797_v48 = vsel %vm795_vm3, %v788_v47, %v596_v18  ;;  %v2569_v34 = vld [vmem:[%s3999_s13 + $0xc0] ss:$2 sm:$0xff] }
 0x14f   : > { %767 = vrot.lane.b32.xlu1 %v2636_v16, %s3694_s16  ;;  %765 = vrot.lane.b32.xlu0 %v2635_v17, %s3694_s16 }
 0x151   : > { %v534_v20 = vpop.permute.xlu1 %533  ;;  %v626_v21 = vpop.permute.xlu0 %625 }
 0x152   : > { %v805_v39 = vsel %vm804_vm4, %v796_v35, %v626_v21  ;;  %v780_v3 = vsel %vm777_vm1, %v2567_v0, %v534_v20 }
 0x155   : > { %v658_v22 = vpop.permute.xlu1 %657  ;;  %v628_v23 = vpop.permute.xlu0 %627 }
 0x156   : > { %v814_v40 = vsel %vm813_vm5, %v805_v39, %v658_v22  ;;  %v806_v51 = vsel %vm804_vm4, %v797_v48, %v628_v23 }
 0x159   : > { %v566_v24 = vpop.permute.xlu1 %565  ;;  %v4166_v25 = vpop.permute.xlu0 %535 }
 0x15a   : > { %v789_v4 = vsel %vm786_vm2, %v780_v3, %v566_v24  ;;  %v781_v16 = vsel %vm777_vm1, %v2568_v10, %v4166_v25 }
 0x15d   : > { %v690_v26 = vpop.permute.xlu1 %689  ;;  %v660_v27 = vpop.permute.xlu0 %659 }
 0x15e   : > { %v823_v41 = vsel %vm822_vm6, %v814_v40, %v690_v26  ;;  %v815_v52 = vsel %vm813_vm5, %v806_v51, %v660_v27 }
 0x161   : > { %v598_v28 = vpop.permute.xlu1 %597  ;;  %v4168_v29 = vpop.permute.xlu0 %567 }
 0x162   : > { %v798_v5 = vsel %vm795_vm3, %v789_v4, %v598_v28  ;;  %v790_v17 = vsel %vm786_vm2, %v781_v16, %v4168_v29 }
 0x165   : > { %v722_v32 = vpop.permute.xlu1 %721  ;;  %v692_v33 = vpop.permute.xlu0 %691 }
 0x166   : > { %v832_v43 = vsel %vm831_vm7, %v823_v41, %v722_v32  ;;  %v824_v53 = vsel %vm822_vm6, %v815_v52, %v692_v33 }
 0x169   : > { %v630_v36 = vpop.permute.xlu1 %629  ;;  %v600_v37 = vpop.permute.xlu0 %599 }
 0x16a   : > { %v807_v8 = vsel %vm804_vm4, %v798_v5, %v630_v36  ;;  %v799_v18 = vsel %vm795_vm3, %v790_v17, %v600_v37 }
 0x16d   : > { %v754_v44 = vpop.permute.xlu1 %753  ;;  %v724_v45 = vpop.permute.xlu0 %723 }
 0x16e   : > { %v841_v46 = vsel %vm840_vm0, %v832_v43, %v754_v44  ;;  %v833_v54 = vsel %vm831_vm7, %v824_v53, %v724_v45  ;;  %v2570_v44 = vld [vmem:[%s3999_s13 + $0xf0] ss:$2 sm:$0xff] }
 0x16f   : > { %2794 = vmatprep.mubr.msk.f32.mxu0 %vm865_vm8, %v841_v46 }
 0x171   : > { %v632_v49 = vpop.permute.xlu1 %631  ;;  %v538_v50 = vpop.permute.xlu0 %537 }
 0x172   : > { %v808_v21 = vsel %vm804_vm4, %v799_v18, %v632_v49  ;;  %v782_v37 = vsel %vm777_vm1, %v2569_v34, %v538_v50  ;;  %v1245_v34 = vld [vmem:[#allocation10 + $0x1a8] sm:$0xff] }
 0x175   : > { %v756_v55 = vpop.permute.xlu1 %755  ;;  %v662_v56 = vpop.permute.xlu0 %661 }
 0x176   : > { %v842_v57 = vsel %vm840_vm0, %v833_v54, %v756_v55  ;;  %v816_v9 = vsel %vm813_vm5, %v807_v8, %v662_v56 }
 0x177   : > { %2795 = vmatmul.mubr.msk.f32.vlgmr.msra.gmra.mrb[0].mxu0 %vm865_vm8, %v842_v57 }
 0x179   : > { %v570_v58 = vpop.permute.xlu1 %569  ;;  %v540_v59 = vpop.permute.xlu0 %539 }
 0x17a   : > { %v791_v38 = vsel %vm786_vm2, %v782_v37, %v570_v58  ;;  %v783_v50 = vsel %vm777_vm1, %v2570_v44, %v540_v59  ;;  %v1228_v37 = vld [vmem:[#allocation10 + $0x120] sm:$0xff]  ;;  %v1231_v44 = vld [vmem:[#allocation10 + $0x138] sm:$0xff] }
 0x17d   : > { %v694_v60 = vpop.permute.xlu1 %693  ;;  %v664_v61 = vpop.permute.xlu0 %663 }
 0x17e   : > { %v825_v11 = vsel %vm822_vm6, %v816_v9, %v694_v60  ;;  %v817_v22 = vsel %vm813_vm5, %v808_v21, %v664_v61 }
 0x181   : > { %v602_v62 = vpop.permute.xlu1 %601  ;;  %v572_v63 = vpop.permute.xlu0 %571 }
 0x182   : > { %v800_v39 = vsel %vm795_vm3, %v791_v38, %v602_v62  ;;  %v792_v51 = vsel %vm786_vm2, %v783_v50, %v572_v63  ;;  %v2571_v62 = vld [vmem:[%s3999_s13 + $0x120] ss:$2 sm:$0xff]  ;;  %v2572_v63 = vld [vmem:[%s3999_s13 + $0x150] ss:$2 sm:$0xff] }
 0x183   : > { %v1229_v38 = vld [vmem:[#allocation10 + $0x128] sm:$0xff] }
 0x184   : > { %v1233_v50 = vld [vmem:[#allocation10 + $0x148] sm:$0xff] }
 0x185   : > { %v726_v1 = vpop.permute.xlu1 %725  ;;  %v696_v2 = vpop.permute.xlu0 %695 }
 0x186   : > { %v834_v12 = vsel %vm831_vm7, %v825_v11, %v726_v1  ;;  %v826_v23 = vsel %vm822_vm6, %v817_v22, %v696_v2  ;;  %v1240_v22 = vld [vmem:[#allocation10 + $0x180] sm:$0xff] }
 0x189   : > { %v634_v6 = vpop.permute.xlu1 %633  ;;  %v604_v7 = vpop.permute.xlu0 %603 }
 0x18a   : > { %v809_v42 = vsel %vm804_vm4, %v800_v39, %v634_v6  ;;  %v801_v52 = vsel %vm795_vm3, %v792_v51, %v604_v7  ;;  %v1246_v39 = vld [vmem:[#allocation10 + $0x1b0] sm:$0xff] }
 0x18b   : > { %v1250_v51 = vld [vmem:[#allocation10 + $0x1d0] sm:$0xff] }
 0x18d   : > { %v758_v13 = vpop.permute.xlu1 %757  ;;  %v728_v14 = vpop.permute.xlu0 %727 }
 0x18e   : > { %v843_v15 = vsel %vm840_vm0, %v834_v12, %v758_v13  ;;  %v835_v24 = vsel %vm831_vm7, %v826_v23, %v728_v14  ;;  %v1241_v23 = vld [vmem:[#allocation10 + $0x188] sm:$0xff] }
 0x18f   : > { %2797 = vmatprep.mubr.msk.f32.mxu0 %vm865_vm8, %v843_v15 }
 0x191   : > { %v636_v19 = vpop.permute.xlu1 %635  ;;  %v542_v20 = vpop.permute.xlu0 %541 }
 0x192   : > { %v810_v55 = vsel %vm804_vm4, %v801_v52, %v636_v19  ;;  %v784_v2 = vsel %vm777_vm1, %v2571_v62, %v542_v20  ;;  %v1251_v52 = vld [vmem:[#allocation10 + $0x1d8] sm:$0xff]  ;;  %v1237_v62 = vld [vmem:[#allocation10 + $0x168] sm:$0xff] }
 0x195   : > { %v760_v26 = vpop.permute.xlu1 %759  ;;  %v666_v25 = vpop.permute.xlu0 %665 }
 0x196   : > { %v844_v27 = vsel %vm840_vm0, %v835_v24, %v760_v26  ;;  %v818_v43 = vsel %vm813_vm5, %v809_v42, %v666_v25  ;;  %v1224_v24 = vld [vmem:[#allocation10 + $0x100] sm:$0xff]  ;;  %v2876_v26 = vpack.c.bf16 %v1241_v23, %v1240_v22  ;;  %v1225_v25 = vld [vmem:[#allocation10 + $0x108] sm:$0xff]  ;;  %v1194_v22 = vld [vmem:[#allocation10 + $0x10] sm:$0xff] }
 0x197   : > { %2798 = vmatmul.mubr.msk.f32.gmra.mrb[2].mxu0 %vm865_vm8, %v844_v27  ;;  %v1242_v27 = vld [vmem:[#allocation10 + $0x190] sm:$0xff]  ;;  %v1195_v23 = vld [vmem:[#allocation10 + $0x18] sm:$0xff] }
 0x198   : > { %2877 = vmatprep.subr.bf16.mxu0 %v2876_v26  ;;  %v1213_v26 = vld [vmem:[#allocation10 + $0xa8] sm:$0xff] }
 0x199   : > { %v574_v28 = vpop.permute.xlu1 %573  ;;  %v544_v29 = vpop.permute.xlu0 %543 }
 0x19a   : > { %v785_v3 = vsel %vm777_vm1, %v2572_v63, %v544_v29  ;;  %v793_v4 = vsel %vm786_vm2, %v784_v2, %v574_v28  ;;  %v1243_v28 = vld [vmem:[#allocation10 + $0x198] sm:$0xff]  ;;  %v2878_v29 = vpack.c.bf16 %v1225_v25, %v1224_v24  ;;  %v1254_v2 = vld [vmem:[#allocation10 + $0x1f0] sm:$0xff]  ;;  %v1212_v24 = vld [vmem:[#allocation10 + $0xa0] sm:$0xff]  ;;  %v2850_v25 = vpack.c.bf16 %v1195_v23, %v1194_v22 }
 0x19b   : > { %v1256_v22 = vld [vmem:[#allocation10 + $0x200] sm:$0xff]  ;;  %v1257_v23 = vld [vmem:[#allocation10 + $0x208] sm:$0xff] }
 0x19c   : > { %2879 = vmatpush3.bf16.msra.mxu0 %v2878_v29  ;;  %v1196_v29 = vld [vmem:[#allocation10 + $0x20] sm:$0xff] }
 0x19d   : > { %v698_v30 = vpop.permute.xlu1 %697  ;;  %v668_v31 = vpop.permute.xlu0 %667 }
 0x19e   : > { %v827_v45 = vsel %vm822_vm6, %v818_v43, %v698_v30  ;;  %v819_v56 = vsel %vm813_vm5, %v810_v55, %v668_v31  ;;  %v2880_v30 = vpack.c.bf16 %v1243_v28, %v1242_v27  ;;  %v1226_v31 = vld [vmem:[#allocation10 + $0x110] sm:$0xff]  ;;  %v2852_v28 = vpack.c.bf16 %v1213_v26, %v1212_v24 }
 0x19f   : > { %v1230_v43 = vld [vmem:[#allocation10 + $0x130] sm:$0xff]  ;;  %v2908_v24 = vpack.c.bf16 %v1257_v23, %v1256_v22 }
 0x1a0   : > { %2881 = vmatprep.subr.bf16.mxu0 %v2880_v30  ;;  %v1234_v55 = vld [vmem:[#allocation10 + $0x150] sm:$0xff]  ;;  %v1197_v30 = vld [vmem:[#allocation10 + $0x28] sm:$0xff] }
 0x1a1   : > { %v606_v32 = vpop.permute.xlu1 %605  ;;  %v576_v33 = vpop.permute.xlu0 %575 }
 0x1a2   : > { %v794_v5 = vsel %vm786_vm2, %v785_v3, %v576_v33  ;;  %v802_v6 = vsel %vm795_vm3, %v793_v4, %v606_v32  ;;  %v1227_v32 = vld [vmem:[#allocation10 + $0x118] sm:$0xff]  ;;  %v1244_v33 = vld [vmem:[#allocation10 + $0x1a0] sm:$0xff] }
 0x1a3   : > { %v1255_v3 = vld [vmem:[#allocation10 + $0x1f8] sm:$0xff] }
 0x1a5   : > { %v730_v35 = vpop.permute.xlu1 %729  ;;  %v700_v36 = vpop.permute.xlu0 %699 }
 0x1a6   : > { %v836_v46 = vsel %vm831_vm7, %v827_v45, %v730_v35  ;;  %v828_v57 = vsel %vm822_vm6, %v819_v56, %v700_v36  ;;  %v2882_v35 = vpack.c.bf16 %v1227_v32, %v1226_v31  ;;  %v2884_v36 = vpack.c.bf16 %v1245_v34, %v1244_v33  ;;  %v1248_v45 = vld [vmem:[#allocation10 + $0x1c0] sm:$0xff]  ;;  %v1235_v56 = vld [vmem:[#allocation10 + $0x158] sm:$0xff]  ;;  %v1214_v32 = vld [vmem:[#allocation10 + $0xb0] sm:$0xff] }
 0x1a7   : > { %v1215_v33 = vld [vmem:[#allocation10 + $0xb8] sm:$0xff] }
 0x1a8   : > { %2883 = vmatpush3.bf16.msra.mxu0 %v2882_v35  ;;  %v2854_v35 = vpack.c.bf16 %v1197_v30, %v1196_v29 }
 0x1a9   : > { %v638_v40 = vpop.permute.xlu1 %637  ;;  %v608_v41 = vpop.permute.xlu0 %607  ;;  %2885 = vmatprep.subr.bf16.mxu0 %v2884_v36  ;;  %v2856_v36 = vpack.c.bf16 %v1215_v33, %v1214_v32 }
 0x1aa   : > { %v803_v7 = vsel %vm795_vm3, %v794_v5, %v608_v41  ;;  %v811_v10 = vsel %vm804_vm4, %v802_v6, %v638_v40  ;;  %v1247_v40 = vld [vmem:[#allocation10 + $0x1b8] sm:$0xff]  ;;  %v2886_v41 = vpack.c.bf16 %v1229_v38, %v1228_v37  ;;  %v2904_v6 = vpack.c.bf16 %v1255_v3, %v1254_v2  ;;  %v1198_v37 = vld [vmem:[#allocation10 + $0x30] sm:$0xff] }
 0x1ab   : > { %v2888_v42 = vpack.c.bf16 %v1247_v40, %v1246_v39  ;;  %v1199_v38 = vld [vmem:[#allocation10 + $0x38] sm:$0xff]  ;;  %v1216_v39 = vld [vmem:[#allocation10 + $0xc0] sm:$0xff]  ;;  %v1217_v40 = vld [vmem:[#allocation10 + $0xc8] sm:$0xff] }
 0x1ac   : > { %2887 = vmatpush3.bf16.msra.mxu0 %v2886_v41  ;;  %v2858_v41 = vpack.c.bf16 %v1199_v38, %v1198_v37  ;;  %v1223_v2 = vld [vmem:[#allocation10 + $0xf8] sm:$0xff] }
 0x1ad   : > { %v762_v47 = vpop.permute.xlu1 %761  ;;  %v732_v48 = vpop.permute.xlu0 %731  ;;  %2889 = vmatprep.subr.bf16.mxu0 %v2888_v42  ;;  %v2860_v42 = vpack.c.bf16 %v1217_v40, %v1216_v39 }
 0x1ae   : > { %v845_v49 = vsel %vm840_vm0, %v836_v46, %v762_v47  ;;  %v837_v58 = vsel %vm831_vm7, %v828_v57, %v732_v48  ;;  %v1249_v46 = vld [vmem:[#allocation10 + $0x1c8] sm:$0xff]  ;;  %v2890_v47 = vpack.c.bf16 %v1231_v44, %v1230_v43  ;;  %v1252_v57 = vld [vmem:[#allocation10 + $0x1e0] sm:$0xff] }
 0x1af   : > { %2800 = vmatprep.mubr.msk.f32.mxu0 %vm865_vm8, %v845_v49  ;;  %v2892_v48 = vpack.c.bf16 %v1249_v46, %v1248_v45  ;;  %v1232_v49 = vld [vmem:[#allocation10 + $0x140] sm:$0xff]  ;;  %v1201_v44 = vld [vmem:[#allocation10 + $0x48] sm:$0xff]  ;;  %v1218_v45 = vld [vmem:[#allocation10 + $0xd0] sm:$0xff] }
 0x1b0   : > { %2891 = vmatpush3.bf16.msra.mxu0 %v2890_v47  ;;  %v1200_v43 = vld [vmem:[#allocation10 + $0x40] sm:$0xff]  ;;  %v1219_v46 = vld [vmem:[#allocation10 + $0xd8] sm:$0xff] }
 0x1b1   : > { %v670_v53 = vpop.permute.xlu1 %669  ;;  %v640_v54 = vpop.permute.xlu0 %639  ;;  %2893 = vmatprep.subr.bf16.mxu0 %v2892_v48  ;;  %v2862_v47 = vpack.c.bf16 %v1201_v44, %v1200_v43  ;;  %v2864_v48 = vpack.c.bf16 %v1219_v46, %v1218_v45  ;;  %v1258_v43 = vld [vmem:[#allocation10 + $0x210] sm:$0xff]  ;;  %v1259_v44 = vld [vmem:[#allocation10 + $0x218] sm:$0xff] }
 0x1b2   : > { %v812_v11 = vsel %vm804_vm4, %v803_v7, %v640_v54  ;;  %v820_v12 = vsel %vm813_vm5, %v811_v10, %v670_v53  ;;  %v2894_v53 = vpack.c.bf16 %v1233_v50, %v1232_v49  ;;  %v2896_v54 = vpack.c.bf16 %v1251_v52, %v1250_v51  ;;  %v1238_v7 = vld [vmem:[#allocation10 + $0x170] sm:$0xff]  ;;  %v1203_v50 = vld [vmem:[#allocation10 + $0x58] sm:$0xff] }
 0x1b3   : > { %v1202_v49 = vld [vmem:[#allocation10 + $0x50] sm:$0xff] }
 0x1b4   : > { %2895 = vmatpush3.bf16.msra.mxu0 %v2894_v53  ;;  %v2866_v51 = vpack.c.bf16 %v1203_v50, %v1202_v49  ;;  %v1220_v53 = vld [vmem:[#allocation10 + $0xe0] sm:$0xff] }
 0x1b5   : > { %v672_v60 = vpop.permute.xlu1 %671  ;;  %v764_v61 = vpop.permute.xlu0 %763  ;;  %2897 = vmatprep.subr.bf16.mxu0 %v2896_v54  ;;  %v1221_v54 = vld [vmem:[#allocation10 + $0xe8] sm:$0xff] }
 0x1b6   : > { %v846_v59 = vsel %vm840_vm0, %v837_v58, %v764_v61  ;;  %v821_v13 = vsel %vm813_vm5, %v812_v11, %v672_v60  ;;  %v1253_v58 = vld [vmem:[#allocation10 + $0x1e8] sm:$0xff]  ;;  %v2898_v60 = vpack.c.bf16 %v1235_v56, %v1234_v55 }
 0x1b7   : > { %2801 = vmatmul.mubr.msk.f32.gmra.mrb[4].mxu0 %vm865_vm8, %v846_v59  ;;  %v2900_v61 = vpack.c.bf16 %v1253_v58, %v1252_v57  ;;  %v1236_v59 = vld [vmem:[#allocation10 + $0x160] sm:$0xff]  ;;  %v2868_v57 = vpack.c.bf16 %v1221_v54, %v1220_v53  ;;  %v1261_v53 = vld [vmem:[#allocation10 + $0x228] sm:$0xff] }
 0x1b8   : > { %2899 = vmatpush3.bf16.msra.mxu0 %v2898_v60  ;;  %v2902_v63 = vpack.c.bf16 %v1237_v62, %v1236_v59  ;;  %v1204_v58 = vld [vmem:[#allocation10 + $0x60] sm:$0xff]  ;;  %v1205_v60 = vld [vmem:[#allocation10 + $0x68] sm:$0xff] }
 0x1b9   : > { %v704_v0 = vpop.permute.xlu1 %703  ;;  %v702_v1 = vpop.permute.xlu0 %701  ;;  %2901 = vmatprep.subr.bf16.mxu0 %v2900_v61  ;;  %v2870_v59 = vpack.c.bf16 %v1205_v60, %v1204_v58  ;;  %v1610_v58 = vld [vmem:[#allocation13 + $0x8] sm:$0xff]  ;;  %v1612_v60 = vld [vmem:[#allocation13 + $0x18] sm:$0xff] }
 0x1ba   : > { %v830_v14 = vsel %vm822_vm6, %v821_v13, %v704_v0  ;;  %v829_v15 = vsel %vm822_vm6, %v820_v12, %v702_v1  ;;  %v4252_v0 = vld [vmem:[#allocation9] ss:$0 sm:$0xff]  ;;  %v1208_v13 = vld [vmem:[#allocation10 + $0x80] sm:$0xff] }
 0x1bc   : > { %2903 = vmatpush3.bf16.msra.mxu0 %v2902_v63 }
 0x1bd   : > { %v736_v8 = vpop.permute.xlu1 %735  ;;  %v734_v9 = vpop.permute.xlu0 %733  ;;  %2905 = vmatprep.subr.bf16.mxu0 %v2904_v6 }
 0x1be   : > { %v839_v16 = vsel %vm831_vm7, %v830_v14, %v736_v8  ;;  %v838_v17 = vsel %vm831_vm7, %v829_v15, %v734_v9  ;;  %v1239_v8 = vld [vmem:[#allocation10 + $0x178] sm:$0xff]  ;;  %v1209_v14 = vld [vmem:[#allocation10 + $0x88] sm:$0xff]  ;;  %v1192_v15 = vld [vmem:[#allocation10] sm:$0xff] }
 0x1bf   : > { %v2906_v10 = vpack.c.bf16 %v1239_v8, %v1238_v7 }
 0x1c1   : > { %v768_v18 = vpop.permute.xlu1 %767  ;;  %v766_v19 = vpop.permute.xlu0 %765  ;;  %2907 = vmatpush3.bf16.msra.mxu0 %v2906_v10  ;;  %v1048_v10 = vld [vmem:[#allocation2 + $0x8] ss:$2 sm:$0xff] }
 0x1c2   : > { %v848_v20 = vsel %vm840_vm0, %v839_v16, %v768_v18  ;;  %v847_v21 = vsel %vm840_vm0, %v838_v17, %v766_v19  ;;  %v2844_v16 = vpack.c.bf16 %v1209_v14, %v1208_v13  ;;  %v1193_v17 = vld [vmem:[#allocation10 + $0x8] sm:$0xff]  ;;  %v1210_v18 = vld [vmem:[#allocation10 + $0x90] sm:$0xff]  ;;  %v1211_v19 = vld [vmem:[#allocation10 + $0x98] sm:$0xff]  ;;  %2909 = vmatprep.subr.bf16.mxu0 %v2908_v24 }
 0x1c3   : > { %2803 = vmatprep.mubr.msk.f32.mxu0 %vm865_vm8, %v847_v21  ;;  %v2848_v21 = vpack.c.bf16 %v1211_v19, %v1210_v18 }
 0x1c4   : > { %2804 = vmatmul.mubr.msk.f32.gmra.mrb[6].mxu0 %vm865_vm8, %v848_v20  ;;  %v2846_v20 = vpack.c.bf16 %v1193_v17, %v1192_v15  ;;  %2845 = vmatprep.subr.bf16.mxu1 %v2844_v16 }
 0x1c6   : > { %2847 = vmatpush3.bf16.msra.mxu1 %v2846_v20 }
 0x1c7   : > { %2849 = vmatprep.subr.bf16.mxu1 %v2848_v21 }
 0x1ca   : > { %2851 = vmatpush3.bf16.msra.mxu1 %v2850_v25 }
 0x1cb   : > { %2853 = vmatprep.subr.bf16.mxu1 %v2852_v28 }
 0x1ce   : > { %2855 = vmatpush3.bf16.msra.mxu1 %v2854_v35 }
 0x1cf   : > { %2857 = vmatprep.subr.bf16.mxu1 %v2856_v36 }
 0x1d2   : > { %2859 = vmatpush3.bf16.msra.mxu1 %v2858_v41 }
 0x1d3   : > { %2861 = vmatprep.subr.bf16.mxu1 %v2860_v42 }
 0x1d6   : > { %2863 = vmatpush3.bf16.msra.mxu1 %v2862_v47 }
 0x1d7   : > { %2865 = vmatprep.subr.bf16.mxu1 %v2864_v48 }
 0x1da   : > { %2867 = vmatpush3.bf16.msra.mxu1 %v2866_v51  ;;  %v2912_v51 = vpack.c.bf16 %v1259_v44, %v1258_v43 }
 0x1db   : > { %2869 = vmatprep.subr.bf16.mxu1 %v2868_v57 }
 0x1de   : > { %2871 = vmatpush3.bf16.msra.mxu1 %v2870_v59 }
 0x24a   : > { %v2796_v1 = vpop.f32.mrb[0].mxu0 }
 0x24b   : > { %v962_v4 = vadd.f32 %v2796_v1, %v4252_v0  ;;  %v956_v5 = vpop.f32.mrb[1].mxu0  ;;  %v1222_v1 = vld [vmem:[#allocation10 + $0xf0] sm:$0xff] }
 0x24c   : > { %v957_v9 = vadd.f32 %v4252_v0, %v956_v5  ;;  %v2872_v3 = vpack.c.bf16 %v1223_v2, %v1222_v1  ;;  %v1207_v5 = vld [vmem:[#allocation10 + $0x78] sm:$0xff] }
 0x24d   : > { %v996_v11 = vmax.f32 %v962_v4, 0.0  ;;  %v1206_v4 = vld [vmem:[#allocation10 + $0x70] sm:$0xff] }
 0x24e   : > { %v995_v12 = vmax.f32 %v957_v9, 0.0  ;;  %v2874_v6 = vpack.c.bf16 %v1207_v5, %v1206_v4  ;;  %2873 = vmatprep.subr.bf16.mxu1 %v2872_v3 }
 0x24f   : > { %1032 = vst.msk [vmem:[#allocation2 + $0x38] sm:$0xff] %vm840_vm0, %v996_v11 }
 0x250   : > { %1031 = vst.msk [vmem:[#allocation2 + $0x20] sm:$0xff] %vm840_vm0, %v995_v12  ;;  %2875 = vmatpush3.bf16.msra.mxu1 %v2874_v6  ;;  %v1056_v6 = vld [vmem:[#allocation2 + $0x9] ss:$2 sm:$0xff] }
 0x256   : > { %v1097_v27 = vld [vmem:[#allocation2 + $0x38] ss:$2 sm:$0xff]  ;;  %v1089_v47 = vld [vmem:[#allocation2 + $0x37] ss:$2 sm:$0xff] }
 0x257   : > { %v1080_v31 = vld [vmem:[#allocation2 + $0x21] ss:$2 sm:$0xff]  ;;  %v1050_v14 = vld [vmem:[#allocation2 + $0x38] ss:$2 sm:$0xff] }
 0x258   : > { %v3356_v34 = vpack.i.bf16 %v1080_v31, %v1097_v27  ;;  %v1064_v11 = vld [vmem:[#allocation2 + $0x1f] ss:$2 sm:$0xff]  ;;  %v1072_v48 = vld [vmem:[#allocation2 + $0x20] ss:$2 sm:$0xff] }
 0x259   : > { %v3366_v12 = vpack.i.bf16 %v1048_v10, %v1064_v11 }
 0x25a   : > { %3357 = vrot.lane.b32.xlu0 %v3356_v34, %s3694_s16 }
 0x26a   : > { %v2799_v52 = vpop.f32.mrb[2].mxu0 }
 0x26b   : > { %v972_v55 = vadd.f32 %v2799_v52, %v4252_v0  ;;  %v966_v56 = vpop.f32.mrb[3].mxu0  ;;  %v1260_v52 = vld [vmem:[#allocation10 + $0x220] sm:$0xff] }
 0x26c   : > { %v967_v61 = vadd.f32 %v4252_v0, %v966_v56  ;;  %v2916_v54 = vpack.c.bf16 %v1261_v53, %v1260_v52  ;;  %v1263_v56 = vld [vmem:[#allocation10 + $0x238] sm:$0xff] }
 0x26d   : > { %v998_v62 = vmax.f32 %v972_v55, 0.0  ;;  %v1262_v55 = vld [vmem:[#allocation10 + $0x230] sm:$0xff] }
 0x26e   : > { %v997_v63 = vmax.f32 %v967_v61, 0.0  ;;  %v2920_v57 = vpack.c.bf16 %v1263_v56, %v1262_v55  ;;  %v2924_v61 = vpack.c.bf16 %v1612_v60, %v1610_v58  ;;  %v1615_v52 = vld [vmem:[#allocation13 + $0x30] sm:$0xff]  ;;  %v1618_v55 = vld [vmem:[#allocation13 + $0x48] sm:$0xff]  ;;  %v1620_v56 = vld [vmem:[#allocation13 + $0x58] sm:$0xff] }
 0x26f   : > { %1034 = vst.msk [vmem:[#allocation2 + $0x68] sm:$0xff] %vm840_vm0, %v998_v62 }
 0x270   : > { %1033 = vst.msk [vmem:[#allocation2 + $0x50] sm:$0xff] %vm840_vm0, %v997_v63 }
 0x276   : > { %v1099_v7 = vld [vmem:[#allocation2 + $0x68] ss:$2 sm:$0xff]  ;;  %v1091_v1 = vld [vmem:[#allocation2 + $0x67] ss:$2 sm:$0xff] }
 0x277   : > { %v1082_v8 = vld [vmem:[#allocation2 + $0x51] ss:$2 sm:$0xff]  ;;  %v1074_v2 = vld [vmem:[#allocation2 + $0x50] ss:$2 sm:$0xff] }
 0x278   : > { %v3361_v9 = vpack.i.bf16 %v1082_v8, %v1099_v7  ;;  %v1066_v13 = vld [vmem:[#allocation2 + $0x4f] ss:$2 sm:$0xff] }
 0x279   : > { %v3381_v15 = vpack.i.bf16 %v1050_v14, %v1066_v13  ;;  %v1040_v7 = vld [vmem:[#allocation2 + $0x7] ss:$2 sm:$0xff] }
 0x27a   : > { %3362 = vrot.lane.b32.xlu1 %v3361_v9, %s3694_s16  ;;  %v1044_v43 = vld [vmem:[#allocation2 + $0x67] ss:$2 sm:$0xff] }
 0x27e   : > { %3367 = vrot.lane.b32.xlu1 %v3366_v12, %s3694_s16 }
 0x282   : > { %3382 = vrot.lane.b32.xlu1 %v3381_v15, %s3694_s16  ;;  %v1058_v15 = vld [vmem:[#allocation2 + $0x39] ss:$2 sm:$0xff] }
 0x28a   : > { %v2802_v16 = vpop.f32.mrb[4].mxu0 }
 0x28b   : > { %v982_v17 = vadd.f32 %v2802_v16, %v4252_v0  ;;  %v976_v18 = vpop.f32.mrb[5].mxu0  ;;  %v1042_v16 = vld [vmem:[#allocation2 + $0x37] ss:$2 sm:$0xff] }
 0x28c   : > { %v977_v19 = vadd.f32 %v4252_v0, %v976_v18 }
 0x28d   : > { %v1000_v20 = vmax.f32 %v982_v17, 0.0 }
 0x28e   : > { %v999_v21 = vmax.f32 %v977_v19, 0.0 }
 0x28f   : > { %1036 = vst.msk [vmem:[#allocation2 + $0x98] sm:$0xff] %vm840_vm0, %v1000_v20 }
 0x290   : > { %1035 = vst.msk [vmem:[#allocation2 + $0x80] sm:$0xff] %vm840_vm0, %v999_v21 }
 0x296   : > { %v1101_v26 = vld [vmem:[#allocation2 + $0x98] ss:$2 sm:$0xff]  ;;  %v1093_v22 = vld [vmem:[#allocation2 + $0x97] ss:$2 sm:$0xff] }
 0x297   : > { %v2805_v25 = vpop.f32.mrb[6].mxu0  ;;  %v1084_v27 = vld [vmem:[#allocation2 + $0x81] ss:$2 sm:$0xff]  ;;  %v1054_v36 = vld [vmem:[#allocation2 + $0x98] ss:$2 sm:$0xff] }
 0x298   : > { %v992_v28 = vadd.f32 %v2805_v25, %v4252_v0  ;;  %v986_v29 = vpop.f32.mrb[7].mxu0  ;;  %v3371_v30 = vpack.i.bf16 %v1084_v27, %v1101_v26  ;;  %v1068_v40 = vld [vmem:[#allocation2 + $0x7f] ss:$2 sm:$0xff]  ;;  %v1076_v23 = vld [vmem:[#allocation2 + $0x80] ss:$2 sm:$0xff] }
 0x299   : > { %v987_v31 = vadd.f32 %v4252_v0, %v986_v29  ;;  %v1052_v0 = vld [vmem:[#allocation2 + $0x68] ss:$2 sm:$0xff] }
 0x29a   : > { %v1002_v32 = vmax.f32 %v992_v28, 0.0  ;;  %3372 = vrot.lane.b32.xlu0 %v3371_v30, %s3694_s16  ;;  %v3386_v41 = vpack.i.bf16 %v1052_v0, %v1068_v40  ;;  %v1105_v40 = vld [vmem:[#allocation2 + $0x39] ss:$2 sm:$0xff] }
 0x29b   : > { %v1001_v33 = vmax.f32 %v987_v31, 0.0  ;;  %v1614_v0 = vld [vmem:[#allocation13 + $0x28] sm:$0xff] }
 0x29c   : > { %1038 = vst.msk [vmem:[#allocation2 + $0xc8] sm:$0xff] %vm840_vm0, %v1002_v32 }
 0x29d   : > { %1037 = vst.msk [vmem:[#allocation2 + $0xb0] sm:$0xff] %vm840_vm0, %v1001_v33 }
 0x2a3   : > { %v1103_v34 = vld [vmem:[#allocation2 + $0xc8] ss:$2 sm:$0xff]  ;;  %v1095_v30 = vld [vmem:[#allocation2 + $0xc7] ss:$2 sm:$0xff] }
 0x2a4   : > { %v1086_v35 = vld [vmem:[#allocation2 + $0xb1] ss:$2 sm:$0xff]  ;;  %v1078_v31 = vld [vmem:[#allocation2 + $0xb0] ss:$2 sm:$0xff] }
 0x2a5   : > { %v1070_v37 = vld [vmem:[#allocation2 + $0xaf] ss:$2 sm:$0xff]  ;;  %v3376_v38 = vpack.i.bf16 %v1086_v35, %v1103_v34 }
 0x2a6   : > { %v3391_v39 = vpack.i.bf16 %v1054_v36, %v1070_v37  ;;  %v1609_v35 = vld [vmem:[#allocation13] sm:$0xff]  ;;  %v1611_v36 = vld [vmem:[#allocation13 + $0x10] sm:$0xff] }
 0x2a7   : > { %3377 = vrot.lane.b32.xlu0 %v3376_v38, %s3694_s16 }
 0x2a8   : > { %3392 = vrot.lane.b32.xlu1 %v3391_v39, %s3694_s16 }
 0x2ab   : > { %3387 = vrot.lane.b32.xlu0 %v3386_v41, %s3694_s16  ;;  %v1616_v41 = vld [vmem:[#allocation13 + $0x38] sm:$0xff] }
 0x2cc   : > { %v3358_v42 = vpop.permute.xlu0 %3357 }
 0x2cd   : > { %v3360_v45 = vunpack.i.h.bf16 %v3358_v42  ;;  %v3359_v46 = vunpack.i.l.bf16 %v3358_v42  ;;  %v1060_v42 = vld [vmem:[#allocation2 + $0x69] ss:$2 sm:$0xff] }
 0x2cf   : > { %v1188_v49 = vsel %vm840_vm0, %v1089_v47, %v3359_v46  ;;  %v1184_v50 = vsel %vm840_vm0, %v1072_v48, %v3360_v45  ;;  %v1107_v46 = vld [vmem:[#allocation2 + $0x69] ss:$2 sm:$0xff]  ;;  %v2926_v47 = vpack.c.bf16 %v1611_v36, %v1609_v35 }
 0x2d0   : > { %1432 = vmatprep.mubr.f32.mxu0 %v1188_v49  ;;  %v1062_v49 = vld [vmem:[#allocation2 + $0x99] ss:$2 sm:$0xff] }
 0x2d1   : > { %1433 = vmatmul.mubr.f32.vlgmr.msra.gmra.mrb[8].mxu0 %v1184_v50  ;;  %v2928_v50 = vpack.c.bf16 %v1616_v41, %v1614_v0  ;;  %v1644_v35 = vld [vmem:[#allocation13 + $0x118] sm:$0xff] }
 0x2d2   : > { %2911 = vmatpush3.bf16.msra.mxu0 %v2908_v24  ;;  %v1648_v0 = vld [vmem:[#allocation13 + $0x138] sm:$0xff] }
 0x2d3   : > { %2913 = vmatprep.subr.bf16.mxu0 %v2912_v51 }
 0x2d6   : > { %2915 = vmatpush3.bf16.msra.mxu0 %v2912_v51  ;;  %v1613_v51 = vld [vmem:[#allocation13 + $0x20] sm:$0xff] }
 0x2d7   : > { %2917 = vmatprep.subr.bf16.mxu0 %v2916_v54  ;;  %v2930_v58 = vpack.c.bf16 %v1615_v52, %v1613_v51  ;;  %v1651_v51 = vld [vmem:[#allocation13 + $0x150] sm:$0xff] }
 0x2d8   : > { %v1739_v52 = vld [vmem:[#allocation13 + $0x410] sm:$0xff] }
 0x2da   : > { %2919 = vmatpush3.bf16.msra.mxu0 %v2916_v54  ;;  %v1109_v54 = vld [vmem:[#allocation2 + $0x99] ss:$2 sm:$0xff] }
 0x2db   : > { %2921 = vmatprep.subr.bf16.mxu0 %v2920_v57 }
 0x2de   : > { %2923 = vmatpush3.bf16.msra.mxu0 %v2920_v57  ;;  %v1046_v57 = vld [vmem:[#allocation2 + $0x97] ss:$2 sm:$0xff] }
 0x2df   : > { %2925 = vmatprep.subr.bf16.mxu0 %v2924_v61  ;;  %v1111_v61 = vld [vmem:[#allocation2 + $0xc9] ss:$2 sm:$0xff] }
 0x2ec   : > { %v3363_v59 = vpop.permute.xlu1 %3362 }
 0x2ed   : > { %v3365_v62 = vunpack.i.h.bf16 %v3363_v59  ;;  %v3364_v63 = vunpack.i.l.bf16 %v3363_v59  ;;  %v2932_v59 = vpack.c.bf16 %v1620_v56, %v1618_v55  ;;  %v1577_v56 = vld [vmem:[#allocation3 + $0x8] ss:$2 sm:$0xff] }
 0x2ef   : > { %v1189_v3 = vsel %vm840_vm0, %v1091_v1, %v3364_v63  ;;  %v1185_v4 = vsel %vm840_vm0, %v1074_v2, %v3365_v62  ;;  %v1617_v62 = vld [vmem:[#allocation13 + $0x40] sm:$0xff]  ;;  %v1619_v63 = vld [vmem:[#allocation13 + $0x50] sm:$0xff]  ;;  %v1622_v1 = vld [vmem:[#allocation13 + $0x68] sm:$0xff] }
 0x2f0   : > { %1437 = vmatprep.mubr.f32.mxu0 %v1189_v3  ;;  %v3368_v5 = vpop.permute.xlu1 %3367  ;;  %v1624_v2 = vld [vmem:[#allocation13 + $0x78] sm:$0xff]  ;;  %v2934_v3 = vpack.c.bf16 %v1619_v63, %v1617_v62  ;;  %v1655_v63 = vld [vmem:[#allocation13 + $0x170] sm:$0xff] }
 0x2f1   : > { %v3370_v8 = vunpack.i.h.bf16 %v3368_v5  ;;  %v3369_v9 = vunpack.i.l.bf16 %v3368_v5  ;;  %1438 = vmatmul.mubr.f32.gmra.mrb[10].mxu0 %v1185_v4  ;;  %v2936_v4 = vpack.c.bf16 %v1624_v2, %v1622_v1  ;;  %v1621_v5 = vld [vmem:[#allocation13 + $0x60] sm:$0xff]  ;;  %v1743_v2 = vld [vmem:[#allocation13 + $0x430] sm:$0xff] }
 0x2f2   : > { %v1741_v1 = vld [vmem:[#allocation13 + $0x420] sm:$0xff] }
 0x2f3   : > { %v1180_v10 = vsel %vm840_vm0, %v1056_v6, %v3369_v9  ;;  %v1176_v11 = vsel %vm840_vm0, %v1040_v7, %v3370_v8  ;;  %v1623_v6 = vld [vmem:[#allocation13 + $0x70] sm:$0xff]  ;;  %v1626_v7 = vld [vmem:[#allocation13 + $0x88] sm:$0xff]  ;;  %v1628_v8 = vld [vmem:[#allocation13 + $0x98] sm:$0xff] }
 0x2f4   : > { %v3383_v12 = vpop.permute.xlu1 %3382  ;;  %1347 = vmatprep.mubr.f32.mxu1 %v1180_v10  ;;  %v2938_v9 = vpack.c.bf16 %v1623_v6, %v1621_v5  ;;  %v2940_v10 = vpack.c.bf16 %v1628_v8, %v1626_v7  ;;  %v3058_v5 = vpack.c.bf16 %v1743_v2, %v1741_v1  ;;  %v1657_v7 = vld [vmem:[#allocation13 + $0x180] sm:$0xff]  ;;  %v1746_v8 = vld [vmem:[#allocation13 + $0x448] sm:$0xff] }
 0x2f5   : > { %v3385_v13 = vunpack.i.h.bf16 %v3383_v12  ;;  %v3384_v14 = vunpack.i.l.bf16 %v3383_v12  ;;  %1348 = vmatmul.mubr.f32.vlgmr.msra.gmra.mrb[0].mxu1 %v1176_v11  ;;  %v1625_v11 = vld [vmem:[#allocation13 + $0x80] sm:$0xff]  ;;  %v1627_v12 = vld [vmem:[#allocation13 + $0x90] sm:$0xff]  ;;  %v1678_v1 = vld [vmem:[#allocation13 + $0x228] sm:$0xff] }
 0x2f7   : > { %v1181_v17 = vsel %vm840_vm0, %v1058_v15, %v3384_v14  ;;  %v1177_v18 = vsel %vm840_vm0, %v1042_v16, %v3385_v13  ;;  %v1630_v13 = vld [vmem:[#allocation13 + $0xa8] sm:$0xff]  ;;  %v1632_v14 = vld [vmem:[#allocation13 + $0xb8] sm:$0xff]  ;;  %v2942_v15 = vpack.c.bf16 %v1627_v12, %v1625_v11 }
 0x2f8   : > { %1352 = vmatprep.mubr.f32.mxu1 %v1181_v17  ;;  %v1738_v16 = vld [vmem:[#allocation13 + $0x408] sm:$0xff]  ;;  %v1740_v17 = vld [vmem:[#allocation13 + $0x418] sm:$0xff] }
 0x2f9   : > { %1353 = vmatmul.mubr.f32.gmra.mrb[2].mxu1 %v1177_v18  ;;  %v2944_v18 = vpack.c.bf16 %v1632_v14, %v1630_v13  ;;  %v1662_v11 = vld [vmem:[#allocation13 + $0x1a8] sm:$0xff]  ;;  %v1748_v12 = vld [vmem:[#allocation13 + $0x458] sm:$0xff] }
 0x2fa   : > { %v1664_v13 = vld [vmem:[#allocation13 + $0x1b8] sm:$0xff]  ;;  %v3060_v14 = vpack.c.bf16 %v1748_v12, %v1746_v8  ;;  %v1677_v12 = vld [vmem:[#allocation13 + $0x220] sm:$0xff] }
 0x2fb   : > { %v1772_v8 = vld [vmem:[#allocation13 + $0x518] sm:$0xff] }
 0x30c   : > { %v3373_v19 = vpop.permute.xlu0 %3372 }
 0x30d   : > { %v3375_v20 = vunpack.i.h.bf16 %v3373_v19  ;;  %v3374_v21 = vunpack.i.l.bf16 %v3373_v19  ;;  %v1629_v19 = vld [vmem:[#allocation13 + $0xa0] sm:$0xff] }
 0x30f   : > { %v1190_v24 = vsel %vm840_vm0, %v1093_v22, %v3374_v21  ;;  %v1186_v26 = vsel %vm840_vm0, %v1076_v23, %v3375_v20  ;;  %v1631_v20 = vld [vmem:[#allocation13 + $0xb0] sm:$0xff]  ;;  %v3052_v21 = vpack.c.bf16 %v1740_v17, %v1738_v16  ;;  %v1634_v22 = vld [vmem:[#allocation13 + $0xc8] sm:$0xff]  ;;  %v1636_v23 = vld [vmem:[#allocation13 + $0xd8] sm:$0xff] }
 0x310   : > { %1442 = vmatprep.mubr.f32.mxu0 %v1190_v24  ;;  %v2946_v24 = vpack.c.bf16 %v1631_v20, %v1629_v19  ;;  %v1747_v16 = vld [vmem:[#allocation13 + $0x450] sm:$0xff]  ;;  %v1661_v19 = vld [vmem:[#allocation13 + $0x1a0] sm:$0xff]  ;;  %v1750_v20 = vld [vmem:[#allocation13 + $0x468] sm:$0xff] }
 0x311   : > { %1443 = vmatmul.mubr.f32.gmra.mrb[12].mxu0 %v1186_v26  ;;  %3053 = vmatprep.subr.bf16.mxu1 %v3052_v21  ;;  %v2948_v26 = vpack.c.bf16 %v1636_v23, %v1634_v22  ;;  %v2976_v21 = vpack.c.bf16 %v1664_v13, %v1662_v11  ;;  %v1663_v22 = vld [vmem:[#allocation13 + $0x1b0] sm:$0xff]  ;;  %v1666_v23 = vld [vmem:[#allocation13 + $0x1c8] sm:$0xff] }
 0x312   : > { %v1679_v13 = vld [vmem:[#allocation13 + $0x230] sm:$0xff] }
 0x319   : > { %v3378_v25 = vpop.permute.xlu0 %3377 }
 0x31a   : > { %v3380_v27 = vunpack.i.h.bf16 %v3378_v25  ;;  %v3379_v28 = vunpack.i.l.bf16 %v3378_v25  ;;  %v3393_v29 = vpop.permute.xlu1 %3392  ;;  %v1633_v25 = vld [vmem:[#allocation13 + $0xc0] sm:$0xff] }
 0x31b   : > { %v3394_v37 = vunpack.i.l.bf16 %v3393_v29  ;;  %v3395_v48 = vunpack.i.h.bf16 %v3393_v29  ;;  %v1640_v29 = vld [vmem:[#allocation13 + $0xf8] sm:$0xff] }
 0x31c   : > { %v1191_v32 = vsel %vm840_vm0, %v1095_v30, %v3379_v28  ;;  %v1187_v33 = vsel %vm840_vm0, %v1078_v31, %v3380_v27  ;;  %v1635_v27 = vld [vmem:[#allocation13 + $0xd0] sm:$0xff]  ;;  %v1638_v28 = vld [vmem:[#allocation13 + $0xe8] sm:$0xff] }
 0x31d   : > { %v3388_v34 = vpop.permute.xlu0 %3387  ;;  %1447 = vmatprep.mubr.f32.mxu0 %v1191_v32  ;;  %v1183_v53 = vsel %vm840_vm0, %v1062_v49, %v3394_v37  ;;  %v1179_v60 = vsel %vm840_vm0, %v1046_v57, %v3395_v48  ;;  %v2950_v30 = vpack.c.bf16 %v1635_v27, %v1633_v25  ;;  %v2952_v31 = vpack.c.bf16 %v1640_v29, %v1638_v28  ;;  %v1637_v32 = vld [vmem:[#allocation13 + $0xe0] sm:$0xff]  ;;  %v1742_v57 = vld [vmem:[#allocation13 + $0x428] sm:$0xff]  ;;  %v1751_v28 = vld [vmem:[#allocation13 + $0x470] sm:$0xff] }
 0x31e   : > { %v3390_v38 = vunpack.i.h.bf16 %v3388_v34  ;;  %v3389_v39 = vunpack.i.l.bf16 %v3388_v34  ;;  %1448 = vmatmul.mubr.f32.gmra.mrb[14].mxu0 %v1187_v33  ;;  %v1639_v33 = vld [vmem:[#allocation13 + $0xf0] sm:$0xff]  ;;  %v1642_v34 = vld [vmem:[#allocation13 + $0x108] sm:$0xff]  ;;  %v1737_v48 = vld [vmem:[#allocation13 + $0x400] sm:$0xff] }
 0x31f   : > { %2822 = vmatprep.mubr.msk.f32.mxu0 %vm840_vm0, %v1105_v40  ;;  %v2954_v36 = vpack.c.bf16 %v1639_v33, %v1637_v32  ;;  %v2956_v37 = vpack.c.bf16 %v1644_v35, %v1642_v34  ;;  %v1646_v40 = vld [vmem:[#allocation13 + $0x128] sm:$0xff]  ;;  %v3054_v55 = vpack.c.bf16 %v1739_v52, %v1737_v48  ;;  %v1749_v27 = vld [vmem:[#allocation13 + $0x460] sm:$0xff]  ;;  %v2978_v32 = vpack.c.bf16 %v1663_v22, %v1661_v19  ;;  %v1683_v22 = vld [vmem:[#allocation13 + $0x250] sm:$0xff] }
 0x320   : > { %v1182_v44 = vsel %vm840_vm0, %v1060_v42, %v3389_v39  ;;  %v1178_v45 = vsel %vm840_vm0, %v1044_v43, %v3390_v38  ;;  %v1641_v38 = vld [vmem:[#allocation13 + $0x100] sm:$0xff]  ;;  %v1643_v39 = vld [vmem:[#allocation13 + $0x110] sm:$0xff]  ;;  %v2960_v42 = vpack.c.bf16 %v1648_v0, %v1646_v40  ;;  %v3066_v29 = vpack.c.bf16 %v1751_v28, %v1749_v27  ;;  %v1672_v40 = vld [vmem:[#allocation13 + $0x1f8] sm:$0xff] }
 0x321   : > { %1357 = vmatprep.mubr.f32.mxu1 %v1182_v44  ;;  %v2958_v41 = vpack.c.bf16 %v1643_v39, %v1641_v38  ;;  %v1645_v43 = vld [vmem:[#allocation13 + $0x120] sm:$0xff]  ;;  %v1647_v44 = vld [vmem:[#allocation13 + $0x130] sm:$0xff]  ;;  %3055 = vmatpush1.bf16.msra.mxu1 %v3054_v55  ;;  %v1670_v38 = vld [vmem:[#allocation13 + $0x1e8] sm:$0xff] }
 0x322   : > { %1358 = vmatmul.mubr.f32.gmra.mrb[4].mxu1 %v1178_v45  ;;  %2823 = vmatmul.mubr.msk.f32.vlgmr.msra.gmra.mrb[16].mxu0 %vm840_vm0, %v1107_v46  ;;  %v1650_v45 = vld [vmem:[#allocation13 + $0x148] sm:$0xff]  ;;  %v1652_v46 = vld [vmem:[#allocation13 + $0x158] sm:$0xff]  ;;  %v1665_v33 = vld [vmem:[#allocation13 + $0x1c0] sm:$0xff] }
 0x323   : > { %1362 = vmatprep.mubr.f32.mxu1 %v1183_v53  ;;  %2825 = vmatprep.mubr.msk.f32.mxu0 %vm840_vm0, %v1109_v54  ;;  %v2964_v49 = vpack.c.bf16 %v1652_v46, %v1650_v45  ;;  %v1654_v53 = vld [vmem:[#allocation13 + $0x168] sm:$0xff]  ;;  %v1656_v54 = vld [vmem:[#allocation13 + $0x178] sm:$0xff]  ;;  %v1753_v35 = vld [vmem:[#allocation13 + $0x480] sm:$0xff] }
 0x324   : > { %2927 = vmatpush1.bf16.msra.mxu0 %v2926_v47  ;;  %v2962_v47 = vpack.c.bf16 %v1647_v44, %v1645_v43  ;;  %v2968_v62 = vpack.c.bf16 %v1656_v54, %v1654_v53  ;;  %v1755_v39 = vld [vmem:[#allocation13 + $0x490] sm:$0xff]  ;;  %v1757_v44 = vld [vmem:[#allocation13 + $0x4a0] sm:$0xff]  ;;  %v1762_v48 = vld [vmem:[#allocation13 + $0x4c8] sm:$0xff] }
 0x325   : > { %2929 = vmatprep.subr.bf16.mxu0 %v2928_v50  ;;  %v1649_v50 = vld [vmem:[#allocation13 + $0x140] sm:$0xff]  ;;  %v3070_v0 = vpack.c.bf16 %v1755_v39, %v1753_v35  ;;  %v1759_v45 = vld [vmem:[#allocation13 + $0x4b0] sm:$0xff]  ;;  %v1764_v53 = vld [vmem:[#allocation13 + $0x4d8] sm:$0xff] }
 0x326   : > { %1363 = vmatmul.mubr.f32.gmra.mrb[6].mxu1 %v1179_v60  ;;  %2826 = vmatmul.mubr.msk.f32.gmra.mrb[18].mxu0 %vm840_vm0, %v1111_v61  ;;  %v2966_v60 = vpack.c.bf16 %v1651_v51, %v1649_v50  ;;  %v1653_v61 = vld [vmem:[#allocation13 + $0x160] sm:$0xff]  ;;  %v1671_v50 = vld [vmem:[#allocation13 + $0x1f0] sm:$0xff]  ;;  %v1674_v51 = vld [vmem:[#allocation13 + $0x208] sm:$0xff]  ;;  %v3074_v52 = vpack.c.bf16 %v1759_v45, %v1757_v44  ;;  %v3076_v55 = vpack.c.bf16 %v1764_v53, %v1762_v48 }
 0x327   : > { %1973 = vmatprep.mubr.f32.mxu0 %v1577_v56  ;;  %v2970_v6 = vpack.c.bf16 %v1655_v63, %v1653_v61  ;;  %v1676_v54 = vld [vmem:[#allocation13 + $0x218] sm:$0xff]  ;;  %v1761_v56 = vld [vmem:[#allocation13 + $0x4c0] sm:$0xff]  ;;  %v1675_v63 = vld [vmem:[#allocation13 + $0x210] sm:$0xff] }
 0x328   : > { %2931 = vmatpush1.bf16.msra.mxu0 %v2930_v58  ;;  %v1744_v58 = vld [vmem:[#allocation13 + $0x438] sm:$0xff]  ;;  %v1769_v19 = vld [vmem:[#allocation13 + $0x500] sm:$0xff]  ;;  %v1774_v27 = vld [vmem:[#allocation13 + $0x528] sm:$0xff] }
 0x329   : > { %2933 = vmatprep.subr.bf16.mxu0 %v2932_v59  ;;  %v3056_v59 = vpack.c.bf16 %v1744_v58, %v1742_v57  ;;  %v1763_v57 = vld [vmem:[#allocation13 + $0x4d0] sm:$0xff]  ;;  %v1766_v58 = vld [vmem:[#allocation13 + $0x4e8] sm:$0xff]  ;;  %v1776_v28 = vld [vmem:[#allocation13 + $0x538] sm:$0xff] }
 0x32a   : > { %v3078_v2 = vpack.c.bf16 %v1763_v57, %v1761_v56  ;;  %v1687_v35 = vld [vmem:[#allocation13 + $0x270] sm:$0xff]  ;;  %v1690_v39 = vld [vmem:[#allocation13 + $0x288] sm:$0xff]  ;;  %v1784_v45 = vld [vmem:[#allocation13 + $0x578] sm:$0xff] }
 0x32b   : > { %3057 = vmatprep.subr.bf16.mxu1 %v3056_v59  ;;  %v2988_v59 = vpack.c.bf16 %v1676_v54, %v1674_v51  ;;  %v1782_v44 = vld [vmem:[#allocation13 + $0x568] sm:$0xff]  ;;  %v1691_v48 = vld [vmem:[#allocation13 + $0x290] sm:$0xff]  ;;  %v1696_v51 = vld [vmem:[#allocation13 + $0x2b8] sm:$0xff] }
 0x32c   : > { %2935 = vmatpush1.bf16.msra.mxu0 %v2934_v3  ;;  %v1658_v3 = vld [vmem:[#allocation13 + $0x188] sm:$0xff]  ;;  %3059 = vmatpush1.bf16.msra.mxu1 %v3058_v5  ;;  %v1765_v5 = vld [vmem:[#allocation13 + $0x4e0] sm:$0xff]  ;;  %v1783_v54 = vld [vmem:[#allocation13 + $0x570] sm:$0xff] }
 0x32d   : > { %2937 = vmatprep.subr.bf16.mxu0 %v2936_v4  ;;  %v1660_v4 = vld [vmem:[#allocation13 + $0x198] sm:$0xff]  ;;  %3061 = vmatprep.subr.bf16.mxu1 %v3060_v14  ;;  %v1781_v53 = vld [vmem:[#allocation13 + $0x560] sm:$0xff] }
 0x32e   : > { %v1693_v57 = vld [vmem:[#allocation13 + $0x2a0] sm:$0xff] }
 0x330   : > { %2939 = vmatpush1.bf16.msra.mxu0 %v2938_v9  ;;  %v2972_v9 = vpack.c.bf16 %v1660_v4, %v1658_v3  ;;  %v1680_v3 = vld [vmem:[#allocation13 + $0x238] sm:$0xff] }
 0x331   : > { %2941 = vmatprep.subr.bf16.mxu0 %v2940_v10  ;;  %v1659_v10 = vld [vmem:[#allocation13 + $0x190] sm:$0xff]  ;;  %v2992_v11 = vpack.c.bf16 %v1680_v3, %v1678_v1  ;;  %v1697_v1 = vld [vmem:[#allocation13 + $0x2c0] sm:$0xff] }
 0x334   : > { %2943 = vmatpush1.bf16.msra.mxu0 %v2942_v15  ;;  %v1745_v15 = vld [vmem:[#allocation13 + $0x440] sm:$0xff] }
 0x335   : > { %2945 = vmatprep.subr.bf16.mxu0 %v2944_v18  ;;  %v3062_v17 = vpack.c.bf16 %v1747_v16, %v1745_v15  ;;  %v2974_v18 = vpack.c.bf16 %v1659_v10, %v1657_v7  ;;  %v1770_v7 = vld [vmem:[#allocation13 + $0x508] sm:$0xff]  ;;  %v1684_v16 = vld [vmem:[#allocation13 + $0x258] sm:$0xff] }
 0x336   : > { %v1682_v15 = vld [vmem:[#allocation13 + $0x248] sm:$0xff] }
 0x337   : > { %3063 = vmatpush1.bf16.msra.mxu1 %v3062_v17  ;;  %v3084_v17 = vpack.c.bf16 %v1772_v8, %v1770_v7  ;;  %v1787_v7 = vld [vmem:[#allocation13 + $0x590] sm:$0xff]  ;;  %v1702_v8 = vld [vmem:[#allocation13 + $0x2e8] sm:$0xff] }
 0x338   : > { %2947 = vmatpush1.bf16.msra.mxu0 %v2946_v24  ;;  %v1752_v24 = vld [vmem:[#allocation13 + $0x478] sm:$0xff] }
 0x339   : > { %2949 = vmatprep.subr.bf16.mxu0 %v2948_v26  ;;  %v1668_v26 = vld [vmem:[#allocation13 + $0x1d8] sm:$0xff]  ;;  %v3064_v25 = vpack.c.bf16 %v1752_v24, %v1750_v20  ;;  %v2996_v20 = vpack.c.bf16 %v1684_v16, %v1682_v15  ;;  %v1686_v24 = vld [vmem:[#allocation13 + $0x268] sm:$0xff] }
 0x33a   : > { %v1790_v15 = vld [vmem:[#allocation13 + $0x5a8] sm:$0xff] }
 0x33b   : > { %3065 = vmatprep.subr.bf16.mxu1 %v3064_v25  ;;  %v1706_v16 = vld [vmem:[#allocation13 + $0x308] sm:$0xff] }
 0x33c   : > { %2951 = vmatpush1.bf16.msra.mxu0 %v2950_v30  ;;  %v1754_v30 = vld [vmem:[#allocation13 + $0x488] sm:$0xff]  ;;  %3067 = vmatpush1.bf16.msra.mxu1 %v3066_v29 }
 0x33d   : > { %2953 = vmatprep.subr.bf16.mxu0 %v2952_v31  ;;  %v1756_v31 = vld [vmem:[#allocation13 + $0x498] sm:$0xff] }
 0x33e   : > { %v3068_v34 = vpack.c.bf16 %v1756_v31, %v1754_v30  ;;  %v1685_v30 = vld [vmem:[#allocation13 + $0x260] sm:$0xff]  ;;  %v3088_v31 = vpack.c.bf16 %v1776_v28, %v1774_v27  ;;  %v1794_v27 = vld [vmem:[#allocation13 + $0x5c8] sm:$0xff] }
 0x33f   : > { %v1710_v28 = vld [vmem:[#allocation13 + $0x328] sm:$0xff] }
 0x340   : > { %2955 = vmatpush1.bf16.msra.mxu0 %v2954_v36  ;;  %v2980_v36 = vpack.c.bf16 %v1668_v26, %v1666_v23  ;;  %3069 = vmatprep.subr.bf16.mxu1 %v3068_v34  ;;  %v1771_v23 = vld [vmem:[#allocation13 + $0x510] sm:$0xff]  ;;  %v1688_v26 = vld [vmem:[#allocation13 + $0x278] sm:$0xff] }
 0x341   : > { %2957 = vmatprep.subr.bf16.mxu0 %v2956_v37  ;;  %v1667_v37 = vld [vmem:[#allocation13 + $0x1d0] sm:$0xff]  ;;  %3071 = vmatpush1.bf16.msra.mxu1 %v3070_v0  ;;  %v3086_v25 = vpack.c.bf16 %v1771_v23, %v1769_v19  ;;  %v3000_v34 = vpack.c.bf16 %v1688_v26, %v1686_v24  ;;  %v1705_v26 = vld [vmem:[#allocation13 + $0x300] sm:$0xff] }
 0x342   : > { %v2982_v46 = vpack.c.bf16 %v1667_v37, %v1665_v33  ;;  %v1775_v33 = vld [vmem:[#allocation13 + $0x530] sm:$0xff]  ;;  %v1778_v37 = vld [vmem:[#allocation13 + $0x548] sm:$0xff] }
 0x344   : > { %2959 = vmatpush1.bf16.msra.mxu0 %v2958_v41  ;;  %v1758_v41 = vld [vmem:[#allocation13 + $0x4a8] sm:$0xff] }
 0x345   : > { %2961 = vmatprep.subr.bf16.mxu0 %v2960_v42  ;;  %v1760_v42 = vld [vmem:[#allocation13 + $0x4b8] sm:$0xff] }
 0x346   : > { %v3072_v43 = vpack.c.bf16 %v1760_v42, %v1758_v41  ;;  %v1777_v41 = vld [vmem:[#allocation13 + $0x540] sm:$0xff]  ;;  %v1779_v42 = vld [vmem:[#allocation13 + $0x550] sm:$0xff] }
 0x348   : > { %2963 = vmatpush1.bf16.msra.mxu0 %v2962_v47  ;;  %v1669_v47 = vld [vmem:[#allocation13 + $0x1e0] sm:$0xff]  ;;  %3073 = vmatprep.subr.bf16.mxu1 %v3072_v43  ;;  %v3002_v43 = vpack.c.bf16 %v1687_v35, %v1685_v30  ;;  %v1796_v30 = vld [vmem:[#allocation13 + $0x5d8] sm:$0xff] }
 0x349   : > { %2965 = vmatprep.subr.bf16.mxu0 %v2964_v49  ;;  %v2984_v49 = vpack.c.bf16 %v1672_v40, %v1670_v38  ;;  %v2986_v61 = vpack.c.bf16 %v1671_v50, %v1669_v47  ;;  %3075 = vmatpush1.bf16.msra.mxu1 %v3074_v52  ;;  %v1780_v38 = vld [vmem:[#allocation13 + $0x558] sm:$0xff]  ;;  %v1689_v47 = vld [vmem:[#allocation13 + $0x280] sm:$0xff]  ;;  %v3094_v50 = vpack.c.bf16 %v1779_v42, %v1777_v41 }
 0x34a   : > { %3077 = vmatprep.subr.bf16.mxu1 %v3076_v55  ;;  %v1692_v40 = vld [vmem:[#allocation13 + $0x298] sm:$0xff]  ;;  %v3092_v0 = vpack.c.bf16 %v1780_v38, %v1778_v37  ;;  %v3096_v52 = vpack.c.bf16 %v1784_v45, %v1782_v44  ;;  %v3006_v55 = vpack.c.bf16 %v1691_v48, %v1689_v47  ;;  %v1709_v37 = vld [vmem:[#allocation13 + $0x320] sm:$0xff]  ;;  %v1711_v38 = vld [vmem:[#allocation13 + $0x330] sm:$0xff] }
 0x34b   : > { %v1800_v41 = vld [vmem:[#allocation13 + $0x5f8] sm:$0xff]  ;;  %v1799_v44 = vld [vmem:[#allocation13 + $0x5f0] sm:$0xff]  ;;  %v3026_v45 = vpack.c.bf16 %v1711_v38, %v1709_v37  ;;  %v1713_v48 = vld [vmem:[#allocation13 + $0x340] sm:$0xff] }
 0x34c   : > { %2967 = vmatpush1.bf16.msra.mxu0 %v2966_v60  ;;  %v1768_v60 = vld [vmem:[#allocation13 + $0x4f8] sm:$0xff] }
 0x34d   : > { %2969 = vmatprep.subr.bf16.mxu0 %v2968_v62  ;;  %v1673_v62 = vld [vmem:[#allocation13 + $0x200] sm:$0xff]  ;;  %v3080_v4 = vpack.c.bf16 %v1768_v60, %v1766_v58  ;;  %3079 = vmatpush1.bf16.msra.mxu1 %v3078_v2  ;;  %v1695_v58 = vld [vmem:[#allocation13 + $0x2b0] sm:$0xff]  ;;  %v3098_v60 = vpack.c.bf16 %v1783_v54, %v1781_v53  ;;  %v1788_v2 = vld [vmem:[#allocation13 + $0x598] sm:$0xff] }
 0x34e   : > { %v2990_v10 = vpack.c.bf16 %v1675_v63, %v1673_v62  ;;  %v1786_v62 = vld [vmem:[#allocation13 + $0x588] sm:$0xff]  ;;  %v3010_v63 = vpack.c.bf16 %v1695_v58, %v1693_v57  ;;  %v1804_v53 = vld [vmem:[#allocation13 + $0x618] sm:$0xff]  ;;  %v1717_v57 = vld [vmem:[#allocation13 + $0x360] sm:$0xff] }
 0x34f   : > { %3081 = vmatprep.subr.bf16.mxu1 %v3080_v4  ;;  %v1699_v4 = vld [vmem:[#allocation13 + $0x2d0] sm:$0xff] }
 0x350   : > { %2971 = vmatpush1.bf16.msra.mxu0 %v2970_v6  ;;  %v1767_v6 = vld [vmem:[#allocation13 + $0x4f0] sm:$0xff] }
 0x351   : > { %2973 = vmatprep.subr.bf16.mxu0 %v2972_v9  ;;  %v1573_v9 = vld [vmem:[#allocation3 + $0x7] ss:$2 sm:$0xff]  ;;  %v3082_v14 = vpack.c.bf16 %v1767_v6, %v1765_v5  ;;  %v3100_v5 = vpack.c.bf16 %v1788_v2, %v1786_v62  ;;  %v1785_v6 = vld [vmem:[#allocation13 + $0x580] sm:$0xff] }
 0x352   : > { %v1719_v58 = vld [vmem:[#allocation13 + $0x370] sm:$0xff]  ;;  %v1726_v2 = vld [vmem:[#allocation13 + $0x3a8] sm:$0xff] }
 0x353   : > { %3083 = vmatpush1.bf16.msra.mxu1 %v3082_v14  ;;  %v1703_v14 = vld [vmem:[#allocation13 + $0x2f0] sm:$0xff] }
 0x354   : > { %2975 = vmatpush1.bf16.msra.mxu0 %v2974_v18  ;;  %v2994_v18 = vpack.c.bf16 %v1679_v13, %v1677_v12  ;;  %3085 = vmatprep.subr.bf16.mxu1 %v3084_v17  ;;  %v1701_v13 = vld [vmem:[#allocation13 + $0x2e0] sm:$0xff]  ;;  %v1708_v17 = vld [vmem:[#allocation13 + $0x318] sm:$0xff] }
 0x355   : > { %2977 = vmatprep.subr.bf16.mxu0 %v2976_v21  ;;  %v1681_v21 = vld [vmem:[#allocation13 + $0x240] sm:$0xff]  ;;  %v3020_v24 = vpack.c.bf16 %v1708_v17, %v1706_v16 }
 0x356   : > { %v2998_v29 = vpack.c.bf16 %v1683_v22, %v1681_v21  ;;  %v1791_v21 = vld [vmem:[#allocation13 + $0x5b0] sm:$0xff]  ;;  %v3018_v22 = vpack.c.bf16 %v1703_v14, %v1701_v13  ;;  %v1734_v14 = vld [vmem:[#allocation13 + $0x3e8] sm:$0xff] }
 0x357   : > { %3087 = vmatpush1.bf16.msra.mxu1 %v3086_v25  ;;  %v1707_v25 = vld [vmem:[#allocation13 + $0x310] sm:$0xff] }
 0x358   : > { %2979 = vmatpush1.bf16.msra.mxu0 %v2978_v32  ;;  %v1773_v32 = vld [vmem:[#allocation13 + $0x520] sm:$0xff]  ;;  %3089 = vmatprep.subr.bf16.mxu1 %v3088_v31  ;;  %v3108_v31 = vpack.c.bf16 %v1796_v30, %v1794_v27  ;;  %v1731_v13 = vld [vmem:[#allocation13 + $0x3d0] sm:$0xff] }
 0x359   : > { %2981 = vmatprep.subr.bf16.mxu0 %v2980_v36  ;;  %v3090_v36 = vpack.c.bf16 %v1775_v33, %v1773_v32  ;;  %v1793_v32 = vld [vmem:[#allocation13 + $0x5c0] sm:$0xff]  ;;  %v1795_v33 = vld [vmem:[#allocation13 + $0x5d0] sm:$0xff] }
 0x35a   : > { %v3110_v35 = vpack.c.bf16 %v1795_v33, %v1793_v32 }
 0x35b   : > { %3091 = vmatpush1.bf16.msra.mxu1 %v3090_v36 }
 0x35c   : > { %2983 = vmatpush1.bf16.msra.mxu0 %v2982_v46  ;;  %v3004_v46 = vpack.c.bf16 %v1692_v40, %v1690_v39  ;;  %3093 = vmatprep.subr.bf16.mxu1 %v3092_v0  ;;  %v1798_v39 = vld [vmem:[#allocation13 + $0x5e8] sm:$0xff]  ;;  %v1716_v0 = vld [vmem:[#allocation13 + $0x358] sm:$0xff] }
 0x35d   : > { %2985 = vmatprep.subr.bf16.mxu0 %v2984_v49  ;;  %v1694_v49 = vld [vmem:[#allocation13 + $0x2a8] sm:$0xff]  ;;  %v3112_v42 = vpack.c.bf16 %v1800_v41, %v1798_v39 }
 0x35e   : > { %v3008_v56 = vpack.c.bf16 %v1696_v51, %v1694_v49  ;;  %v1714_v40 = vld [vmem:[#allocation13 + $0x348] sm:$0xff]  ;;  %v1715_v49 = vld [vmem:[#allocation13 + $0x350] sm:$0xff] }
 0x35f   : > { %3095 = vmatpush1.bf16.msra.mxu1 %v3094_v50  ;;  %v3028_v47 = vpack.c.bf16 %v1716_v0, %v1714_v40  ;;  %v1802_v50 = vld [vmem:[#allocation13 + $0x608] sm:$0xff] }
 0x360   : > { %2987 = vmatpush1.bf16.msra.mxu0 %v2986_v61  ;;  %v1698_v61 = vld [vmem:[#allocation13 + $0x2c8] sm:$0xff]  ;;  %3097 = vmatprep.subr.bf16.mxu1 %v3096_v52  ;;  %v1720_v52 = vld [vmem:[#allocation13 + $0x378] sm:$0xff]  ;;  %v3116_v54 = vpack.c.bf16 %v1804_v53, %v1802_v50 }
 0x361   : > { %2989 = vmatprep.subr.bf16.mxu0 %v2988_v59  ;;  %v1700_v59 = vld [vmem:[#allocation13 + $0x2d8] sm:$0xff]  ;;  %v1718_v51 = vld [vmem:[#allocation13 + $0x368] sm:$0xff] }
 0x362   : > { %v3012_v3 = vpack.c.bf16 %v1700_v59, %v1698_v61  ;;  %v1724_v61 = vld [vmem:[#allocation13 + $0x398] sm:$0xff]  ;;  %v3034_v59 = vpack.c.bf16 %v1719_v58, %v1717_v57 }
 0x363   : > { %1974 = vmatmul.mubr.f32.vlgmr.msra.gmra.mrb[20].mxu0 %v1573_v9  ;;  %3099 = vmatpush1.bf16.msra.mxu1 %v3098_v60  ;;  %v1704_v9 = vld [vmem:[#allocation13 + $0x2f8] sm:$0xff]  ;;  %v1722_v60 = vld [vmem:[#allocation13 + $0x388] sm:$0xff] }
 0x364   : > { %2991 = vmatpush1.bf16.msra.mxu0 %v2990_v10  ;;  %v3102_v10 = vpack.c.bf16 %v1787_v7, %v1785_v6  ;;  %3101 = vmatprep.subr.bf16.mxu1 %v3100_v5  ;;  %v3016_v12 = vpack.c.bf16 %v1704_v9, %v1702_v8  ;;  %v3036_v62 = vpack.c.bf16 %v1724_v61, %v1722_v60  ;;  %v1725_v6 = vld [vmem:[#allocation13 + $0x3a0] sm:$0xff]  ;;  %v1727_v7 = vld [vmem:[#allocation13 + $0x3b0] sm:$0xff]  ;;  %v1730_v8 = vld [vmem:[#allocation13 + $0x3c8] sm:$0xff] }
 0x365   : > { %2993 = vmatprep.subr.bf16.mxu0 %v2992_v11  ;;  %v3014_v11 = vpack.c.bf16 %v1699_v4, %v1697_v1  ;;  %v1723_v1 = vld [vmem:[#allocation13 + $0x390] sm:$0xff]  ;;  %v1732_v9 = vld [vmem:[#allocation13 + $0x3d8] sm:$0xff] }
 0x367   : > { %3103 = vmatpush1.bf16.msra.mxu1 %v3102_v10  ;;  %v3042_v10 = vpack.c.bf16 %v1727_v7, %v1725_v6 }
 0x368   : > { %2995 = vmatpush1.bf16.msra.mxu0 %v2994_v18  ;;  %v1792_v18 = vld [vmem:[#allocation13 + $0x5b8] sm:$0xff] }
 0x369   : > { %2997 = vmatprep.subr.bf16.mxu0 %v2996_v20  ;;  %v3104_v19 = vpack.c.bf16 %v1792_v18, %v1790_v15  ;;  %v1789_v20 = vld [vmem:[#allocation13 + $0x5a0] sm:$0xff]  ;;  %v1736_v15 = vld [vmem:[#allocation13 + $0x3f8] sm:$0xff] }
 0x36a   : > { %v3106_v23 = vpack.c.bf16 %v1791_v21, %v1789_v20  ;;  %v3048_v17 = vpack.c.bf16 %v1736_v15, %v1734_v14  ;;  %v1733_v18 = vld [vmem:[#allocation13 + $0x3e0] sm:$0xff]  ;;  %v1810_v15 = vld [vmem:[#allocation13 + $0x648] sm:$0xff] }
 0x36b   : > { %3105 = vmatprep.subr.bf16.mxu1 %v3104_v19  ;;  %v1735_v19 = vld [vmem:[#allocation13 + $0x3f0] sm:$0xff] }
 0x36c   : > { %2999 = vmatpush1.bf16.msra.mxu0 %v2998_v29  ;;  %v1712_v29 = vld [vmem:[#allocation13 + $0x338] sm:$0xff]  ;;  %3107 = vmatpush1.bf16.msra.mxu1 %v3106_v23  ;;  %v3050_v20 = vpack.c.bf16 %v1735_v19, %v1733_v18 }
 0x36d   : > { %3001 = vmatprep.subr.bf16.mxu0 %v3000_v34  ;;  %v3022_v34 = vpack.c.bf16 %v1707_v25, %v1705_v26  ;;  %v3024_v36 = vpack.c.bf16 %v1712_v29, %v1710_v28  ;;  %3109 = vmatprep.subr.bf16.mxu1 %v3108_v31  ;;  %v2646_v28 = vld [vmem:[#allocation12] ss:$0 sm:$0xff] }
 0x370   : > { %3003 = vmatpush1.bf16.msra.mxu0 %v3002_v43  ;;  %3111 = vmatpush1.bf16.msra.mxu1 %v3110_v35  ;;  %v1797_v43 = vld [vmem:[#allocation13 + $0x5e0] sm:$0xff] }
 0x371   : > { %3005 = vmatprep.subr.bf16.mxu0 %v3004_v46  ;;  %v3114_v46 = vpack.c.bf16 %v1799_v44, %v1797_v43  ;;  %3113 = vmatprep.subr.bf16.mxu1 %v3112_v42 }
 0x374   : > { %3007 = vmatpush1.bf16.msra.mxu0 %v3006_v55  ;;  %3115 = vmatpush1.bf16.msra.mxu1 %v3114_v46  ;;  %v3030_v55 = vpack.c.bf16 %v1715_v49, %v1713_v48 }
 0x375   : > { %3009 = vmatprep.subr.bf16.mxu0 %v3008_v56  ;;  %v3032_v56 = vpack.c.bf16 %v1720_v52, %v1718_v51  ;;  %3117 = vmatprep.subr.bf16.mxu1 %v3116_v54 }
 0x378   : > { %3011 = vmatpush1.bf16.msra.mxu0 %v3010_v63  ;;  %v1721_v63 = vld [vmem:[#allocation13 + $0x380] sm:$0xff] }
 0x379   : > { %3013 = vmatprep.subr.bf16.mxu0 %v3012_v3  ;;  %v1728_v3 = vld [vmem:[#allocation13 + $0x3b8] sm:$0xff]  ;;  %v3038_v4 = vpack.c.bf16 %v1723_v1, %v1721_v63 }
 0x37a   : > { %v3040_v5 = vpack.c.bf16 %v1728_v3, %v1726_v2  ;;  %v1806_v2 = vld [vmem:[#allocation13 + $0x628] sm:$0xff]  ;;  %v1808_v3 = vld [vmem:[#allocation13 + $0x638] sm:$0xff] }
 0x37c   : > { %3015 = vmatpush1.bf16.msra.mxu0 %v3014_v11  ;;  %v3044_v11 = vpack.c.bf16 %v1732_v9, %v1730_v8  ;;  %v1807_v9 = vld [vmem:[#allocation13 + $0x630] sm:$0xff] }
 0x37d   : > { %3017 = vmatprep.subr.bf16.mxu0 %v3016_v12  ;;  %v1729_v12 = vld [vmem:[#allocation13 + $0x3c0] sm:$0xff] }
 0x37e   : > { %v3046_v16 = vpack.c.bf16 %v1731_v13, %v1729_v12  ;;  %v3120_v13 = vpack.c.bf16 %v1808_v3, %v1806_v2  ;;  %v1837_v3 = vld [vmem:[#allocation13 + $0x720] sm:$0xff] }
 0x380   : > { %3019 = vmatpush1.bf16.msra.mxu0 %v3018_v22 }
 0x381   : > { %3021 = vmatprep.subr.bf16.mxu0 %v3020_v24 }
 0x384   : > { %3023 = vmatpush1.bf16.msra.mxu0 %v3022_v34 }
 0x385   : > { %3025 = vmatprep.subr.bf16.mxu0 %v3024_v36 }
 0x388   : > { %3027 = vmatpush1.bf16.msra.mxu0 %v3026_v45 }
 0x389   : > { %3029 = vmatprep.subr.bf16.mxu0 %v3028_v47 }
 0x38c   : > { %3031 = vmatpush1.bf16.msra.mxu0 %v3030_v55 }
 0x38d   : > { %3033 = vmatprep.subr.bf16.mxu0 %v3032_v56 }
 0x390   : > { %3035 = vmatpush1.bf16.msra.mxu0 %v3034_v59  ;;  %v1801_v59 = vld [vmem:[#allocation13 + $0x600] sm:$0xff] }
 0x391   : > { %3037 = vmatprep.subr.bf16.mxu0 %v3036_v62  ;;  %v1803_v62 = vld [vmem:[#allocation13 + $0x610] sm:$0xff] }
 0x392   : > { %v3118_v8 = vpack.c.bf16 %v1803_v62, %v1801_v59  ;;  %v1835_v59 = vld [vmem:[#allocation13 + $0x710] sm:$0xff]  ;;  %v1838_v62 = vld [vmem:[#allocation13 + $0x728] sm:$0xff] }
 0x394   : > { %3039 = vmatpush1.bf16.msra.mxu0 %v3038_v4  ;;  %v1805_v4 = vld [vmem:[#allocation13 + $0x620] sm:$0xff] }
 0x395   : > { %3041 = vmatprep.subr.bf16.mxu0 %v3040_v5  ;;  %v3122_v18 = vpack.c.bf16 %v1807_v9, %v1805_v4  ;;  %v1839_v4 = vld [vmem:[#allocation13 + $0x730] sm:$0xff]  ;;  %v1841_v9 = vld [vmem:[#allocation13 + $0x740] sm:$0xff] }
 0x398   : > { %3043 = vmatpush1.bf16.msra.mxu0 %v3042_v10 }
 0x399   : > { %3045 = vmatprep.subr.bf16.mxu0 %v3044_v11 }
 0x39c   : > { %3047 = vmatpush1.bf16.msra.mxu0 %v3046_v16  ;;  %v1812_v16 = vld [vmem:[#allocation13 + $0x658] sm:$0xff] }
 0x39d   : > { %3049 = vmatprep.subr.bf16.mxu0 %v3048_v17  ;;  %v1581_v17 = vld [vmem:[#allocation3 + $0x9] ss:$2 sm:$0xff]  ;;  %v3124_v19 = vpack.c.bf16 %v1812_v16, %v1810_v15  ;;  %v1845_v15 = vld [vmem:[#allocation13 + $0x760] sm:$0xff] }
 0x39e   : > { %v1847_v16 = vld [vmem:[#allocation13 + $0x770] sm:$0xff] }
 0x3a0   : > { %3051 = vmatpush1.bf16.msra.mxu0 %v3050_v20  ;;  %v1809_v20 = vld [vmem:[#allocation13 + $0x640] sm:$0xff] }
 0x3a4   : > { %v2752_v21 = vpop.f32.mrb[8].mxu0 }
 0x3a5   : > { %v2753_v22 = vpop.f32.mrb[9].mxu0 }
 0x3a6   : > { %v2754_v23 = vadd.f32 %v2753_v22, %v2752_v21  ;;  %v1811_v21 = vld [vmem:[#allocation13 + $0x650] sm:$0xff]  ;;  %v1814_v22 = vld [vmem:[#allocation13 + $0x668] sm:$0xff] }
 0x3c4   : > { %v2755_v24 = vpop.f32.mrb[10].mxu0 }
 0x3c5   : > { %v2756_v26 = vpop.f32.mrb[11].mxu0 }
 0x3c6   : > { %v2757_v25 = vadd.f32 %v2756_v26, %v2755_v24 }
 0x3c8   : > { %v2708_v27 = vpop.f32.mrb[0].mxu1 }
 0x3c9   : > { %v2709_v29 = vpop.f32.mrb[1].mxu1 }
 0x3ca   : > { %v2710_v30 = vadd.f32 %v2709_v29, %v2708_v27  ;;  %v3126_v27 = vpack.c.bf16 %v1811_v21, %v1809_v20  ;;  %v1849_v21 = vld [vmem:[#allocation13 + $0x780] sm:$0xff] }
 0x3cc   : > { %v1350_v31 = vadd.f32 %v2710_v30, %v2646_v28  ;;  %v2711_v32 = vpop.f32.mrb[2].mxu1  ;;  %v1813_v30 = vld [vmem:[#allocation13 + $0x660] sm:$0xff] }
 0x3cd   : > { %v2712_v33 = vpop.f32.mrb[3].mxu1 }
 0x3ce   : > { %v2713_v34 = vadd.f32 %v2712_v33, %v2711_v32  ;;  %v1435_v35 = vadd.f32 %v2754_v23, %v1350_v31  ;;  %v1816_v23 = vld [vmem:[#allocation13 + $0x678] sm:$0xff]  ;;  %v1815_v31 = vld [vmem:[#allocation13 + $0x670] sm:$0xff]  ;;  %v1818_v33 = vld [vmem:[#allocation13 + $0x688] sm:$0xff] }
 0x3cf   : > { %v3128_v29 = vpack.c.bf16 %v1816_v23, %v1814_v22  ;;  %v1851_v22 = vld [vmem:[#allocation13 + $0x790] sm:$0xff]  ;;  %v1854_v23 = vld [vmem:[#allocation13 + $0x7a8] sm:$0xff] }
 0x3d0   : > { %v1355_v36 = vadd.f32 %v2713_v34, %v2646_v28  ;;  %v1820_v34 = vld [vmem:[#allocation13 + $0x698] sm:$0xff] }
 0x3d2   : > { %v1440_v37 = vadd.f32 %v2757_v25, %v1355_v36  ;;  %v3132_v36 = vpack.c.bf16 %v1820_v34, %v1818_v33  ;;  %v1857_v33 = vld [vmem:[#allocation13 + $0x7c0] sm:$0xff]  ;;  %v1859_v34 = vld [vmem:[#allocation13 + $0x7d0] sm:$0xff] }
 0x3e4   : > { %v2758_v38 = vpop.f32.mrb[12].mxu0 }
 0x3e5   : > { %v2759_v39 = vpop.f32.mrb[13].mxu0 }
 0x3e6   : > { %v2760_v40 = vadd.f32 %v2759_v39, %v2758_v38  ;;  %v1819_v38 = vld [vmem:[#allocation13 + $0x690] sm:$0xff]  ;;  %v1822_v39 = vld [vmem:[#allocation13 + $0x6a8] sm:$0xff] }
 0x3f1   : > { %v2761_v0 = vpop.f32.mrb[14].mxu0 }
 0x3f2   : > { %v2762_v41 = vpop.f32.mrb[15].mxu0 }
 0x3f3   : > { %v2763_v42 = vadd.f32 %v2762_v41, %v2761_v0 }
 0x3f5   : > { %v2714_v43 = vpop.f32.mrb[4].mxu1  ;;  %v2824_v44 = vpop.f32.mrb[16].mxu0 }
 0x3f6   : > { %v1525_v45 = vadd.f32 %v2824_v44, %v1440_v37  ;;  %v2715_v46 = vpop.f32.mrb[5].mxu1  ;;  %v1519_v47 = vpop.f32.mrb[17].mxu0  ;;  %v1817_v37 = vld [vmem:[#allocation13 + $0x680] sm:$0xff]  ;;  %v1826_v44 = vld [vmem:[#allocation13 + $0x6c8] sm:$0xff] }
 0x3f7   : > { %v2716_v48 = vadd.f32 %v2715_v46, %v2714_v43  ;;  %v1520_v49 = vadd.f32 %v1519_v47, %v1435_v35  ;;  %v3130_v35 = vpack.c.bf16 %v1815_v31, %v1813_v30  ;;  %v3134_v0 = vpack.c.bf16 %v1819_v38, %v1817_v37  ;;  %v1823_v43 = vld [vmem:[#allocation13 + $0x6b0] sm:$0xff]  ;;  %v1860_v30 = vld [vmem:[#allocation13 + $0x7d8] sm:$0xff] }
 0x3f8   : > { %v1539_v50 = vmax.f32 %v1525_v45, 0.0  ;;  %v1828_v45 = vld [vmem:[#allocation13 + $0x6d8] sm:$0xff]  ;;  %v3174_v37 = vpack.c.bf16 %v1859_v34, %v1857_v33 }
 0x3f9   : > { %v1360_v51 = vadd.f32 %v2716_v48, %v2646_v28  ;;  %v1538_v52 = vmax.f32 %v1520_v49, 0.0  ;;  %v2717_v53 = vpop.f32.mrb[6].mxu1  ;;  %v2827_v54 = vpop.f32.mrb[18].mxu0  ;;  %v3140_v47 = vpack.c.bf16 %v1828_v45, %v1826_v44  ;;  %v1825_v48 = vld [vmem:[#allocation13 + $0x6c0] sm:$0xff]  ;;  %v1827_v49 = vld [vmem:[#allocation13 + $0x6d0] sm:$0xff] }
 0x3fa   : > { %1569 = vst [vmem:[#allocation3 + $0x38] sm:$0xf] %v1539_v50  ;;  %v2718_v55 = vpop.f32.mrb[7].mxu1  ;;  %v1529_v56 = vpop.f32.mrb[19].mxu0  ;;  %v1830_v50 = vld [vmem:[#allocation13 + $0x6e8] sm:$0xff]  ;;  %v1865_v44 = vld [vmem:[#allocation13 + $0x800] sm:$0xff] }
 0x3fb   : > { %1568 = vst [vmem:[#allocation3 + $0x20] sm:$0xf] %v1538_v52  ;;  %v2719_v57 = vadd.f32 %v2718_v55, %v2717_v53  ;;  %v1445_v58 = vadd.f32 %v2760_v40, %v1360_v51  ;;  %v1824_v40 = vld [vmem:[#allocation13 + $0x6b8] sm:$0xff]  ;;  %v3142_v52 = vpack.c.bf16 %v1827_v49, %v1825_v48  ;;  %v1831_v55 = vld [vmem:[#allocation13 + $0x6f0] sm:$0xff] }
 0x3fc   : > { %v3136_v41 = vpack.c.bf16 %v1824_v40, %v1822_v39  ;;  %v1832_v51 = vld [vmem:[#allocation13 + $0x6f8] sm:$0xff]  ;;  %v1861_v39 = vld [vmem:[#allocation13 + $0x7e0] sm:$0xff]  ;;  %v1863_v40 = vld [vmem:[#allocation13 + $0x7f0] sm:$0xff] }
 0x3fd   : > { %v1365_v60 = vadd.f32 %v2719_v57, %v2646_v28  ;;  %v1530_v61 = vadd.f32 %v1529_v56, %v1445_v58  ;;  %v3144_v53 = vpack.c.bf16 %v1832_v51, %v1830_v50  ;;  %v1834_v56 = vld [vmem:[#allocation13 + $0x708] sm:$0xff]  ;;  %v1836_v57 = vld [vmem:[#allocation13 + $0x718] sm:$0xff]  ;;  %v1867_v45 = vld [vmem:[#allocation13 + $0x810] sm:$0xff] }
 0x3fe   : > { %v3182_v48 = vpack.c.bf16 %v1867_v45, %v1865_v44  ;;  %v1869_v50 = vld [vmem:[#allocation13 + $0x820] sm:$0xff]  ;;  %v1871_v51 = vld [vmem:[#allocation13 + $0x830] sm:$0xff] }
 0x3ff   : > { %v1450_v63 = vadd.f32 %v2763_v42, %v1365_v60  ;;  %v1540_v1 = vmax.f32 %v1530_v61, 0.0  ;;  %v1821_v42 = vld [vmem:[#allocation13 + $0x6a0] sm:$0xff]  ;;  %v3148_v60 = vpack.c.bf16 %v1836_v57, %v1834_v56  ;;  %v3186_v56 = vpack.c.bf16 %v1871_v51, %v1869_v50 }
 0x400   : > { %v3138_v46 = vpack.c.bf16 %v1823_v43, %v1821_v42  ;;  %v1833_v61 = vld [vmem:[#allocation13 + $0x700] sm:$0xff]  ;;  %v3178_v42 = vpack.c.bf16 %v1863_v40, %v1861_v39 }
 0x401   : > { %v1535_v5 = vadd.f32 %v2827_v54, %v1450_v63  ;;  %1570 = vst [vmem:[#allocation3 + $0x50] sm:$0xf] %v1540_v1  ;;  %v1579_v6 = vld [vmem:[#allocation3 + $0x38] ss:$2 sm:$0xff]  ;;  %v1575_v7 = vld [vmem:[#allocation3 + $0x37] ss:$2 sm:$0xff]  ;;  %v3150_v1 = vpack.c.bf16 %v1835_v59, %v1833_v61 }
 0x402   : > { %1979 = vmatprep.mubr.f32.mxu0 %v1579_v6  ;;  %v1593_v10 = vld [vmem:[#allocation3 + $0x21] ss:$2 sm:$0xff]  ;;  %v1589_v12 = vld [vmem:[#allocation3 + $0x20] ss:$2 sm:$0xff]  ;;  %v1840_v63 = vld [vmem:[#allocation13 + $0x738] sm:$0xff] }
 0x403   : > { %v1585_v11 = vld [vmem:[#allocation3 + $0x1f] ss:$2 sm:$0xff]  ;;  %v1541_v14 = vmax.f32 %v1535_v5, 0.0  ;;  %1980 = vmatmul.mubr.f32.gmra.mrb[22].mxu0 %v1575_v7  ;;  %2127 = vmatprep.mubr.f32.mxu1 %v1593_v10  ;;  %v1602_v32 = vld [vmem:[#allocation3 + $0x38] ss:$2 sm:$0xff]  ;;  %v3152_v2 = vpack.c.bf16 %v1840_v63, %v1838_v62  ;;  %v3154_v7 = vpack.c.bf16 %v1839_v4, %v1837_v3 }
 0x404   : > { %2050 = vmatprep.mubr.f32.mxu0 %v1585_v11  ;;  %2128 = vmatmul.mubr.f32.vlgmr.msra.gmra.mrb[8].mxu1 %v1589_v12  ;;  %v1583_v28 = vld [vmem:[#allocation3 + $0x39] ss:$2 sm:$0xff]  ;;  %v1843_v10 = vld [vmem:[#allocation13 + $0x750] sm:$0xff] }
 0x405   : > { %1571 = vst [vmem:[#allocation3 + $0x68] sm:$0xf] %v1541_v14  ;;  %3119 = vmatpush1.bf16.msra.mxu1 %v3118_v8  ;;  %v1829_v54 = vld [vmem:[#allocation13 + $0x6e0] sm:$0xff]  ;;  %v1842_v5 = vld [vmem:[#allocation13 + $0x748] sm:$0xff]  ;;  %v1844_v6 = vld [vmem:[#allocation13 + $0x758] sm:$0xff] }
 0x406   : > { %3121 = vmatprep.subr.bf16.mxu1 %v3120_v13  ;;  %v3146_v58 = vpack.c.bf16 %v1831_v55, %v1829_v54  ;;  %v3156_v8 = vpack.c.bf16 %v1844_v6, %v1842_v5  ;;  %v1846_v11 = vld [vmem:[#allocation13 + $0x768] sm:$0xff]  ;;  %v1848_v12 = vld [vmem:[#allocation13 + $0x778] sm:$0xff]  ;;  %v3158_v13 = vpack.c.bf16 %v1843_v10, %v1841_v9  ;;  %v1877_v3 = vld [vmem:[#allocation13 + $0x860] sm:$0xff] }
 0x407   : > { %2051 = vmatmul.mubr.f32.vlgmr.msra.gmra.mrb[20].mxu0 %v1581_v17  ;;  %v3160_v14 = vpack.c.bf16 %v1848_v12, %v1846_v11  ;;  %v1850_v17 = vld [vmem:[#allocation13 + $0x788] sm:$0xff]  ;;  %v1876_v54 = vld [vmem:[#allocation13 + $0x858] sm:$0xff]  ;;  %v1879_v4 = vld [vmem:[#allocation13 + $0x870] sm:$0xff] }
 0x408   : > { %v1587_v24 = vld [vmem:[#allocation3 + $0x4f] ss:$2 sm:$0xff]  ;;  %v1591_v25 = vld [vmem:[#allocation3 + $0x50] ss:$2 sm:$0xff]  ;;  %v1878_v59 = vld [vmem:[#allocation13 + $0x868] sm:$0xff] }
 0x409   : > { %v1595_v26 = vld [vmem:[#allocation3 + $0x51] ss:$2 sm:$0xff]  ;;  %3123 = vmatpush1.bf16.msra.mxu1 %v3122_v18  ;;  %2056 = vmatprep.mubr.f32.mxu0 %v1587_v24  ;;  %v1882_v5 = vld [vmem:[#allocation13 + $0x888] sm:$0xff] }
 0x40a   : > { %2133 = vmatprep.mubr.f32.mxu1 %v1595_v26  ;;  %3125 = vmatprep.subr.bf16.mxu1 %v3124_v19  ;;  %v1852_v18 = vld [vmem:[#allocation13 + $0x798] sm:$0xff]  ;;  %v3162_v19 = vpack.c.bf16 %v1847_v16, %v1845_v15  ;;  %v3166_v26 = vpack.c.bf16 %v1851_v22, %v1849_v21  ;;  %v1881_v9 = vld [vmem:[#allocation13 + $0x880] sm:$0xff]  ;;  %v1883_v10 = vld [vmem:[#allocation13 + $0x890] sm:$0xff] }
 0x40b   : > { %2134 = vmatmul.mubr.f32.gmra.mrb[10].mxu1 %v1591_v25  ;;  %2057 = vmatmul.mubr.f32.gmra.mrb[22].mxu0 %v1583_v28  ;;  %v3164_v20 = vpack.c.bf16 %v1852_v18, %v1850_v17  ;;  %v1856_v24 = vld [vmem:[#allocation13 + $0x7b8] sm:$0xff]  ;;  %v1855_v28 = vld [vmem:[#allocation13 + $0x7b0] sm:$0xff]  ;;  %v1886_v11 = vld [vmem:[#allocation13 + $0x8a8] sm:$0xff] }
 0x40c   : > { %2204 = vmatprep.mubr.f32.mxu1 %v1602_v32  ;;  %v3168_v25 = vpack.c.bf16 %v1856_v24, %v1854_v23  ;;  %v1604_v55 = vld [vmem:[#allocation3 + $0x68] ss:$2 sm:$0xff]  ;;  %v1600_v61 = vld [vmem:[#allocation3 + $0x67] ss:$2 sm:$0xff]  ;;  %v1885_v15 = vld [vmem:[#allocation13 + $0x8a0] sm:$0xff] }
 0x40d   : > { %3127 = vmatpush1.bf16.msra.mxu1 %v3126_v27  ;;  %v1853_v27 = vld [vmem:[#allocation13 + $0x7a0] sm:$0xff]  ;;  %v1880_v62 = vld [vmem:[#allocation13 + $0x878] sm:$0xff]  ;;  %v1887_v16 = vld [vmem:[#allocation13 + $0x8b0] sm:$0xff] }
 0x40e   : > { %3129 = vmatprep.subr.bf16.mxu1 %v3128_v29  ;;  %v1858_v29 = vld [vmem:[#allocation13 + $0x7c8] sm:$0xff]  ;;  %v3170_v31 = vpack.c.bf16 %v1855_v28, %v1853_v27  ;;  %v1884_v6 = vld [vmem:[#allocation13 + $0x898] sm:$0xff]  ;;  %v1889_v21 = vld [vmem:[#allocation13 + $0x8c0] sm:$0xff] }
 0x40f   : > { %v3172_v32 = vpack.c.bf16 %v1860_v30, %v1858_v29  ;;  %v1888_v12 = vld [vmem:[#allocation13 + $0x8b8] sm:$0xff]  ;;  %v1890_v17 = vld [vmem:[#allocation13 + $0x8c8] sm:$0xff]  ;;  %v1891_v22 = vld [vmem:[#allocation13 + $0x8d0] sm:$0xff] }
 0x410   : > { %v1892_v18 = vld [vmem:[#allocation13 + $0x8d8] sm:$0xff]  ;;  %v1894_v23 = vld [vmem:[#allocation13 + $0x8e8] sm:$0xff]  ;;  %v1893_v27 = vld [vmem:[#allocation13 + $0x8e0] sm:$0xff] }
 0x411   : > { %3131 = vmatpush1.bf16.msra.mxu1 %v3130_v35  ;;  %v1862_v35 = vld [vmem:[#allocation13 + $0x7e8] sm:$0xff]  ;;  %v1896_v24 = vld [vmem:[#allocation13 + $0x8f8] sm:$0xff]  ;;  %v1895_v28 = vld [vmem:[#allocation13 + $0x8f0] sm:$0xff] }
 0x412   : > { %3133 = vmatprep.subr.bf16.mxu1 %v3132_v36  ;;  %v1864_v36 = vld [vmem:[#allocation13 + $0x7f8] sm:$0xff]  ;;  %v3210_v29 = vpack.c.bf16 %v1895_v28, %v1893_v27  ;;  %v1897_v39 = vld [vmem:[#allocation15] sm:$0x3] }
 0x413   : > { %v3176_v38 = vpack.c.bf16 %v1864_v36, %v1862_v35  ;;  %v1606_v30 = vld [vmem:[#allocation3 + $0x39] ss:$2 sm:$0xff]  ;;  %v1899_v36 = vlaneseq }
 0x415   : > { %3135 = vmatpush1.bf16.msra.mxu1 %v3134_v0  ;;  %v1866_v0 = vld [vmem:[#allocation13 + $0x808] sm:$0xff] }
 0x416   : > { %3137 = vmatprep.subr.bf16.mxu1 %v3136_v41  ;;  %v1868_v41 = vld [vmem:[#allocation13 + $0x818] sm:$0xff] }
 0x417   : > { %v3180_v43 = vpack.c.bf16 %v1868_v41, %v1866_v0 }
 0x419   : > { %3139 = vmatpush1.bf16.msra.mxu1 %v3138_v46  ;;  %v1870_v46 = vld [vmem:[#allocation13 + $0x828] sm:$0xff] }
 0x41a   : > { %3141 = vmatprep.subr.bf16.mxu1 %v3140_v47  ;;  %v1872_v47 = vld [vmem:[#allocation13 + $0x838] sm:$0xff] }
 0x41b   : > { %v3184_v49 = vpack.c.bf16 %v1872_v47, %v1870_v46 }
 0x41d   : > { %3143 = vmatpush1.bf16.msra.mxu1 %v3142_v52  ;;  %v1598_v52 = vld [vmem:[#allocation3 + $0x37] ss:$2 sm:$0xff] }
 0x41e   : > { %3145 = vmatprep.subr.bf16.mxu1 %v3144_v53  ;;  %v1874_v53 = vld [vmem:[#allocation13 + $0x848] sm:$0xff] }
 0x41f   : > { %v3188_v57 = vpack.c.bf16 %v1876_v54, %v1874_v53 }
 0x421   : > { %3147 = vmatpush1.bf16.msra.mxu1 %v3146_v58  ;;  %v1873_v58 = vld [vmem:[#allocation13 + $0x840] sm:$0xff] }
 0x422   : > { %3149 = vmatprep.subr.bf16.mxu1 %v3148_v60  ;;  %v1875_v60 = vld [vmem:[#allocation13 + $0x850] sm:$0xff] }
 0x423   : > { %v3190_v63 = vpack.c.bf16 %v1875_v60, %v1873_v58 }
 0x425   : > { %3151 = vmatpush1.bf16.msra.mxu1 %v3150_v1  ;;  %v3396_v1 = vld [vmem:[#allocation3 + $0x78] sm:$0xff] }
 0x426   : > { %3153 = vmatprep.subr.bf16.mxu1 %v3152_v2  ;;  %v3192_v2 = vpack.c.bf16 %v1880_v62, %v1878_v59 }
 0x429   : > { %3155 = vmatpush1.bf16.msra.mxu1 %v3154_v7  ;;  %v3194_v7 = vpack.c.bf16 %v1879_v4, %v1877_v3 }
 0x42a   : > { %3157 = vmatprep.subr.bf16.mxu1 %v3156_v8  ;;  %v3196_v8 = vpack.c.bf16 %v1884_v6, %v1882_v5 }
 0x42d   : > { %3159 = vmatpush1.bf16.msra.mxu1 %v3158_v13  ;;  %v3198_v13 = vpack.c.bf16 %v1883_v10, %v1881_v9 }
 0x42e   : > { %3161 = vmatprep.subr.bf16.mxu1 %v3160_v14  ;;  %v3200_v14 = vpack.c.bf16 %v1888_v12, %v1886_v11 }
 0x431   : > { %3163 = vmatpush1.bf16.msra.mxu1 %v3162_v19  ;;  %v3202_v19 = vpack.c.bf16 %v1887_v16, %v1885_v15 }
 0x432   : > { %3165 = vmatprep.subr.bf16.mxu1 %v3164_v20  ;;  %v3204_v20 = vpack.c.bf16 %v1892_v18, %v1890_v17 }
 0x435   : > { %3167 = vmatpush1.bf16.msra.mxu1 %v3166_v26  ;;  %v3206_v26 = vpack.c.bf16 %v1891_v22, %v1889_v21 }
 0x436   : > { %3169 = vmatprep.subr.bf16.mxu1 %v3168_v25  ;;  %v3208_v25 = vpack.c.bf16 %v1896_v24, %v1894_v23 }
 0x439   : > { %3171 = vmatpush1.bf16.msra.mxu1 %v3170_v31  ;;  %v1608_v31 = vld [vmem:[#allocation3 + $0x69] ss:$2 sm:$0xff] }
 0x43a   : > { %3173 = vmatprep.subr.bf16.mxu1 %v3172_v32 }
 0x43d   : > { %3175 = vmatpush1.bf16.msra.mxu1 %v3174_v37  ;;  %v1900_v37 = vshrl.u32 %v1899_v36, 7 }
 0x43e   : > { %3177 = vmatprep.subr.bf16.mxu1 %v3176_v38 }
 0x43f   : > { %v1901_v38 = vsub.s32 0, %v1900_v37  ;;  %v1905_v40 = vsub.s32 1, %v1900_v37 }
 0x441   : > { %3179 = vmatpush1.bf16.msra.mxu1 %v3178_v42  ;;  %v1902_v0 = vrot.slane %v1897_v39, %v1901_v38  ;;  %v1906_v41 = vrot.slane %v1897_v39, %v1905_v40 }
 0x442   : > { %3181 = vmatprep.subr.bf16.mxu1 %v3180_v43 }
 0x444   : > { %2205 = vmatmul.mubr.f32.vlgmr.msra.gmra.mrb[8].mxu1 %v1598_v52 }
 0x445   : > { %2210 = vmatprep.mubr.f32.mxu1 %v1604_v55  ;;  %3183 = vmatpush1.bf16.msra.mxu1 %v3182_v48 }
 0x446   : > { %3185 = vmatprep.subr.bf16.mxu1 %v3184_v49 }
 0x448   : > { %2211 = vmatmul.mubr.f32.gmra.mrb[10].mxu1 %v1600_v61 }
 0x449   : > { %3187 = vmatpush1.bf16.msra.mxu1 %v3186_v56  ;;  %2281 = vmatprep.mubr.f32.mxu1 %v3396_v1 }
 0x44a   : > { %3189 = vmatprep.subr.bf16.mxu1 %v3188_v57 }
 0x44d   : > { %3191 = vmatpush1.bf16.msra.mxu1 %v3190_v63 }
 0x44e   : > { %3193 = vmatprep.subr.bf16.mxu1 %v3192_v2 }
 0x451   : > { %3195 = vmatpush1.bf16.msra.mxu1 %v3194_v7 }
 0x452   : > { %3197 = vmatprep.subr.bf16.mxu1 %v3196_v8 }
 0x455   : > { %3199 = vmatpush1.bf16.msra.mxu1 %v3198_v13 }
 0x456   : > { %3201 = vmatprep.subr.bf16.mxu1 %v3200_v14 }
 0x459   : > { %3203 = vmatpush1.bf16.msra.mxu1 %v3202_v19 }
 0x45a   : > { %3205 = vmatprep.subr.bf16.mxu1 %v3204_v20 }
 0x45d   : > { %3207 = vmatpush1.bf16.msra.mxu1 %v3206_v26 }
 0x45e   : > { %3209 = vmatprep.subr.bf16.mxu1 %v3208_v25 }
 0x461   : > { %3211 = vmatpush1.bf16.msra.mxu1 %v3210_v29 }
 0x464   : > { %2282 = vmatmul.mubr.f32.vlgmr.msra.gmra.mrb[8].mxu1 %v1606_v30 }
 0x465   : > { %2287 = vmatprep.mubr.f32.mxu1 %v3396_v1 }
 0x468   : > { %2288 = vmatmul.mubr.f32.gmra.mrb[10].mxu1 %v1608_v31 }
 0x4da   : > { %v2052_v32 = vpop.f32.mrb[20].mxu0 }
 0x4db   : > { %v2054_v33 = vpop.f32.mrb[21].mxu0  ;;  %v3212_v42 = vadd.f32 %v2052_v32, %v1902_v0 }
 0x4dc   : > { %v3214_v43 = vadd.f32 %v2054_v33, %v1906_v41 }
 0x4de   : > { %v2058_v34 = vpop.f32.mrb[22].mxu0 }
 0x4df   : > { %v2060_v35 = vpop.f32.mrb[23].mxu0  ;;  %v3216_v48 = vadd.f32 %v2058_v34, %v1902_v0 }
 0x4e0   : > { %v3218_v50 = vadd.f32 %v2060_v35, %v1906_v41 }
 0x537   : > { %v2283_v44 = vpop.f32.mrb[8].mxu1 }
 0x538   : > { %v3213_v45 = vadd.f32 %v3212_v42, %v2283_v44  ;;  %v2285_v46 = vpop.f32.mrb[9].mxu1 }
 0x539   : > { %v3215_v47 = vadd.f32 %v3214_v43, %v2285_v46 }
 0x53a   : > { %v2294_v49 = vmax.f32 %v3213_v45, 0.0 }
 0x53b   : > { %v2295_v51 = vmax.f32 %v3215_v47, 0.0  ;;  %v2289_v52 = vpop.f32.mrb[10].mxu1 }
 0x53c   : > { %v3217_v53 = vadd.f32 %v3216_v48, %v2289_v52  ;;  %v2291_v54 = vpop.f32.mrb[11].mxu1 }
 0x53d   : > { %v2302_v55 = vcombine.low %v2294_v49, %v2295_v51  ;;  %v3219_v56 = vadd.f32 %v3218_v50, %v2291_v54 }
 0x53e   : > { %v2296_v57 = vmax.f32 %v3217_v53, 0.0 }
 0x53f   : > { %2651 = vst.sshfl [vmem:[%s377_s19] sm:$0x33 pattern:$0x76325410] %v2302_v55  ;;  %v2297_v58 = vmax.f32 %v3219_v56, 0.0 }
 0x541   : > { %v2310_v60 = vcombine.low %v2296_v57, %v2297_v58 }
 0x543   : > { %2652 = vst.sshfl [vmem:[%s377_s19 + $0x4] sm:$0x33 pattern:$0x76325410] %v2310_v60 }
 0x544   : > { %3608 = shalt.err (!%p3605_p8)
}
 0x545   : > { %s3609_s17 = scalar_lea.hbm %s4305_s8, 128  ;;  %s3613_s19 = scalar_lea.hbm %s4358_s7, 256 }
 0x546   : > { %p3610_p4 = scmp.ne.s32.totalorder %s4305_s8, %s3609_s17  ;;  %p3614_p0 = scmp.lt.u32.totalorder %s4305_s8, %s4358_s7 }
 0x547   : > { %p3615_p6 = scmp.lt.u32.totalorder %s3613_s19, %s3609_s17  ;;  %p3617_p5 = scmp.lt.u32.totalorder %s3609_s17, %s4305_s8 }
 0x548   : > { %p3611_p10 = pnand %p3610_p4, %p4383_p9 }
 0x549   : > { %p3616_p7 = por %p3615_p6, %p3614_p0 }
 0x54a   : > { %p3612_p11 = pneg %p3611_p10 }
 0x54b   : > { %p3618_p12 = por %p3617_p5, %p3616_p7 }
 0x54d   : > { %p3619_p13 = pnand %p3618_p12, %p3612_p11 }
 0x54f   : > { %3622 = shalt.err (!%p3619_p13)
}
 0x550   : > { %s3696_s13 = smov 4  }
 0x551   : > { %3261 = dma.vmem_to_hbm [thread:$0]  (%p4383_p9), %s4300_s14, 128, %s4305_s8, %s2323_s10, %s3694_s16, %s3694_s16, %s3696_s13  }
 0x552 PF: > { %s2351_s28 = sand.u32 1, %s3661_s24   ;;  %p4384_p1 = scmp.ne.s32.totalorder %s4372_s23, 0 }
 0x553   : > { %p4385_p3 = scmp.ge.s32.totalorder %s3673_s27, 2  ;;  %s2352_s30 = scalar_lea.sflag [#allocation6], %s2351_s28 }
 0x555   : > { %p3287_p2 = pnand %p4385_p3, %p4384_p1 }
 0x557   : > { %3656 = dma.done.wait (!%p3287_p2), %s2352_s30, 128  }
 0x558   : > { %3658 = vsyncadd (!%p3287_p2), %s2352_s30, 4294967168  ;;  %p23_p8 = scmp.ge.s32.totalorder %s3919_s11, 4   ;;  %s4386_s24 = smov %s3665_s25 }
 0x559   : > { %s4387_s25 = smov %s3669_s26  ;;  %s4388_s26 = smov %s3930_s20 }
 0x55a   : > { %s4389_s27 = smov %s3919_s11  ;;  %25 = sbr.rel (!%p23_p8) target bundleno = 10 (0xa), region = 248 }
 0x561   :  { %2357 = vsyncpa [#allocation5], 1 }
 0x562   :  { %2359 = vsyncpa [#allocation5 + $0x1], 1 }
 0x563   :  { %2360 = vsyncpa [#allocation8], 1 }
 0x564   :  { %2361 = vsyncpa [#allocation11], 1 }
 0x565   :  { %2362 = vsyncpa [#allocation14], 1 }
 0x566   :  { %2363 = vsyncpa [#allocation6], 1 }
 0x567   :  { %2365 = vsyncpa [#allocation6 + $0x1], 1 }

</bundles_post_ra>
